<compile_context>
chip_gen: v7x
topology: tpu7x:2x2x1
jax: 0.10.0
libtpu: 0.0.40
codegen_flags: <defaults>
</compile_context>

<pallas_src>
import jax
import jax.numpy as jnp
from jax import lax
from jax.experimental import pallas as pl
from jax.experimental.pallas import tpu as pltpu

# ---- hyperparameters (small, consistent with the module constructor) --------
B = 2              # batch (per problem)
S = 8              # seq_len
BS = B * S         # flattened tokens per problem
F_IN = 16          # raw feature dim fed to the encoder
D = 32             # embedding_dim
H = 4              # attention_heads
DH = D // H        # head dim
P = 64             # num_planes
DFF = 2048         # nn.TransformerEncoderLayer default dim_feedforward
LN_EPS = 1e-5      # nn.LayerNorm default eps
NORM_EPS = 1e-12   # F.normalize default eps
NBIAS = 9          # rows in the packed bias / layernorm slab


def _layernorm(x, gamma, beta):
    mu = jnp.mean(x, axis=-1, keepdims=True)
    xc = x - mu
    var = jnp.mean(xc * xc, axis=-1, keepdims=True)
    return xc * lax.rsqrt(var + LN_EPS) * gamma + beta


def representation_kernel(
    x_ref, cos_ref, sin_ref, mask_ref, jswap_ref, apool_ref,
    bias_ref, bh_ref, wenc_ref, wqkv_ref, wo_ref,
    wff1_ref, bff1_ref, wff2_ref, wm1_ref, wm2_ref,
    out_ref,
):
    f32 = jnp.float32

    # --- small packed params (sublane rows; lane slices start at offset 0) ----
    bp = bias_ref[...]                       # (NBIAS, 128)
    benc = bp[0:1, :D]
    bo = bp[1:2, :D]
    g1 = bp[2:3, :D]
    be1 = bp[3:4, :D]
    bff2 = bp[4:5, :D]
    g2 = bp[5:6, :D]
    be2 = bp[6:7, :D]
    bm1 = bp[7:8, :P]
    bm2 = bp[8:9, :D]

    x = x_ref[...]                           # (M, F_IN) fused token rows

    # --- encoder: Linear(F_IN -> D) on flattened tokens -----------------------
    e = jnp.dot(x, wenc_ref[...], preferred_element_type=f32) + benc   # (M, D)

    # --- rotary positional encoding (rotate-half) -----------------------------
    # half-swap done as an MXU permutation matmul (no lane slices / concat)
    e_swap = jnp.dot(e, jswap_ref[...], preferred_element_type=f32)
    h = e * cos_ref[...] + e_swap * sin_ref[...]                        # (M, D)

    # --- multi-head self-attention over the batch axis (batch_first=False) ----
    # Per-head q/k/v/out weights are host-pre-split -> no lane slices in-kernel.
    mask_bias = mask_ref[...]                # (M, M): 0 if same problem & seq, else -1e30
    attn = None
    for hd in range(H):
        qh = jnp.dot(h, wqkv_ref[0, hd], preferred_element_type=f32) + bh_ref[0, hd]
        kh = jnp.dot(h, wqkv_ref[1, hd], preferred_element_type=f32) + bh_ref[1, hd]
        vh = jnp.dot(h, wqkv_ref[2, hd], preferred_element_type=f32) + bh_ref[2, hd]
        s = lax.dot_general(qh, kh, (((1,), (1,)), ((), ())),
                            preferred_element_type=f32) + mask_bias
        s = s - jnp.max(s, axis=-1, keepdims=True)
        p = jnp.exp(s)
        p = p * pl.reciprocal(jnp.sum(p, axis=-1, keepdims=True), approx=True)
        oh = jnp.dot(p, vh, preferred_element_type=f32)                 # (M, DH)
        proj = jnp.dot(oh, wo_ref[hd], preferred_element_type=f32)      # (M, D)
        attn = proj if attn is None else attn + proj
    attn = attn + bo

    # --- post-norm transformer encoder layer (dropout omitted / eval mode) ----
    r1 = _layernorm(h + attn, g1, be1)
    ff = jnp.dot(r1.astype(jnp.bfloat16), wff1_ref[...],
                 preferred_element_type=f32) + bff1_ref[...]
    ff = jnp.maximum(ff, 0.0)
    ff = jnp.dot(ff.astype(jnp.bfloat16), wff2_ref[...],
                 preferred_element_type=f32) + bff2
    r2 = _layernorm(r1 + ff, g2, be2)

    # --- AdaptiveAvgPool1d(1): mean over seq positions, as one matmul ---------
    y = jnp.dot(apool_ref[...], r2, preferred_element_type=f32)         # (G*B, D)

    # --- mlp: Linear(D,P) -> ReLU -> (Dropout) -> Linear(P,D) -----------------
    z = jnp.maximum(
        jnp.dot(y, wm1_ref[...], preferred_element_type=f32) + bm1, 0.0)
    z = jnp.dot(z, wm2_ref[...], preferred_element_type=f32) + bm2

    # --- F.normalize (L2, dim=1): z / max(||z||, eps) --------------------------
    ssq = jnp.sum(z * z, axis=-1, keepdims=True)
    out_ref[...] = z * lax.rsqrt(jnp.maximum(ssq, NORM_EPS * NORM_EPS))


def make_params(key):
    ks = jax.random.split(key, 14)

    def init(k, shape, scale=0.1):
        return (scale * jax.random.normal(k, shape)).astype(jnp.float32)

    return dict(
        wenc=init(ks[0], (F_IN, D)),
        benc=init(ks[1], (1, D)),
        wqkv=init(ks[2], (D, 3 * D)),
        bqkv=init(ks[3], (1, 3 * D)),
        wo=init(ks[4], (D, D)),
        bo=init(ks[5], (1, D)),
        g1=jnp.ones((1, D), jnp.float32),
        be1=jnp.zeros((1, D), jnp.float32),
        wff1=init(ks[6], (D, DFF), 0.05),
        bff1=init(ks[7], (1, DFF)),
        wff2=init(ks[8], (DFF, D), 0.05),
        bff2=init(ks[9], (1, D)),
        g2=jnp.ones((1, D), jnp.float32),
        be2=jnp.zeros((1, D), jnp.float32),
        wm1=init(ks[10], (D, P)),
        bm1=init(ks[11], (1, P)),
        wm2=init(ks[12], (P, D)),
        bm2=init(ks[13], (1, D)),
    )


def pack_inputs(params, G):
    """Host-side packing of tables / weights for G fused problems per grid step."""
    f32 = jnp.float32
    M = G * BS
    tok = jnp.arange(M)

    # RoPE tables: position = seq index (token % S); full-width cos / signed sin.
    s_pos = (tok % S).astype(f32)
    inv_freq = 1.0 / (10000.0 ** (jnp.arange(0, D, 2, dtype=f32) / D))
    ang = s_pos[:, None] * inv_freq[None, :]                       # (M, D/2)
    cosf = jnp.concatenate([jnp.cos(ang), jnp.cos(ang)], axis=1)   # (M, D)
    sinsgn = jnp.concatenate([-jnp.sin(ang), jnp.sin(ang)], axis=1)

    # Half-swap permutation matrix: (e @ J)[:, j] = e[:, (j + D/2) % D]
    jswap = jnp.roll(jnp.eye(D, dtype=f32), D // 2, axis=0)

    # Attention bias: attend iff same fused problem AND same seq index.
    same_prob = (tok[:, None] // BS) == (tok[None, :] // BS)
    same_seq = (tok[:, None] % S) == (tok[None, :] % S)
    mask = jnp.where(same_prob & same_seq, 0.0, -1e30).astype(f32)  # (M, M)

    # Seq-mean pooling matrix: row r = (problem g, batch b), col t = token.
    r = jnp.arange(G * B)
    prob_r, b_r = r // B, r % B
    prob_t, b_t = tok // BS, (tok % BS) // S
    apool = jnp.where((prob_r[:, None] == prob_t[None, :]) &
                      (b_r[:, None] == b_t[None, :]), 1.0 / S, 0.0).astype(f32)

    # Small biases / layernorm params: one row each, packed along sublanes.
    def row(v):
        v = jnp.asarray(v, f32).reshape(1, -1)
        return jnp.pad(v, ((0, 0), (0, 128 - v.shape[1])))

    bias_pack = jnp.concatenate(
        [row(params[k]) for k in
         ("benc", "bo", "g1", "be1", "bff2", "g2", "be2", "bm1", "bm2")],
        axis=0)                                                     # (NBIAS, 128)

    # Per-head q/k/v/out projections (q pre-scaled by 1/sqrt(DH)).
    scale = 1.0 / (DH ** 0.5)
    wqkv = params["wqkv"]                   # (D, 3D) columns = [q | k | v]
    bqkv = params["bqkv"].reshape(-1)       # (3D,)

    def head_split(w_full, b_full, pre):
        w = (w_full.reshape(D, H, DH).transpose(1, 0, 2) * pre).astype(f32)  # (H, D, DH)
        b = (b_full.reshape(H, 1, DH) * pre).astype(f32)                     # (H, 1, DH)
        return w, b

    wq, bq = head_split(wqkv[:, 0 * D:1 * D], bqkv[0 * D:1 * D], scale)
    wk, bk = head_split(wqkv[:, 1 * D:2 * D], bqkv[1 * D:2 * D], 1.0)
    wv, bv = head_split(wqkv[:, 2 * D:3 * D], bqkv[2 * D:3 * D], 1.0)
    w_heads = jnp.stack([wq, wk, wv], axis=0)        # (3, H, D, DH)
    b_heads = jnp.stack([bq, bk, bv], axis=0)        # (3, H, 1, DH)
    wo_heads = params["wo"].reshape(H, DH, D)        # (H, DH, D)

    return (
        cosf, sinsgn, mask, jswap, apool, bias_pack, b_heads,
        params["wenc"], w_heads, wo_heads,
        params["wff1"].astype(jnp.bfloat16), params["bff1"].astype(f32),
        params["wff2"].astype(jnp.bfloat16),
        params["wm1"], params["wm2"],
    )


def _const_spec(shape):
    # Constant block index -> array stays resident in VMEM across grid steps.
    zero = (0,) * len(shape)
    return pl.BlockSpec(shape, lambda n, _z=zero: _z)


@jax.jit
def representation_general(x, packed):
    """x: (N, B, S, F_IN) — N independent forward passes, G fused per grid step."""
    N = x.shape[0]
    M = packed[0].shape[0]          # fused token rows per grid step (= G * BS)
    G = M // BS
    assert N % G == 0
    steps = N // G                  # keep >= 2 so v7x's 2 TCs both get work
    x2 = x.reshape(N * BS, F_IN).astype(jnp.float32)   # preprocess = identity

    in_specs = [pl.BlockSpec((M, F_IN), lambda n: (n, 0))] + \
               [_const_spec(p.shape) for p in packed]

    out = pl.pallas_call(
        representation_kernel,
        out_shape=jax.ShapeDtypeStruct((N * B, D), jnp.float32),
        grid=(steps,),
        in_specs=in_specs,
        out_specs=pl.BlockSpec((G * B, D), lambda n: (n, 0)),
        compiler_params=pltpu.CompilerParams(
            dimension_semantics=("parallel",)),
    )(x2, *packed)
    return out.reshape(N, B, D)


if __name__ == "__main__":
    key = jax.random.PRNGKey(0)
    kx, kp = jax.random.split(key)
    N = 8        # independent (B, S) problems
    G = 4        # problems fused per grid step -> grid=(2,) parallel steps
    x = jax.random.normal(kx, (N, B, S, F_IN), dtype=jnp.float32)
    params = make_params(kp)
    packed = pack_inputs(params, G)
    out = representation_general(x, packed)
    jax.block_until_ready(out)
    assert out.shape == (N, B, D)
    assert bool(jnp.all(jnp.isfinite(out)))
    print("KERNEL_OK")
</pallas_src>

<mosaic_0001>
module attributes {stable_mosaic.version = 11 : i64} {
  func.func @representation_kernel(%arg0: i32, %arg1: memref<64x16xf32, #tpu.memory_space<vmem>>, %arg2: memref<64x32xf32, #tpu.memory_space<vmem>>, %arg3: memref<64x32xf32, #tpu.memory_space<vmem>>, %arg4: memref<64x64xf32, #tpu.memory_space<vmem>>, %arg5: memref<32x32xf32, #tpu.memory_space<vmem>>, %arg6: memref<8x64xf32, #tpu.memory_space<vmem>>, %arg7: memref<9x128xf32, #tpu.memory_space<vmem>>, %arg8: memref<3x4x1x8xf32, #tpu.memory_space<vmem>>, %arg9: memref<16x32xf32, #tpu.memory_space<vmem>>, %arg10: memref<3x4x32x8xf32, #tpu.memory_space<vmem>>, %arg11: memref<4x8x32xf32, #tpu.memory_space<vmem>>, %arg12: memref<32x2048xbf16, #tpu.memory_space<vmem>>, %arg13: memref<1x2048xf32, #tpu.memory_space<vmem>>, %arg14: memref<2048x32xbf16, #tpu.memory_space<vmem>>, %arg15: memref<32x64xf32, #tpu.memory_space<vmem>>, %arg16: memref<64x32xf32, #tpu.memory_space<vmem>>, %arg17: memref<8x32xf32, #tpu.memory_space<vmem>>) attributes {dimension_semantics = [#tpu.dimension_semantics<parallel>], iteration_bounds = array<i64: 2>, scalar_prefetch = 0 : i64, scratch_operands = 0 : i64, tpu.core_type = #tpu.core_type<tc>, window_params = [{transform_indices = @transform_0, window_bounds = array<i64: 64, 16>}, {pipeline_mode = #tpu.pipeline_mode<synchronous>, transform_indices = @transform_1, window_bounds = array<i64: 64, 32>}, {pipeline_mode = #tpu.pipeline_mode<synchronous>, transform_indices = @transform_2, window_bounds = array<i64: 64, 32>}, {pipeline_mode = #tpu.pipeline_mode<synchronous>, transform_indices = @transform_3, window_bounds = array<i64: 64, 64>}, {pipeline_mode = #tpu.pipeline_mode<synchronous>, transform_indices = @transform_4, window_bounds = array<i64: 32, 32>}, {pipeline_mode = #tpu.pipeline_mode<synchronous>, transform_indices = @transform_5, window_bounds = array<i64: 8, 64>}, {pipeline_mode = #tpu.pipeline_mode<synchronous>, transform_indices = @transform_6, window_bounds = array<i64: 9, 128>}, {pipeline_mode = #tpu.pipeline_mode<synchronous>, transform_indices = @transform_7, window_bounds = array<i64: 3, 4, 1, 8>}, {pipeline_mode = #tpu.pipeline_mode<synchronous>, transform_indices = @transform_8, window_bounds = array<i64: 16, 32>}, {pipeline_mode = #tpu.pipeline_mode<synchronous>, transform_indices = @transform_9, window_bounds = array<i64: 3, 4, 32, 8>}, {pipeline_mode = #tpu.pipeline_mode<synchronous>, transform_indices = @transform_10, window_bounds = array<i64: 4, 8, 32>}, {pipeline_mode = #tpu.pipeline_mode<synchronous>, transform_indices = @transform_11, window_bounds = array<i64: 32, 2048>}, {pipeline_mode = #tpu.pipeline_mode<synchronous>, transform_indices = @transform_12, window_bounds = array<i64: 1, 2048>}, {pipeline_mode = #tpu.pipeline_mode<synchronous>, transform_indices = @transform_13, window_bounds = array<i64: 2048, 32>}, {pipeline_mode = #tpu.pipeline_mode<synchronous>, transform_indices = @transform_14, window_bounds = array<i64: 32, 64>}, {pipeline_mode = #tpu.pipeline_mode<synchronous>, transform_indices = @transform_15, window_bounds = array<i64: 64, 32>}, {transform_indices = @transform_16, window_bounds = array<i64: 8, 32>}]} {
    %c0 = arith.constant 0 : index
    %c0_0 = arith.constant 0 : index
    %0 = vector.load %arg7[%c0, %c0_0] : memref<9x128xf32, #tpu.memory_space<vmem>>, vector<9x128xf32>
    %1 = vector.extract_strided_slice %0 {offsets = [0, 0], sizes = [1, 32], strides = [1, 1]} : vector<9x128xf32> to vector<1x32xf32>
    %2 = vector.extract_strided_slice %0 {offsets = [1, 0], sizes = [1, 32], strides = [1, 1]} : vector<9x128xf32> to vector<1x32xf32>
    %3 = vector.extract_strided_slice %0 {offsets = [2, 0], sizes = [1, 32], strides = [1, 1]} : vector<9x128xf32> to vector<1x32xf32>
    %4 = vector.extract_strided_slice %0 {offsets = [3, 0], sizes = [1, 32], strides = [1, 1]} : vector<9x128xf32> to vector<1x32xf32>
    %5 = vector.extract_strided_slice %0 {offsets = [4, 0], sizes = [1, 32], strides = [1, 1]} : vector<9x128xf32> to vector<1x32xf32>
    %6 = vector.extract_strided_slice %0 {offsets = [5, 0], sizes = [1, 32], strides = [1, 1]} : vector<9x128xf32> to vector<1x32xf32>
    %7 = vector.extract_strided_slice %0 {offsets = [6, 0], sizes = [1, 32], strides = [1, 1]} : vector<9x128xf32> to vector<1x32xf32>
    %8 = vector.extract_strided_slice %0 {offsets = [7, 0], sizes = [1, 64], strides = [1, 1]} : vector<9x128xf32> to vector<1x64xf32>
    %9 = vector.extract_strided_slice %0 {offsets = [8, 0], sizes = [1, 32], strides = [1, 1]} : vector<9x128xf32> to vector<1x32xf32>
    %c0_1 = arith.constant 0 : index
    %c0_2 = arith.constant 0 : index
    %10 = vector.load %arg1[%c0_1, %c0_2] : memref<64x16xf32, #tpu.memory_space<vmem>>, vector<64x16xf32>
    %c0_3 = arith.constant 0 : index
    %c0_4 = arith.constant 0 : index
    %11 = vector.load %arg9[%c0_3, %c0_4] : memref<16x32xf32, #tpu.memory_space<vmem>>, vector<16x32xf32>
    %cst = arith.constant dense<0.000000e+00> : vector<64x32xf32>
    %12 = tpu.matmul %10, %11, %cst {dimension_numbers = #tpu.dot_dimension_numbers<[1], [0], [0], [1], [0, 0, 1, 1], [], []>} : vector<64x16xf32>, vector<16x32xf32>, vector<64x32xf32> -> vector<64x32xf32>
    %13 = vector.broadcast %1 : vector<1x32xf32> to vector<64x32xf32>
    %14 = arith.addf %12, %13 : vector<64x32xf32>
    %c0_5 = arith.constant 0 : index
    %c0_6 = arith.constant 0 : index
    %15 = vector.load %arg5[%c0_5, %c0_6] : memref<32x32xf32, #tpu.memory_space<vmem>>, vector<32x32xf32>
    %cst_7 = arith.constant dense<0.000000e+00> : vector<64x32xf32>
    %16 = tpu.matmul %14, %15, %cst_7 {dimension_numbers = #tpu.dot_dimension_numbers<[1], [0], [0], [1], [0, 0, 1, 1], [], []>} : vector<64x32xf32>, vector<32x32xf32>, vector<64x32xf32> -> vector<64x32xf32>
    %c0_8 = arith.constant 0 : index
    %c0_9 = arith.constant 0 : index
    %17 = vector.load %arg2[%c0_8, %c0_9] : memref<64x32xf32, #tpu.memory_space<vmem>>, vector<64x32xf32>
    %18 = arith.mulf %14, %17 : vector<64x32xf32>
    %c0_10 = arith.constant 0 : index
    %c0_11 = arith.constant 0 : index
    %19 = vector.load %arg3[%c0_10, %c0_11] : memref<64x32xf32, #tpu.memory_space<vmem>>, vector<64x32xf32>
    %20 = arith.mulf %16, %19 : vector<64x32xf32>
    %21 = arith.addf %18, %20 : vector<64x32xf32>
    %c0_12 = arith.constant 0 : index
    %c0_13 = arith.constant 0 : index
    %22 = vector.load %arg4[%c0_12, %c0_13] : memref<64x64xf32, #tpu.memory_space<vmem>>, vector<64x64xf32>
    %c0_14 = arith.constant 0 : index
    %c0_15 = arith.constant 0 : index
    %c0_16 = arith.constant 0 : index
    %c0_17 = arith.constant 0 : index
    %23 = vector.load %arg10[%c0_14, %c0_15, %c0_16, %c0_17] : memref<3x4x32x8xf32, #tpu.memory_space<vmem>>, vector<1x1x32x8xf32>
    %24 = vector.shape_cast %23 : vector<1x1x32x8xf32> to vector<32x8xf32>
    %cst_18 = arith.constant dense<0.000000e+00> : vector<64x8xf32>
    %25 = tpu.matmul %21, %24, %cst_18 {dimension_numbers = #tpu.dot_dimension_numbers<[1], [0], [0], [1], [0, 0, 1, 1], [], []>} : vector<64x32xf32>, vector<32x8xf32>, vector<64x8xf32> -> vector<64x8xf32>
    %c0_19 = arith.constant 0 : index
    %c0_20 = arith.constant 0 : index
    %c0_21 = arith.constant 0 : index
    %c0_22 = arith.constant 0 : index
    %26 = vector.load %arg8[%c0_19, %c0_20, %c0_21, %c0_22] : memref<3x4x1x8xf32, #tpu.memory_space<vmem>>, vector<1x1x1x8xf32>
    %27 = vector.shape_cast %26 : vector<1x1x1x8xf32> to vector<1x8xf32>
    %28 = vector.broadcast %27 : vector<1x8xf32> to vector<64x8xf32>
    %29 = arith.addf %25, %28 : vector<64x8xf32>
    %c1 = arith.constant 1 : index
    %c0_23 = arith.constant 0 : index
    %c0_24 = arith.constant 0 : index
    %c0_25 = arith.constant 0 : index
    %30 = vector.load %arg10[%c1, %c0_23, %c0_24, %c0_25] : memref<3x4x32x8xf32, #tpu.memory_space<vmem>>, vector<1x1x32x8xf32>
    %31 = vector.shape_cast %30 : vector<1x1x32x8xf32> to vector<32x8xf32>
    %cst_26 = arith.constant dense<0.000000e+00> : vector<64x8xf32>
    %32 = tpu.matmul %21, %31, %cst_26 {dimension_numbers = #tpu.dot_dimension_numbers<[1], [0], [0], [1], [0, 0, 1, 1], [], []>} : vector<64x32xf32>, vector<32x8xf32>, vector<64x8xf32> -> vector<64x8xf32>
    %c1_27 = arith.constant 1 : index
    %c0_28 = arith.constant 0 : index
    %c0_29 = arith.constant 0 : index
    %c0_30 = arith.constant 0 : index
    %33 = vector.load %arg8[%c1_27, %c0_28, %c0_29, %c0_30] : memref<3x4x1x8xf32, #tpu.memory_space<vmem>>, vector<1x1x1x8xf32>
    %34 = vector.shape_cast %33 : vector<1x1x1x8xf32> to vector<1x8xf32>
    %35 = vector.broadcast %34 : vector<1x8xf32> to vector<64x8xf32>
    %36 = arith.addf %32, %35 : vector<64x8xf32>
    %c2 = arith.constant 2 : index
    %c0_31 = arith.constant 0 : index
    %c0_32 = arith.constant 0 : index
    %c0_33 = arith.constant 0 : index
    %37 = vector.load %arg10[%c2, %c0_31, %c0_32, %c0_33] : memref<3x4x32x8xf32, #tpu.memory_space<vmem>>, vector<1x1x32x8xf32>
    %38 = vector.shape_cast %37 : vector<1x1x32x8xf32> to vector<32x8xf32>
    %cst_34 = arith.constant dense<0.000000e+00> : vector<64x8xf32>
    %39 = tpu.matmul %21, %38, %cst_34 {dimension_numbers = #tpu.dot_dimension_numbers<[1], [0], [0], [1], [0, 0, 1, 1], [], []>} : vector<64x32xf32>, vector<32x8xf32>, vector<64x8xf32> -> vector<64x8xf32>
    %c2_35 = arith.constant 2 : index
    %c0_36 = arith.constant 0 : index
    %c0_37 = arith.constant 0 : index
    %c0_38 = arith.constant 0 : index
    %40 = vector.load %arg8[%c2_35, %c0_36, %c0_37, %c0_38] : memref<3x4x1x8xf32, #tpu.memory_space<vmem>>, vector<1x1x1x8xf32>
    %41 = vector.shape_cast %40 : vector<1x1x1x8xf32> to vector<1x8xf32>
    %42 = vector.broadcast %41 : vector<1x8xf32> to vector<64x8xf32>
    %43 = arith.addf %39, %42 : vector<64x8xf32>
    %cst_39 = arith.constant dense<0.000000e+00> : vector<64x64xf32>
    %44 = tpu.matmul %29, %36, %cst_39 {dimension_numbers = #tpu.dot_dimension_numbers<[1], [1], [0], [0], [0, 0, 1, 0], [], []>} : vector<64x8xf32>, vector<64x8xf32>, vector<64x64xf32> -> vector<64x64xf32>
    %45 = arith.addf %44, %22 : vector<64x64xf32>
    %cst_40 = arith.constant dense<0xFF800000> : vector<64xf32>
    %46 = vector.multi_reduction <maximumf>, %45, %cst_40 [1] : vector<64x64xf32> to vector<64xf32>
    %47 = vector.shape_cast %46 : vector<64xf32> to vector<64x1xf32>
    %48 = vector.broadcast %47 : vector<64x1xf32> to vector<64x64xf32>
    %49 = arith.subf %45, %48 : vector<64x64xf32>
    %50 = math.exp %49 : vector<64x64xf32>
    %cst_41 = arith.constant dense<0.000000e+00> : vector<64xf32>
    %51 = vector.multi_reduction <add>, %50, %cst_41 [1] : vector<64x64xf32> to vector<64xf32>
    %52 = vector.shape_cast %51 : vector<64xf32> to vector<64x1xf32>
    %53 = tpu.reciprocal %52 {approx = true} : vector<64x1xf32> -> vector<64x1xf32>
    %54 = vector.broadcast %53 : vector<64x1xf32> to vector<64x64xf32>
    %55 = arith.mulf %50, %54 : vector<64x64xf32>
    %cst_42 = arith.constant dense<0.000000e+00> : vector<64x8xf32>
    %56 = tpu.matmul %55, %43, %cst_42 {dimension_numbers = #tpu.dot_dimension_numbers<[1], [0], [0], [1], [0, 0, 1, 1], [], []>} : vector<64x64xf32>, vector<64x8xf32>, vector<64x8xf32> -> vector<64x8xf32>
    %c0_43 = arith.constant 0 : index
    %c0_44 = arith.constant 0 : index
    %c0_45 = arith.constant 0 : index
    %57 = vector.load %arg11[%c0_43, %c0_44, %c0_45] : memref<4x8x32xf32, #tpu.memory_space<vmem>>, vector<1x8x32xf32>
    %58 = vector.shape_cast %57 : vector<1x8x32xf32> to vector<8x32xf32>
    %cst_46 = arith.constant dense<0.000000e+00> : vector<64x32xf32>
    %59 = tpu.matmul %56, %58, %cst_46 {dimension_numbers = #tpu.dot_dimension_numbers<[1], [0], [0], [1], [0, 0, 1, 1], [], []>} : vector<64x8xf32>, vector<8x32xf32>, vector<64x32xf32> -> vector<64x32xf32>
    %c0_47 = arith.constant 0 : index
    %c1_48 = arith.constant 1 : index
    %c0_49 = arith.constant 0 : index
    %c0_50 = arith.constant 0 : index
    %60 = vector.load %arg10[%c0_47, %c1_48, %c0_49, %c0_50] : memref<3x4x32x8xf32, #tpu.memory_space<vmem>>, vector<1x1x32x8xf32>
    %61 = vector.shape_cast %60 : vector<1x1x32x8xf32> to vector<32x8xf32>
    %cst_51 = arith.constant dense<0.000000e+00> : vector<64x8xf32>
    %62 = tpu.matmul %21, %61, %cst_51 {dimension_numbers = #tpu.dot_dimension_numbers<[1], [0], [0], [1], [0, 0, 1, 1], [], []>} : vector<64x32xf32>, vector<32x8xf32>, vector<64x8xf32> -> vector<64x8xf32>
    %c0_52 = arith.constant 0 : index
    %c1_53 = arith.constant 1 : index
    %c0_54 = arith.constant 0 : index
    %c0_55 = arith.constant 0 : index
    %63 = vector.load %arg8[%c0_52, %c1_53, %c0_54, %c0_55] : memref<3x4x1x8xf32, #tpu.memory_space<vmem>>, vector<1x1x1x8xf32>
    %64 = vector.shape_cast %63 : vector<1x1x1x8xf32> to vector<1x8xf32>
    %65 = vector.broadcast %64 : vector<1x8xf32> to vector<64x8xf32>
    %66 = arith.addf %62, %65 : vector<64x8xf32>
    %c1_56 = arith.constant 1 : index
    %c1_57 = arith.constant 1 : index
    %c0_58 = arith.constant 0 : index
    %c0_59 = arith.constant 0 : index
    %67 = vector.load %arg10[%c1_56, %c1_57, %c0_58, %c0_59] : memref<3x4x32x8xf32, #tpu.memory_space<vmem>>, vector<1x1x32x8xf32>
    %68 = vector.shape_cast %67 : vector<1x1x32x8xf32> to vector<32x8xf32>
    %cst_60 = arith.constant dense<0.000000e+00> : vector<64x8xf32>
    %69 = tpu.matmul %21, %68, %cst_60 {dimension_numbers = #tpu.dot_dimension_numbers<[1], [0], [0], [1], [0, 0, 1, 1], [], []>} : vector<64x32xf32>, vector<32x8xf32>, vector<64x8xf32> -> vector<64x8xf32>
    %c1_61 = arith.constant 1 : index
    %c1_62 = arith.constant 1 : index
    %c0_63 = arith.constant 0 : index
    %c0_64 = arith.constant 0 : index
    %70 = vector.load %arg8[%c1_61, %c1_62, %c0_63, %c0_64] : memref<3x4x1x8xf32, #tpu.memory_space<vmem>>, vector<1x1x1x8xf32>
    %71 = vector.shape_cast %70 : vector<1x1x1x8xf32> to vector<1x8xf32>
    %72 = vector.broadcast %71 : vector<1x8xf32> to vector<64x8xf32>
    %73 = arith.addf %69, %72 : vector<64x8xf32>
    %c2_65 = arith.constant 2 : index
    %c1_66 = arith.constant 1 : index
    %c0_67 = arith.constant 0 : index
    %c0_68 = arith.constant 0 : index
    %74 = vector.load %arg10[%c2_65, %c1_66, %c0_67, %c0_68] : memref<3x4x32x8xf32, #tpu.memory_space<vmem>>, vector<1x1x32x8xf32>
    %75 = vector.shape_cast %74 : vector<1x1x32x8xf32> to vector<32x8xf32>
    %cst_69 = arith.constant dense<0.000000e+00> : vector<64x8xf32>
    %76 = tpu.matmul %21, %75, %cst_69 {dimension_numbers = #tpu.dot_dimension_numbers<[1], [0], [0], [1], [0, 0, 1, 1], [], []>} : vector<64x32xf32>, vector<32x8xf32>, vector<64x8xf32> -> vector<64x8xf32>
    %c2_70 = arith.constant 2 : index
    %c1_71 = arith.constant 1 : index
    %c0_72 = arith.constant 0 : index
    %c0_73 = arith.constant 0 : index
    %77 = vector.load %arg8[%c2_70, %c1_71, %c0_72, %c0_73] : memref<3x4x1x8xf32, #tpu.memory_space<vmem>>, vector<1x1x1x8xf32>
    %78 = vector.shape_cast %77 : vector<1x1x1x8xf32> to vector<1x8xf32>
    %79 = vector.broadcast %78 : vector<1x8xf32> to vector<64x8xf32>
    %80 = arith.addf %76, %79 : vector<64x8xf32>
    %cst_74 = arith.constant dense<0.000000e+00> : vector<64x64xf32>
    %81 = tpu.matmul %66, %73, %cst_74 {dimension_numbers = #tpu.dot_dimension_numbers<[1], [1], [0], [0], [0, 0, 1, 0], [], []>} : vector<64x8xf32>, vector<64x8xf32>, vector<64x64xf32> -> vector<64x64xf32>
    %82 = arith.addf %81, %22 : vector<64x64xf32>
    %cst_75 = arith.constant dense<0xFF800000> : vector<64xf32>
    %83 = vector.multi_reduction <maximumf>, %82, %cst_75 [1] : vector<64x64xf32> to vector<64xf32>
    %84 = vector.shape_cast %83 : vector<64xf32> to vector<64x1xf32>
    %85 = vector.broadcast %84 : vector<64x1xf32> to vector<64x64xf32>
    %86 = arith.subf %82, %85 : vector<64x64xf32>
    %87 = math.exp %86 : vector<64x64xf32>
    %cst_76 = arith.constant dense<0.000000e+00> : vector<64xf32>
    %88 = vector.multi_reduction <add>, %87, %cst_76 [1] : vector<64x64xf32> to vector<64xf32>
    %89 = vector.shape_cast %88 : vector<64xf32> to vector<64x1xf32>
    %90 = tpu.reciprocal %89 {approx = true} : vector<64x1xf32> -> vector<64x1xf32>
    %91 = vector.broadcast %90 : vector<64x1xf32> to vector<64x64xf32>
    %92 = arith.mulf %87, %91 : vector<64x64xf32>
    %cst_77 = arith.constant dense<0.000000e+00> : vector<64x8xf32>
    %93 = tpu.matmul %92, %80, %cst_77 {dimension_numbers = #tpu.dot_dimension_numbers<[1], [0], [0], [1], [0, 0, 1, 1], [], []>} : vector<64x64xf32>, vector<64x8xf32>, vector<64x8xf32> -> vector<64x8xf32>
    %c1_78 = arith.constant 1 : index
    %c0_79 = arith.constant 0 : index
    %c0_80 = arith.constant 0 : index
    %94 = vector.load %arg11[%c1_78, %c0_79, %c0_80] : memref<4x8x32xf32, #tpu.memory_space<vmem>>, vector<1x8x32xf32>
    %95 = vector.shape_cast %94 : vector<1x8x32xf32> to vector<8x32xf32>
    %cst_81 = arith.constant dense<0.000000e+00> : vector<64x32xf32>
    %96 = tpu.matmul %93, %95, %cst_81 {dimension_numbers = #tpu.dot_dimension_numbers<[1], [0], [0], [1], [0, 0, 1, 1], [], []>} : vector<64x8xf32>, vector<8x32xf32>, vector<64x32xf32> -> vector<64x32xf32>
    %97 = arith.addf %59, %96 : vector<64x32xf32>
    %c0_82 = arith.constant 0 : index
    %c2_83 = arith.constant 2 : index
    %c0_84 = arith.constant 0 : index
    %c0_85 = arith.constant 0 : index
    %98 = vector.load %arg10[%c0_82, %c2_83, %c0_84, %c0_85] : memref<3x4x32x8xf32, #tpu.memory_space<vmem>>, vector<1x1x32x8xf32>
    %99 = vector.shape_cast %98 : vector<1x1x32x8xf32> to vector<32x8xf32>
    %cst_86 = arith.constant dense<0.000000e+00> : vector<64x8xf32>
    %100 = tpu.matmul %21, %99, %cst_86 {dimension_numbers = #tpu.dot_dimension_numbers<[1], [0], [0], [1], [0, 0, 1, 1], [], []>} : vector<64x32xf32>, vector<32x8xf32>, vector<64x8xf32> -> vector<64x8xf32>
    %c0_87 = arith.constant 0 : index
    %c2_88 = arith.constant 2 : index
    %c0_89 = arith.constant 0 : index
    %c0_90 = arith.constant 0 : index
    %101 = vector.load %arg8[%c0_87, %c2_88, %c0_89, %c0_90] : memref<3x4x1x8xf32, #tpu.memory_space<vmem>>, vector<1x1x1x8xf32>
    %102 = vector.shape_cast %101 : vector<1x1x1x8xf32> to vector<1x8xf32>
    %103 = vector.broadcast %102 : vector<1x8xf32> to vector<64x8xf32>
    %104 = arith.addf %100, %103 : vector<64x8xf32>
    %c1_91 = arith.constant 1 : index
    %c2_92 = arith.constant 2 : index
    %c0_93 = arith.constant 0 : index
    %c0_94 = arith.constant 0 : index
    %105 = vector.load %arg10[%c1_91, %c2_92, %c0_93, %c0_94] : memref<3x4x32x8xf32, #tpu.memory_space<vmem>>, vector<1x1x32x8xf32>
    %106 = vector.shape_cast %105 : vector<1x1x32x8xf32> to vector<32x8xf32>
    %cst_95 = arith.constant dense<0.000000e+00> : vector<64x8xf32>
    %107 = tpu.matmul %21, %106, %cst_95 {dimension_numbers = #tpu.dot_dimension_numbers<[1], [0], [0], [1], [0, 0, 1, 1], [], []>} : vector<64x32xf32>, vector<32x8xf32>, vector<64x8xf32> -> vector<64x8xf32>
    %c1_96 = arith.constant 1 : index
    %c2_97 = arith.constant 2 : index
    %c0_98 = arith.constant 0 : index
    %c0_99 = arith.constant 0 : index
    %108 = vector.load %arg8[%c1_96, %c2_97, %c0_98, %c0_99] : memref<3x4x1x8xf32, #tpu.memory_space<vmem>>, vector<1x1x1x8xf32>
    %109 = vector.shape_cast %108 : vector<1x1x1x8xf32> to vector<1x8xf32>
    %110 = vector.broadcast %109 : vector<1x8xf32> to vector<64x8xf32>
    %111 = arith.addf %107, %110 : vector<64x8xf32>
    %c2_100 = arith.constant 2 : index
    %c2_101 = arith.constant 2 : index
    %c0_102 = arith.constant 0 : index
    %c0_103 = arith.constant 0 : index
    %112 = vector.load %arg10[%c2_100, %c2_101, %c0_102, %c0_103] : memref<3x4x32x8xf32, #tpu.memory_space<vmem>>, vector<1x1x32x8xf32>
    %113 = vector.shape_cast %112 : vector<1x1x32x8xf32> to vector<32x8xf32>
    %cst_104 = arith.constant dense<0.000000e+00> : vector<64x8xf32>
    %114 = tpu.matmul %21, %113, %cst_104 {dimension_numbers = #tpu.dot_dimension_numbers<[1], [0], [0], [1], [0, 0, 1, 1], [], []>} : vector<64x32xf32>, vector<32x8xf32>, vector<64x8xf32> -> vector<64x8xf32>
    %c2_105 = arith.constant 2 : index
    %c2_106 = arith.constant 2 : index
    %c0_107 = arith.constant 0 : index
    %c0_108 = arith.constant 0 : index
    %115 = vector.load %arg8[%c2_105, %c2_106, %c0_107, %c0_108] : memref<3x4x1x8xf32, #tpu.memory_space<vmem>>, vector<1x1x1x8xf32>
    %116 = vector.shape_cast %115 : vector<1x1x1x8xf32> to vector<1x8xf32>
    %117 = vector.broadcast %116 : vector<1x8xf32> to vector<64x8xf32>
    %118 = arith.addf %114, %117 : vector<64x8xf32>
    %cst_109 = arith.constant dense<0.000000e+00> : vector<64x64xf32>
    %119 = tpu.matmul %104, %111, %cst_109 {dimension_numbers = #tpu.dot_dimension_numbers<[1], [1], [0], [0], [0, 0, 1, 0], [], []>} : vector<64x8xf32>, vector<64x8xf32>, vector<64x64xf32> -> vector<64x64xf32>
    %120 = arith.addf %119, %22 : vector<64x64xf32>
    %cst_110 = arith.constant dense<0xFF800000> : vector<64xf32>
    %121 = vector.multi_reduction <maximumf>, %120, %cst_110 [1] : vector<64x64xf32> to vector<64xf32>
    %122 = vector.shape_cast %121 : vector<64xf32> to vector<64x1xf32>
    %123 = vector.broadcast %122 : vector<64x1xf32> to vector<64x64xf32>
    %124 = arith.subf %120, %123 : vector<64x64xf32>
    %125 = math.exp %124 : vector<64x64xf32>
    %cst_111 = arith.constant dense<0.000000e+00> : vector<64xf32>
    %126 = vector.multi_reduction <add>, %125, %cst_111 [1] : vector<64x64xf32> to vector<64xf32>
    %127 = vector.shape_cast %126 : vector<64xf32> to vector<64x1xf32>
    %128 = tpu.reciprocal %127 {approx = true} : vector<64x1xf32> -> vector<64x1xf32>
    %129 = vector.broadcast %128 : vector<64x1xf32> to vector<64x64xf32>
    %130 = arith.mulf %125, %129 : vector<64x64xf32>
    %cst_112 = arith.constant dense<0.000000e+00> : vector<64x8xf32>
    %131 = tpu.matmul %130, %118, %cst_112 {dimension_numbers = #tpu.dot_dimension_numbers<[1], [0], [0], [1], [0, 0, 1, 1], [], []>} : vector<64x64xf32>, vector<64x8xf32>, vector<64x8xf32> -> vector<64x8xf32>
    %c2_113 = arith.constant 2 : index
    %c0_114 = arith.constant 0 : index
    %c0_115 = arith.constant 0 : index
    %132 = vector.load %arg11[%c2_113, %c0_114, %c0_115] : memref<4x8x32xf32, #tpu.memory_space<vmem>>, vector<1x8x32xf32>
    %133 = vector.shape_cast %132 : vector<1x8x32xf32> to vector<8x32xf32>
    %cst_116 = arith.constant dense<0.000000e+00> : vector<64x32xf32>
    %134 = tpu.matmul %131, %133, %cst_116 {dimension_numbers = #tpu.dot_dimension_numbers<[1], [0], [0], [1], [0, 0, 1, 1], [], []>} : vector<64x8xf32>, vector<8x32xf32>, vector<64x32xf32> -> vector<64x32xf32>
    %135 = arith.addf %97, %134 : vector<64x32xf32>
    %c0_117 = arith.constant 0 : index
    %c3 = arith.constant 3 : index
    %c0_118 = arith.constant 0 : index
    %c0_119 = arith.constant 0 : index
    %136 = vector.load %arg10[%c0_117, %c3, %c0_118, %c0_119] : memref<3x4x32x8xf32, #tpu.memory_space<vmem>>, vector<1x1x32x8xf32>
    %137 = vector.shape_cast %136 : vector<1x1x32x8xf32> to vector<32x8xf32>
    %cst_120 = arith.constant dense<0.000000e+00> : vector<64x8xf32>
    %138 = tpu.matmul %21, %137, %cst_120 {dimension_numbers = #tpu.dot_dimension_numbers<[1], [0], [0], [1], [0, 0, 1, 1], [], []>} : vector<64x32xf32>, vector<32x8xf32>, vector<64x8xf32> -> vector<64x8xf32>
    %c0_121 = arith.constant 0 : index
    %c3_122 = arith.constant 3 : index
    %c0_123 = arith.constant 0 : index
    %c0_124 = arith.constant 0 : index
    %139 = vector.load %arg8[%c0_121, %c3_122, %c0_123, %c0_124] : memref<3x4x1x8xf32, #tpu.memory_space<vmem>>, vector<1x1x1x8xf32>
    %140 = vector.shape_cast %139 : vector<1x1x1x8xf32> to vector<1x8xf32>
    %141 = vector.broadcast %140 : vector<1x8xf32> to vector<64x8xf32>
    %142 = arith.addf %138, %141 : vector<64x8xf32>
    %c1_125 = arith.constant 1 : index
    %c3_126 = arith.constant 3 : index
    %c0_127 = arith.constant 0 : index
    %c0_128 = arith.constant 0 : index
    %143 = vector.load %arg10[%c1_125, %c3_126, %c0_127, %c0_128] : memref<3x4x32x8xf32, #tpu.memory_space<vmem>>, vector<1x1x32x8xf32>
    %144 = vector.shape_cast %143 : vector<1x1x32x8xf32> to vector<32x8xf32>
    %cst_129 = arith.constant dense<0.000000e+00> : vector<64x8xf32>
    %145 = tpu.matmul %21, %144, %cst_129 {dimension_numbers = #tpu.dot_dimension_numbers<[1], [0], [0], [1], [0, 0, 1, 1], [], []>} : vector<64x32xf32>, vector<32x8xf32>, vector<64x8xf32> -> vector<64x8xf32>
    %c1_130 = arith.constant 1 : index
    %c3_131 = arith.constant 3 : index
    %c0_132 = arith.constant 0 : index
    %c0_133 = arith.constant 0 : index
    %146 = vector.load %arg8[%c1_130, %c3_131, %c0_132, %c0_133] : memref<3x4x1x8xf32, #tpu.memory_space<vmem>>, vector<1x1x1x8xf32>
    %147 = vector.shape_cast %146 : vector<1x1x1x8xf32> to vector<1x8xf32>
    %148 = vector.broadcast %147 : vector<1x8xf32> to vector<64x8xf32>
    %149 = arith.addf %145, %148 : vector<64x8xf32>
    %c2_134 = arith.constant 2 : index
    %c3_135 = arith.constant 3 : index
    %c0_136 = arith.constant 0 : index
    %c0_137 = arith.constant 0 : index
    %150 = vector.load %arg10[%c2_134, %c3_135, %c0_136, %c0_137] : memref<3x4x32x8xf32, #tpu.memory_space<vmem>>, vector<1x1x32x8xf32>
    %151 = vector.shape_cast %150 : vector<1x1x32x8xf32> to vector<32x8xf32>
    %cst_138 = arith.constant dense<0.000000e+00> : vector<64x8xf32>
    %152 = tpu.matmul %21, %151, %cst_138 {dimension_numbers = #tpu.dot_dimension_numbers<[1], [0], [0], [1], [0, 0, 1, 1], [], []>} : vector<64x32xf32>, vector<32x8xf32>, vector<64x8xf32> -> vector<64x8xf32>
    %c2_139 = arith.constant 2 : index
    %c3_140 = arith.constant 3 : index
    %c0_141 = arith.constant 0 : index
    %c0_142 = arith.constant 0 : index
    %153 = vector.load %arg8[%c2_139, %c3_140, %c0_141, %c0_142] : memref<3x4x1x8xf32, #tpu.memory_space<vmem>>, vector<1x1x1x8xf32>
    %154 = vector.shape_cast %153 : vector<1x1x1x8xf32> to vector<1x8xf32>
    %155 = vector.broadcast %154 : vector<1x8xf32> to vector<64x8xf32>
    %156 = arith.addf %152, %155 : vector<64x8xf32>
    %cst_143 = arith.constant dense<0.000000e+00> : vector<64x64xf32>
    %157 = tpu.matmul %142, %149, %cst_143 {dimension_numbers = #tpu.dot_dimension_numbers<[1], [1], [0], [0], [0, 0, 1, 0], [], []>} : vector<64x8xf32>, vector<64x8xf32>, vector<64x64xf32> -> vector<64x64xf32>
    %158 = arith.addf %157, %22 : vector<64x64xf32>
    %cst_144 = arith.constant dense<0xFF800000> : vector<64xf32>
    %159 = vector.multi_reduction <maximumf>, %158, %cst_144 [1] : vector<64x64xf32> to vector<64xf32>
    %160 = vector.shape_cast %159 : vector<64xf32> to vector<64x1xf32>
    %161 = vector.broadcast %160 : vector<64x1xf32> to vector<64x64xf32>
    %162 = arith.subf %158, %161 : vector<64x64xf32>
    %163 = math.exp %162 : vector<64x64xf32>
    %cst_145 = arith.constant dense<0.000000e+00> : vector<64xf32>
    %164 = vector.multi_reduction <add>, %163, %cst_145 [1] : vector<64x64xf32> to vector<64xf32>
    %165 = vector.shape_cast %164 : vector<64xf32> to vector<64x1xf32>
    %166 = tpu.reciprocal %165 {approx = true} : vector<64x1xf32> -> vector<64x1xf32>
    %167 = vector.broadcast %166 : vector<64x1xf32> to vector<64x64xf32>
    %168 = arith.mulf %163, %167 : vector<64x64xf32>
    %cst_146 = arith.constant dense<0.000000e+00> : vector<64x8xf32>
    %169 = tpu.matmul %168, %156, %cst_146 {dimension_numbers = #tpu.dot_dimension_numbers<[1], [0], [0], [1], [0, 0, 1, 1], [], []>} : vector<64x64xf32>, vector<64x8xf32>, vector<64x8xf32> -> vector<64x8xf32>
    %c3_147 = arith.constant 3 : index
    %c0_148 = arith.constant 0 : index
    %c0_149 = arith.constant 0 : index
    %170 = vector.load %arg11[%c3_147, %c0_148, %c0_149] : memref<4x8x32xf32, #tpu.memory_space<vmem>>, vector<1x8x32xf32>
    %171 = vector.shape_cast %170 : vector<1x8x32xf32> to vector<8x32xf32>
    %cst_150 = arith.constant dense<0.000000e+00> : vector<64x32xf32>
    %172 = tpu.matmul %169, %171, %cst_150 {dimension_numbers = #tpu.dot_dimension_numbers<[1], [0], [0], [1], [0, 0, 1, 1], [], []>} : vector<64x8xf32>, vector<8x32xf32>, vector<64x32xf32> -> vector<64x32xf32>
    %173 = arith.addf %135, %172 : vector<64x32xf32>
    %174 = vector.broadcast %2 : vector<1x32xf32> to vector<64x32xf32>
    %175 = arith.addf %173, %174 : vector<64x32xf32>
    %176 = arith.addf %21, %175 : vector<64x32xf32>
    %cst_151 = arith.constant dense<0.000000e+00> : vector<64xf32>
    %177 = vector.multi_reduction <add>, %176, %cst_151 [1] : vector<64x32xf32> to vector<64xf32>
    %178 = vector.shape_cast %177 : vector<64xf32> to vector<64x1xf32>
    %cst_152 = arith.constant 3.200000e+01 : f32
    %179 = vector.broadcast %cst_152 : f32 to vector<64x1xf32>
    %180 = arith.divf %178, %179 : vector<64x1xf32>
    %181 = vector.broadcast %180 : vector<64x1xf32> to vector<64x32xf32>
    %182 = arith.subf %176, %181 : vector<64x32xf32>
    %183 = arith.mulf %182, %182 : vector<64x32xf32>
    %cst_153 = arith.constant dense<0.000000e+00> : vector<64xf32>
    %184 = vector.multi_reduction <add>, %183, %cst_153 [1] : vector<64x32xf32> to vector<64xf32>
    %185 = vector.shape_cast %184 : vector<64xf32> to vector<64x1xf32>
    %cst_154 = arith.constant 3.200000e+01 : f32
    %186 = vector.broadcast %cst_154 : f32 to vector<64x1xf32>
    %187 = arith.divf %185, %186 : vector<64x1xf32>
    %cst_155 = arith.constant 9.99999974E-6 : f32
    %188 = vector.broadcast %cst_155 : f32 to vector<64x1xf32>
    %189 = arith.addf %187, %188 : vector<64x1xf32>
    %190 = math.rsqrt %189 : vector<64x1xf32>
    %191 = vector.broadcast %190 : vector<64x1xf32> to vector<64x32xf32>
    %192 = arith.mulf %182, %191 : vector<64x32xf32>
    %193 = vector.broadcast %3 : vector<1x32xf32> to vector<64x32xf32>
    %194 = arith.mulf %192, %193 : vector<64x32xf32>
    %195 = vector.broadcast %4 : vector<1x32xf32> to vector<64x32xf32>
    %196 = arith.addf %194, %195 : vector<64x32xf32>
    %197 = arith.truncf %196 : vector<64x32xf32> to vector<64x32xbf16>
    %c0_156 = arith.constant 0 : index
    %c0_157 = arith.constant 0 : index
    %198 = vector.load %arg12[%c0_156, %c0_157] : memref<32x2048xbf16, #tpu.memory_space<vmem>>, vector<32x2048xbf16>
    %cst_158 = arith.constant dense<0.000000e+00> : vector<64x2048xf32>
    %199 = tpu.matmul %197, %198, %cst_158 {dimension_numbers = #tpu.dot_dimension_numbers<[1], [0], [0], [1], [0, 0, 1, 1], [], []>} : vector<64x32xbf16>, vector<32x2048xbf16>, vector<64x2048xf32> -> vector<64x2048xf32>
    %c0_159 = arith.constant 0 : index
    %c0_160 = arith.constant 0 : index
    %200 = vector.load %arg13[%c0_159, %c0_160] : memref<1x2048xf32, #tpu.memory_space<vmem>>, vector<1x2048xf32>
    %201 = vector.broadcast %200 : vector<1x2048xf32> to vector<64x2048xf32>
    %202 = arith.addf %199, %201 : vector<64x2048xf32>
    %cst_161 = arith.constant 0.000000e+00 : f32
    %203 = vector.broadcast %cst_161 : f32 to vector<64x2048xf32>
    %204 = arith.maximumf %202, %203 : vector<64x2048xf32>
    %205 = arith.truncf %204 : vector<64x2048xf32> to vector<64x2048xbf16>
    %c0_162 = arith.constant 0 : index
    %c0_163 = arith.constant 0 : index
    %206 = vector.load %arg14[%c0_162, %c0_163] : memref<2048x32xbf16, #tpu.memory_space<vmem>>, vector<2048x32xbf16>
    %cst_164 = arith.constant dense<0.000000e+00> : vector<64x32xf32>
    %207 = tpu.matmul %205, %206, %cst_164 {dimension_numbers = #tpu.dot_dimension_numbers<[1], [0], [0], [1], [0, 0, 1, 1], [], []>} : vector<64x2048xbf16>, vector<2048x32xbf16>, vector<64x32xf32> -> vector<64x32xf32>
    %208 = vector.broadcast %5 : vector<1x32xf32> to vector<64x32xf32>
    %209 = arith.addf %207, %208 : vector<64x32xf32>
    %210 = arith.addf %196, %209 : vector<64x32xf32>
    %cst_165 = arith.constant dense<0.000000e+00> : vector<64xf32>
    %211 = vector.multi_reduction <add>, %210, %cst_165 [1] : vector<64x32xf32> to vector<64xf32>
    %212 = vector.shape_cast %211 : vector<64xf32> to vector<64x1xf32>
    %cst_166 = arith.constant 3.200000e+01 : f32
    %213 = vector.broadcast %cst_166 : f32 to vector<64x1xf32>
    %214 = arith.divf %212, %213 : vector<64x1xf32>
    %215 = vector.broadcast %214 : vector<64x1xf32> to vector<64x32xf32>
    %216 = arith.subf %210, %215 : vector<64x32xf32>
    %217 = arith.mulf %216, %216 : vector<64x32xf32>
    %cst_167 = arith.constant dense<0.000000e+00> : vector<64xf32>
    %218 = vector.multi_reduction <add>, %217, %cst_167 [1] : vector<64x32xf32> to vector<64xf32>
    %219 = vector.shape_cast %218 : vector<64xf32> to vector<64x1xf32>
    %cst_168 = arith.constant 3.200000e+01 : f32
    %220 = vector.broadcast %cst_168 : f32 to vector<64x1xf32>
    %221 = arith.divf %219, %220 : vector<64x1xf32>
    %cst_169 = arith.constant 9.99999974E-6 : f32
    %222 = vector.broadcast %cst_169 : f32 to vector<64x1xf32>
    %223 = arith.addf %221, %222 : vector<64x1xf32>
    %224 = math.rsqrt %223 : vector<64x1xf32>
    %225 = vector.broadcast %224 : vector<64x1xf32> to vector<64x32xf32>
    %226 = arith.mulf %216, %225 : vector<64x32xf32>
    %227 = vector.broadcast %6 : vector<1x32xf32> to vector<64x32xf32>
    %228 = arith.mulf %226, %227 : vector<64x32xf32>
    %229 = vector.broadcast %7 : vector<1x32xf32> to vector<64x32xf32>
    %230 = arith.addf %228, %229 : vector<64x32xf32>
    %c0_170 = arith.constant 0 : index
    %c0_171 = arith.constant 0 : index
    %231 = vector.load %arg6[%c0_170, %c0_171] : memref<8x64xf32, #tpu.memory_space<vmem>>, vector<8x64xf32>
    %cst_172 = arith.constant dense<0.000000e+00> : vector<8x32xf32>
    %232 = tpu.matmul %231, %230, %cst_172 {dimension_numbers = #tpu.dot_dimension_numbers<[1], [0], [0], [1], [0, 0, 1, 1], [], []>} : vector<8x64xf32>, vector<64x32xf32>, vector<8x32xf32> -> vector<8x32xf32>
    %c0_173 = arith.constant 0 : index
    %c0_174 = arith.constant 0 : index
    %233 = vector.load %arg15[%c0_173, %c0_174] : memref<32x64xf32, #tpu.memory_space<vmem>>, vector<32x64xf32>
    %cst_175 = arith.constant dense<0.000000e+00> : vector<8x64xf32>
    %234 = tpu.matmul %232, %233, %cst_175 {dimension_numbers = #tpu.dot_dimension_numbers<[1], [0], [0], [1], [0, 0, 1, 1], [], []>} : vector<8x32xf32>, vector<32x64xf32>, vector<8x64xf32> -> vector<8x64xf32>
    %235 = vector.broadcast %8 : vector<1x64xf32> to vector<8x64xf32>
    %236 = arith.addf %234, %235 : vector<8x64xf32>
    %cst_176 = arith.constant 0.000000e+00 : f32
    %237 = vector.broadcast %cst_176 : f32 to vector<8x64xf32>
    %238 = arith.maximumf %236, %237 : vector<8x64xf32>
    %c0_177 = arith.constant 0 : index
    %c0_178 = arith.constant 0 : index
    %239 = vector.load %arg16[%c0_177, %c0_178] : memref<64x32xf32, #tpu.memory_space<vmem>>, vector<64x32xf32>
    %cst_179 = arith.constant dense<0.000000e+00> : vector<8x32xf32>
    %240 = tpu.matmul %238, %239, %cst_179 {dimension_numbers = #tpu.dot_dimension_numbers<[1], [0], [0], [1], [0, 0, 1, 1], [], []>} : vector<8x64xf32>, vector<64x32xf32>, vector<8x32xf32> -> vector<8x32xf32>
    %241 = vector.broadcast %9 : vector<1x32xf32> to vector<8x32xf32>
    %242 = arith.addf %240, %241 : vector<8x32xf32>
    %243 = arith.mulf %242, %242 : vector<8x32xf32>
    %cst_180 = arith.constant dense<0.000000e+00> : vector<8xf32>
    %244 = vector.multi_reduction <add>, %243, %cst_180 [1] : vector<8x32xf32> to vector<8xf32>
    %245 = vector.shape_cast %244 : vector<8xf32> to vector<8x1xf32>
    %cst_181 = arith.constant 1.000000e-24 : f32
    %246 = vector.broadcast %cst_181 : f32 to vector<8x1xf32>
    %247 = arith.maximumf %245, %246 : vector<8x1xf32>
    %248 = math.rsqrt %247 : vector<8x1xf32>
    %249 = vector.broadcast %248 : vector<8x1xf32> to vector<8x32xf32>
    %250 = arith.mulf %242, %249 : vector<8x32xf32>
    %c0_182 = arith.constant 0 : index
    %c0_183 = arith.constant 0 : index
    %251 = vector.load %arg17[%c0_182, %c0_183] : memref<8x32xf32, #tpu.memory_space<vmem>>, vector<8x32xf32>
    tpu.vector_store %arg17[%c0_182, %c0_183], %250 {strides = array<i32>} : memref<8x32xf32, #tpu.memory_space<vmem>>, vector<8x32xf32>,
    return
  }
  func.func @transform_0(%arg0: i32) -> (i32, i32) {
    %c0_i32 = arith.constant 0 : i32
    %c0_i32_0 = arith.constant 0 : i32
    return %arg0, %c0_i32 : i32, i32
  }
  func.func @transform_1(%arg0: i32) -> (i32, i32) {
    %c0_i32 = arith.constant 0 : i32
    %c0_i32_0 = arith.constant 0 : i32
    %c0_i32_1 = arith.constant 0 : i32
    return %c0_i32, %c0_i32_0 : i32, i32
  }
  func.func @transform_2(%arg0: i32) -> (i32, i32) {
    %c0_i32 = arith.constant 0 : i32
    %c0_i32_0 = arith.constant 0 : i32
    %c0_i32_1 = arith.constant 0 : i32
    return %c0_i32, %c0_i32_0 : i32, i32
  }
  func.func @transform_3(%arg0: i32) -> (i32, i32) {
    %c0_i32 = arith.constant 0 : i32
    %c0_i32_0 = arith.constant 0 : i32
    %c0_i32_1 = arith.constant 0 : i32
    return %c0_i32, %c0_i32_0 : i32, i32
  }
  func.func @transform_4(%arg0: i32) -> (i32, i32) {
    %c0_i32 = arith.constant 0 : i32
    %c0_i32_0 = arith.constant 0 : i32
    %c0_i32_1 = arith.constant 0 : i32
    return %c0_i32, %c0_i32_0 : i32, i32
  }
  func.func @transform_5(%arg0: i32) -> (i32, i32) {
    %c0_i32 = arith.constant 0 : i32
    %c0_i32_0 = arith.constant 0 : i32
    %c0_i32_1 = arith.constant 0 : i32
    return %c0_i32, %c0_i32_0 : i32, i32
  }
  func.func @transform_6(%arg0: i32) -> (i32, i32) {
    %c0_i32 = arith.constant 0 : i32
    %c0_i32_0 = arith.constant 0 : i32
    %c0_i32_1 = arith.constant 0 : i32
    return %c0_i32, %c0_i32_0 : i32, i32
  }
  func.func @transform_7(%arg0: i32) -> (i32, i32, i32, i32) {
    %c0_i32 = arith.constant 0 : i32
    %c0_i32_0 = arith.constant 0 : i32
    %c0_i32_1 = arith.constant 0 : i32
    %c0_i32_2 = arith.constant 0 : i32
    %c0_i32_3 = arith.constant 0 : i32
    return %c0_i32, %c0_i32_0, %c0_i32_1, %c0_i32_2 : i32, i32, i32, i32
  }
  func.func @transform_8(%arg0: i32) -> (i32, i32) {
    %c0_i32 = arith.constant 0 : i32
    %c0_i32_0 = arith.constant 0 : i32
    %c0_i32_1 = arith.constant 0 : i32
    return %c0_i32, %c0_i32_0 : i32, i32
  }
  func.func @transform_9(%arg0: i32) -> (i32, i32, i32, i32) {
    %c0_i32 = arith.constant 0 : i32
    %c0_i32_0 = arith.constant 0 : i32
    %c0_i32_1 = arith.constant 0 : i32
    %c0_i32_2 = arith.constant 0 : i32
    %c0_i32_3 = arith.constant 0 : i32
    return %c0_i32, %c0_i32_0, %c0_i32_1, %c0_i32_2 : i32, i32, i32, i32
  }
  func.func @transform_10(%arg0: i32) -> (i32, i32, i32) {
    %c0_i32 = arith.constant 0 : i32
    %c0_i32_0 = arith.constant 0 : i32
    %c0_i32_1 = arith.constant 0 : i32
    %c0_i32_2 = arith.constant 0 : i32
    return %c0_i32, %c0_i32_0, %c0_i32_1 : i32, i32, i32
  }
  func.func @transform_11(%arg0: i32) -> (i32, i32) {
    %c0_i32 = arith.constant 0 : i32
    %c0_i32_0 = arith.constant 0 : i32
    %c0_i32_1 = arith.constant 0 : i32
    return %c0_i32, %c0_i32_0 : i32, i32
  }
  func.func @transform_12(%arg0: i32) -> (i32, i32) {
    %c0_i32 = arith.constant 0 : i32
    %c0_i32_0 = arith.constant 0 : i32
    %c0_i32_1 = arith.constant 0 : i32
    return %c0_i32, %c0_i32_0 : i32, i32
  }
  func.func @transform_13(%arg0: i32) -> (i32, i32) {
    %c0_i32 = arith.constant 0 : i32
    %c0_i32_0 = arith.constant 0 : i32
    %c0_i32_1 = arith.constant 0 : i32
    return %c0_i32, %c0_i32_0 : i32, i32
  }
  func.func @transform_14(%arg0: i32) -> (i32, i32) {
    %c0_i32 = arith.constant 0 : i32
    %c0_i32_0 = arith.constant 0 : i32
    %c0_i32_1 = arith.constant 0 : i32
    return %c0_i32, %c0_i32_0 : i32, i32
  }
  func.func @transform_15(%arg0: i32) -> (i32, i32) {
    %c0_i32 = arith.constant 0 : i32
    %c0_i32_0 = arith.constant 0 : i32
    %c0_i32_1 = arith.constant 0 : i32
    return %c0_i32, %c0_i32_0 : i32, i32
  }
  func.func @transform_16(%arg0: i32) -> (i32, i32) {
    %c0_i32 = arith.constant 0 : i32
    %c0_i32_0 = arith.constant 0 : i32
    return %arg0, %c0_i32 : i32, i32
  }
}

</mosaic_0001>

<bundles_post_ra>
// kernel: representation_general.1
= control target key start
LH: loop header
LB: loop body
LE: loop exit
PB: predicated region body
PF: predicated region fallthrough
CT: control target
= control target key end

     0   :  { %s12489_s0 = inlined_call_operand.vmem [shape: f32[128,16], index: 0, kind: input, shape index: {}]   ;;  %s12490_s1 = inlined_call_operand.vmem [shape: f32[64,32], index: 1, kind: input, shape index: {}]   ;;  %s12491_s2 = inlined_call_operand.vmem [shape: f32[64,32], index: 2, kind: input, shape index: {}]   ;;  %s12492_s3 = inlined_call_operand.vmem [shape: f32[64,64], index: 3, kind: input, shape index: {}]   ;;  %s12493_s4 = inlined_call_operand.vmem [shape: f32[32,32], index: 4, kind: input, shape index: {}]   ;;  %s12494_s5 = inlined_call_operand.vmem [shape: f32[8,64], index: 5, kind: input, shape index: {}]   ;;  %s12495_s6 = inlined_call_operand.vmem [shape: f32[9,128], index: 6, kind: input, shape index: {}]   ;;  %s12496_s7 = inlined_call_operand.vmem [shape: f32[3,4,1,8], index: 7, kind: input, shape index: {}]   ;;  %s12497_s8 = inlined_call_operand.vmem [shape: f32[16,32], index: 8, kind: input, shape index: {}]   ;;  %s12498_s9 = inlined_call_operand.vmem [shape: f32[3,4,32,8], index: 9, kind: input, shape index: {}]   ;;  %s12499_s10 = inlined_call_operand.vmem [shape: f32[4,8,32], index: 10, kind: input, shape index: {}]   ;;  %s12500_s11 = inlined_call_operand.vmem [shape: bf16[32,2048], index: 11, kind: input, shape index: {}]   ;;  %s12501_s12 = inlined_call_operand.vmem [shape: f32[1,2048], index: 12, kind: input, shape index: {}]   ;;  %s12502_s13 = inlined_call_operand.vmem [shape: bf16[2048,32], index: 13, kind: input, shape index: {}]   ;;  %s12503_s14 = inlined_call_operand.vmem [shape: f32[32,64], index: 14, kind: input, shape index: {}]   ;;  %s12504_s15 = inlined_call_operand.vmem [shape: f32[64,32], index: 15, kind: input, shape index: {}]   ;;  %s12505_s16 = inlined_call_operand.hbm [shape: f32[16,32], index: 16, kind: output, shape index: {}]  }
   0x1   :  { %12509 = sst [smem:[#allocation8_spill]] %s12489_s0 }
   0x2   :  { %12510 = sst [smem:[#allocation9_spill]] %s12490_s1 }
   0x3   :  { %12511 = sst [smem:[#allocation10_spill]] %s12497_s8 }
   0x4   :  { %21 = vsyncpa [#allocation3], 0 }
   0x5   :  { %23 = vsyncpa [#allocation3 + $0x1], 0  ;;  %s10147_s21 = smov 0   ;;  %s10149_s22 = smov 0  }
   0x6   :  { %s10151_s23 = smov 0   ;;  %s10153_s24 = smov 0  }
   0x7 LB: > { %12512 = sst [smem:[#allocation5_spill]] %s10051_s23  ;;  %s10168_s25 = sadd.s32 4294967295, %s10055_s24   ;;  %s10055_s24 = sphi %s10153_s24, %s12522_s24   ;;  %s10051_s23 = sphi %s10151_s23, %s12524_s23   ;;  %s10047_s22 = sphi %s10149_s22, %s12526_s22   ;;  %s10043_s21 = sphi %s10147_s21, %s12525_s21  }
   0x8   : > { %s7533_s26 = sadd.s32 4294967294, %s10055_s24   ;;  %s10172_s27 = sadd.s32 1, %s10055_s24  }
   0x9   : > { %12513 = sst [smem:[#allocation6_spill]] %s10172_s27  ;;  %s377_s28 = sadd.s32 1, %s10051_s23 }
   0xa   : > { %s374_s29 = ssub.s32 %s10055_s24, %s10172_s27  ;;  %p387_p0 = scmp.ne.s32.totalorder %s10051_s23, %s10047_s22 }
   0xb   : > { %p375_p1 = scmp.eq.s32.totalorder %s374_s29, 0  ;;  %p388_p2 = scmp.eq.s32.totalorder %s10168_s25, 1 }
   0xc   : > { %p393_p3 = scmp.ne.s32.totalorder %s10047_s22, %s10043_s21  ;;  %p394_p4 = scmp.eq.s32.totalorder %s7533_s26, 1 }
   0xd   : > { %s10183_s30 = scalar_select %p375_p1, %s10051_s23, %s377_s28  }
   0xe   : > { %p10185_p5 = por %p388_p2, %p387_p0  ;;  %p10189_p6 = por %p394_p4, %p393_p3 }
   0xf   : > { %12514 = sst [smem:[#allocation7_spill]] %s10183_s30  ;;  %p7536_p7 = scmp.ge.s32.totalorder %s10055_s24, 1 }
  0x10   : > { %p466_p8 = scmp.lt.s32.totalorder %s10055_s24, 3 }
  0x12   : > { %p467_p9 = pnand %p7536_p7, %p466_p8 }
  0x13   : > { %s12517_s8 = sld [smem:[#allocation10_spill]] (!%p467_p9)  ;;  %s7538_s28 = sshll.u32 (!%p467_p9), %s10168_s25, 3  ;;  %v669_v2 = vld [vmem:[%s12493_s4] sm:$0xff] (!%p467_p9)  ;;  %v670_v4 = vld [vmem:[%s12493_s4 + $0x8] sm:$0xff] (!%p467_p9)  ;;  %vm539_vm0 = vcmask (!%p467_p9), 130048   ;;  %v671_v14 = vld [vmem:[%s12493_s4 + $0x10] sm:$0xff] (!%p467_p9)  ;;  %v535_v23 = vlaneseq (!%p467_p9) }
  0x14   : > { %470 = sbr.rel (%p467_p9) target bundleno = 5944 (0x1738), region = 84  ;;  %p517_p10 = scmp.lt.s32.totalorder (!%p467_p9), %s7538_s28, 15  ;;  %v9332_v5 = vpack.c.bf16 (!%p467_p9), %v670_v4, %v669_v2  ;;  %v672_v15 = vld [vmem:[%s12493_s4 + $0x18] sm:$0xff] (!%p467_p9)  ;;  %v7565_v17 = vld [vmem:[%s12498_s9 + $0x80] sm:$0xff] (!%p467_p9)  ;;  %v7566_v18 = vld [vmem:[%s12498_s9 + $0x88] sm:$0xff] (!%p467_p9)  ;;  %vm673_vm1 = vcmask (!%p467_p9), 261120  }
  0x15   : > { %s12518_s26 = sld [smem:[#allocation8_spill]] (!%p467_p9)  ;;  %v9336_v16 = vpack.c.bf16 (!%p467_p9), %v672_v15, %v671_v14  ;;  %v851_v19 = vld [vmem:[%s12498_s9] sm:$0xff] (!%p467_p9)  ;;  %v9348_v20 = vpack.c.bf16 (!%p467_p9), %v7566_v18, %v7565_v17  ;;  %v852_v21 = vld [vmem:[%s12498_s9 + $0x8] sm:$0xff] (!%p467_p9)  ;;  %v10237_v24 = vshrl.u32 (!%p467_p9), %v535_v23, 7  ;;  %v853_v44 = vld [vmem:[%s12498_s9 + $0x10] sm:$0xff] (!%p467_p9)  ;;  %s12519_s1 = sld [smem:[#allocation9_spill]] (!%p467_p9) }
  0x16   : > { %9333 = vmatprep.subr.bf16.mxu1 (!%p467_p9), %v9332_v5  ;;  %v9340_v22 = vpack.c.bf16 (!%p467_p9), %v852_v21, %v851_v19  ;;  %v523_v26 = vld [vmem:[%s12495_s6] sm:$0xff] (!%p467_p9)  ;;  %v854_v45 = vld [vmem:[%s12498_s9 + $0x18] sm:$0xff] (!%p467_p9)  ;;  %v7567_v47 = vld [vmem:[%s12498_s9 + $0x90] sm:$0xff] (!%p467_p9)  ;;  %vm1227_vm2 = vcmask (!%p467_p9), 64512   ;;  %vm1381_vm4 = vcmask (!%p467_p9), 523264   ;;  %vm10059_vm5 = vmmov (!%p467_p9), 0  }
  0x17   : > { %9335 = vmatpush3.bf16.msra.mxu1 (!%p467_p9), %v9332_v5  ;;  %v10240_v25 = vsub.s32 (!%p467_p9), 0, %v10237_v24  ;;  %v9344_v46 = vpack.c.bf16 (!%p467_p9), %v854_v45, %v853_v44  ;;  %v7568_v48 = vld [vmem:[%s12498_s9 + $0x98] sm:$0xff] (!%p467_p9)  ;;  %v7579_v50 = vld [vmem:[%s12498_s9 + $0x100] sm:$0xff] (!%p467_p9)  ;;  %v7580_v51 = vld [vmem:[%s12498_s9 + $0x108] sm:$0xff] (!%p467_p9)  ;;  %s513_s29 = sand.u32 (!%p467_p9), 1, %s10047_s22  }
  0x18   : > { %9337 = vmatprep.subr.bf16.mxu1 (!%p467_p9), %v9336_v16  ;;  %v9352_v49 = vpack.c.bf16 (!%p467_p9), %v7568_v48, %v7567_v47  ;;  %v9356_v52 = vpack.c.bf16 (!%p467_p9), %v7580_v51, %v7579_v50  ;;  %v820_v54 = vld [vmem:[%s12491_s2 + $0x8] sm:$0xff] (!%p467_p9)  ;;  %v819_v56 = vld [vmem:[%s12491_s2] sm:$0xff] (!%p467_p9)  ;;  %v7582_v2 = vld [vmem:[%s12498_s9 + $0x118] sm:$0xff] (!%p467_p9)  ;;  %s7461_s30 = scalar_lea.sflag (!%p467_p9), [#allocation3], %s513_s29 }
  0x19   : > { %v533_v0 = vld [vmem:[%s12517_s8] sm:$0xff] (!%p467_p9)  ;;  %v534_v1 = vld [vmem:[%s12517_s8 + $0x8] sm:$0xff] (!%p467_p9)  ;;  %v538_v27 = vrot.slane (!%p467_p9), %v523_v26, %v10240_v25  ;;  %v821_v5 = vld [vmem:[%s12491_s2 + $0x10] sm:$0xff] (!%p467_p9) }
  0x1a   : > { %v9328_v3 = vpack.c.bf16 (!%p467_p9), %v534_v1, %v533_v0  ;;  %v822_v0 = vld [vmem:[%s12491_s2 + $0x18] sm:$0xff] (!%p467_p9)  ;;  %v7581_v1 = vld [vmem:[%s12498_s9 + $0x110] sm:$0xff] (!%p467_p9)  ;;  %v824_v15 = vld [vmem:[%s12491_s2 + $0x28] sm:$0xff] (!%p467_p9) }
  0x1b   : > { %s12528_s28 = smov (!%p517_p10, %s7538_s28), 15  ;;  %9339 = vmatpush3.bf16.msra.mxu1 %v9336_v16  ;;  %v804_v53 = vld [vmem:[%s12519_s1 + $0x8] sm:$0xff]  ;;  %v803_v55 = vld [vmem:[%s12519_s1] sm:$0xff]  ;;  %v806_v59 = vld [vmem:[%s12519_s1 + $0x18] sm:$0xff] }
  0x1c   : > { %9329 = vmatprep.subr.bf16.mxu0 %v9328_v3  ;;  %s7539_s18 = sshll.u32 %s12528_s28, 3  ;;  %9349 = vmatprep.subr.bf16.mxu1 %v9348_v20  ;;  %v807_v16 = vld [vmem:[%s12519_s1 + $0x20] sm:$0xff]  ;;  %vm10419_vm3 = vmpackc.low %vm1227_vm2, %vm1227_vm2 }
  0x1d   : > { %9331 = vmatpush3.bf16.msra.mxu0 %v9328_v3  ;;  %s520_s8 = scalar_lea.vmem %s12518_s26, %s7539_s18  ;;  %v805_v3 = vld [vmem:[%s12519_s1 + $0x10] sm:$0xff]  ;;  %v823_v18 = vld [vmem:[%s12491_s2 + $0x20] sm:$0xff]  ;;  %s7537_s18 = sshll.u32 %s513_s29, 3 }
  0x1e   : > { %v525_v6 = vld [vmem:[%s520_s8] sm:$0xff]  ;;  %v526_v7 = vld [vmem:[%s520_s8 + $0x8] sm:$0xff]  ;;  %v527_v8 = vld [vmem:[%s520_s8 + $0x10] sm:$0xff]  ;;  %9341 = vmatprep.subr.bf16.mxu0 %v9340_v22  ;;  %s515_s19 = scalar_lea.vmem [#allocation2], %s7537_s18 }
  0x1f   : > { %8727 = vmatprep.mubr.msk.f32.mxu0 %vm539_vm0, %v525_v6  ;;  %v528_v9 = vld [vmem:[%s520_s8 + $0x18] sm:$0xff]  ;;  %v529_v10 = vld [vmem:[%s520_s8 + $0x20] sm:$0xff]  ;;  %v530_v11 = vld [vmem:[%s520_s8 + $0x28] sm:$0xff]  ;;  %s7474_s20 = sshll.u32 %s515_s19, 4  ;;  %s12448_s20 = int_to_ptr.vmem [resolvable:$true] %s7474_s20 }
  0x20   : > { %8728 = vmatmul.mubr.msk.f32.vlgmr.msra.gmra.mrb[0].mxu0 %vm539_vm0, %v526_v7  ;;  %v531_v12 = vld [vmem:[%s520_s8 + $0x30] sm:$0xff]  ;;  %v532_v13 = vld [vmem:[%s520_s8 + $0x38] sm:$0xff]  ;;  %s8047_s8 = sshll.u32 %s10168_s25, 7  ;;  %s9993_s28 = scalar_lea.vmem %s12448_s20, 128 }
  0x21   : > { %8730 = vmatprep.mubr.msk.f32.mxu0 %vm539_vm0, %v527_v8  ;;  %9343 = vmatpush3.bf16.msra.mxu0 %v9340_v22  ;;  %s12446_s27 = scalar_lea.hbm %s12505_s16, %s8047_s8  ;;  %p9994_p11 = scmp.ne.s32.totalorder %s12448_s20, %s9993_s28 }
  0x22   : > { %9345 = vmatprep.subr.bf16.mxu0 %v9344_v46  ;;  %s10061_s25 = smov [#allocation2]  }
  0x23   : > { %p9995_p12 = pnand %p9994_p11, %p10185_p5  ;;  %s9997_s18 = sshll.u32 %s10061_s25, 4  ;;  %s9998_s18 = int_to_ptr.vmem [resolvable:$false] %s9997_s18 }
  0x24   : > { %8731 = vmatmul.mubr.msk.f32.gmra.mrb[2].mxu0 %vm539_vm0, %v528_v9  ;;  %p10000_p0 = scmp.lt.s32.totalorder %s12448_s20, %s9998_s18 }
  0x25   : > { %8733 = vmatprep.mubr.msk.f32.mxu0 %vm539_vm0, %v529_v10  ;;  %9347 = vmatpush3.bf16.msra.mxu0 %v9344_v46  ;;  %p9996_p13 = pneg %p9995_p12 }
  0x26   : > { %9357 = vmatprep.subr.bf16.mxu0 %v9356_v52 }
  0x28   : > { %8734 = vmatmul.mubr.msk.f32.gmra.mrb[4].mxu0 %vm539_vm0, %v530_v11  ;;  %v9360_v11 = vpack.c.bf16 %v7582_v2, %v7581_v1 }
  0x29   : > { %8736 = vmatprep.mubr.msk.f32.mxu0 %vm539_vm0, %v531_v12 }
  0x2c   : > { %8737 = vmatmul.mubr.msk.f32.gmra.mrb[6].mxu0 %vm539_vm0, %v532_v13  ;;  %v808_v13 = vld [vmem:[%s12519_s1 + $0x28] sm:$0xff] }
  0xf3   : > { %v8729_v28 = vpop.f32.mrb[0].mxu0 }
  0xf4   : > { %v630_v29 = vpop.f32.mrb[1].mxu0  ;;  %v636_v31 = vadd.f32 %v8729_v28, %v538_v27 }
  0xf5   : > { %v631_v30 = vadd.f32 %v630_v29, %v538_v27  ;;  %v826_v29 = vld [vmem:[%s12491_s2 + $0x38] sm:$0xff] }
  0xf6   : > { %v812_v58 = vmul.f32 %v804_v53, %v636_v31 }
  0xf7   : > { %v8732_v32 = vpop.f32.mrb[2].mxu0  ;;  %8747 = vmatprep.mubr.msk.f32.mxu1 %vm673_vm1, %v631_v30  ;;  %v811_v62 = vmul.f32 %v803_v55, %v631_v30  ;;  %v809_v30 = vld [vmem:[%s12519_s1 + $0x30] sm:$0xff] }
  0xf8   : > { %v646_v33 = vadd.f32 %v8732_v32, %v538_v27  ;;  %v640_v34 = vpop.f32.mrb[3].mxu0  ;;  %8748 = vmatmul.mubr.msk.f32.vlgmr.msra.gmra.mrb[0].mxu1 %vm673_vm1, %v636_v31  ;;  %v825_v32 = vld [vmem:[%s12491_s2 + $0x30] sm:$0xff] }
  0xf9   : > { %v641_v35 = vadd.f32 %v640_v34, %v538_v27  ;;  %9351 = vmatpush3.bf16.msra.mxu1 %v9348_v20 }
  0xfa   : > { %9353 = vmatprep.subr.bf16.mxu1 %v9352_v49  ;;  %v814_v8 = vmul.f32 %v806_v59, %v646_v33 }
  0xfb   : > { %v8735_v36 = vpop.f32.mrb[4].mxu0  ;;  %8750 = vmatprep.mubr.msk.f32.mxu1 %vm673_vm1, %v641_v35  ;;  %v813_v12 = vmul.f32 %v805_v3, %v641_v35 }
  0xfc   : > { %v10249_v37 = vadd.f32 %v8735_v36, %v538_v27  ;;  %v650_v38 = vpop.f32.mrb[5].mxu0  ;;  %8751 = vmatmul.mubr.msk.f32.gmra.mrb[2].mxu1 %vm673_vm1, %v646_v33 }
  0xfd   : > { %v10252_v39 = vadd.f32 %v650_v38, %v538_v27  ;;  %9355 = vmatpush3.bf16.msra.mxu1 %v9352_v49 }
  0xfe   : > { %v816_v21 = vmul.f32 %v808_v13, %v10249_v37 }
  0xff   : > { %v8738_v40 = vpop.f32.mrb[6].mxu0  ;;  %8753 = vmatprep.mubr.msk.f32.mxu1 %vm673_vm1, %v10252_v39  ;;  %v815_v26 = vmul.f32 %v807_v16, %v10252_v39 }
 0x100   : > { %v10256_v41 = vadd.f32 %v8738_v40, %v538_v27  ;;  %v660_v42 = vpop.f32.mrb[7].mxu0  ;;  %8754 = vmatmul.mubr.msk.f32.gmra.mrb[4].mxu1 %vm673_vm1, %v10249_v37 }
 0x101   : > { %v10260_v43 = vadd.f32 %v660_v42, %v538_v27  ;;  %v810_v27 = vld [vmem:[%s12519_s1 + $0x38] sm:$0xff]  ;;  %v7570_v42 = vld [vmem:[%s12496_s7 + $0x4] ss:$0 sm:$0xff]  ;;  %s9999_s1 = scalar_lea.vmem %s9998_s18, 256 }
 0x102   : > { %v818_v35 = vmul.f32 %v810_v27, %v10256_v41  ;;  %p10001_p1 = scmp.lt.s32.totalorder %s9999_s1, %s9993_s28 }
 0x103   : > { %8756 = vmatprep.mubr.msk.f32.mxu1 %vm673_vm1, %v10260_v43  ;;  %v817_v38 = vmul.f32 %v809_v30, %v10260_v43  ;;  %v10412_v43 = vld [vmem:[%s12496_s7] ss:$0 sm:$0xff] }
 0x104   : > { %8757 = vmatmul.mubr.msk.f32.gmra.mrb[6].mxu1 %vm673_vm1, %v10256_v41  ;;  %v7631_v30 = vld [vmem:[%s12498_s9 + $0xa0] sm:$0xff]  ;;  %p10002_p2 = por %p10001_p1, %p10000_p0 }
 0x106   : > { %p10003_p3 = pnand %p10002_p2, %p9996_p13 }
 0x1cb   : > { %v8749_v57 = vpop.f32.mrb[0].mxu1 }
 0x1cc   : > { %v828_v60 = vmul.f32 %v8749_v57, %v820_v54  ;;  %v764_v61 = vpop.f32.mrb[1].mxu1 }
 0x1cd   : > { %v827_v63 = vmul.f32 %v819_v56, %v764_v61 }
 0x1ce   : > { %v10311_v4 = vadd.f32 %v828_v60, %v812_v58 }
 0x1cf   : > { %v10316_v6 = vadd.f32 %v827_v63, %v811_v62  ;;  %v8752_v7 = vpop.f32.mrb[2].mxu1 }
 0x1d0   : > { %v830_v9 = vmul.f32 %v8752_v7, %v822_v0  ;;  %v774_v10 = vpop.f32.mrb[3].mxu1 }
 0x1d1   : > { %v829_v14 = vmul.f32 %v821_v5, %v774_v10  ;;  %8767 = vmatprep.mubr.msk.f32.mxu0 %vm673_vm1, %v10316_v6  ;;  %8787 = vmatprep.mubr.msk.f32.mxu1 %vm673_vm1, %v10316_v6 }
 0x1d2   : > { %v10331_v17 = vadd.f32 %v830_v9, %v814_v8  ;;  %8768 = vmatmul.mubr.msk.f32.vlgmr.msra.gmra.mrb[8].mxu0 %vm673_vm1, %v10311_v4  ;;  %8788 = vmatmul.mubr.msk.f32.vlgmr.msra.gmra.mrb[8].mxu1 %vm673_vm1, %v10311_v4 }
 0x1d3   : > { %v10340_v19 = vadd.f32 %v829_v14, %v813_v12  ;;  %v8755_v20 = vpop.f32.mrb[4].mxu1  ;;  %9359 = vmatpush3.bf16.msra.mxu0 %v9356_v52 }
 0x1d4   : > { %v832_v22 = vmul.f32 %v8755_v20, %v824_v15  ;;  %v784_v23 = vpop.f32.mrb[5].mxu1  ;;  %9361 = vmatprep.subr.bf16.mxu0 %v9360_v11 }
 0x1d5   : > { %v831_v28 = vmul.f32 %v823_v18, %v784_v23  ;;  %8770 = vmatprep.mubr.msk.f32.mxu0 %vm673_vm1, %v10340_v19  ;;  %8790 = vmatprep.mubr.msk.f32.mxu1 %vm673_vm1, %v10340_v19 }
 0x1d6   : > { %v10357_v31 = vadd.f32 %v832_v22, %v816_v21  ;;  %8771 = vmatmul.mubr.msk.f32.gmra.mrb[10].mxu0 %vm673_vm1, %v10331_v17  ;;  %8791 = vmatmul.mubr.msk.f32.gmra.mrb[10].mxu1 %vm673_vm1, %v10331_v17 }
 0x1d7   : > { %v10366_v33 = vadd.f32 %v831_v28, %v815_v26  ;;  %v8758_v34 = vpop.f32.mrb[6].mxu1  ;;  %9363 = vmatpush3.bf16.msra.mxu0 %v9360_v11  ;;  %v7584_v11 = vld [vmem:[%s12496_s7 + $0x8] ss:$0 sm:$0xff] }
 0x1d8   : > { %v834_v36 = vmul.f32 %v8758_v34, %v826_v29  ;;  %v794_v37 = vpop.f32.mrb[7].mxu1 }
 0x1d9   : > { %v833_v39 = vmul.f32 %v825_v32, %v794_v37  ;;  %8773 = vmatprep.mubr.msk.f32.mxu0 %vm673_vm1, %v10366_v33  ;;  %8793 = vmatprep.mubr.msk.f32.mxu1 %vm673_vm1, %v10366_v33  ;;  %v7632_v32 = vld [vmem:[%s12498_s9 + $0xa8] sm:$0xff] }
 0x1da   : > { %v10374_v40 = vadd.f32 %v834_v36, %v818_v35  ;;  %8774 = vmatmul.mubr.msk.f32.gmra.mrb[12].mxu0 %vm673_vm1, %v10357_v31  ;;  %8794 = vmatmul.mubr.msk.f32.gmra.mrb[12].mxu1 %vm673_vm1, %v10357_v31  ;;  %v9412_v37 = vpack.c.bf16 %v7632_v32, %v7631_v30 }
 0x1db   : > { %v10380_v41 = vadd.f32 %v833_v39, %v817_v38 }
 0x1dd   : > { %8776 = vmatprep.mubr.msk.f32.mxu0 %vm673_vm1, %v10380_v41  ;;  %8796 = vmatprep.mubr.msk.f32.mxu1 %vm673_vm1, %v10380_v41 }
 0x1de   : > { %8777 = vmatmul.mubr.msk.f32.gmra.mrb[14].mxu0 %vm673_vm1, %v10374_v40  ;;  %8797 = vmatmul.mubr.msk.f32.gmra.mrb[14].mxu1 %vm673_vm1, %v10374_v40 }
 0x1df   : > { %8807 = vmatprep.mubr.msk.f32.mxu0 %vm673_vm1, %v10316_v6 }
 0x1e2   : > { %8808 = vmatmul.mubr.msk.f32.vlgmr.msra.gmra.mrb[16].mxu0 %vm673_vm1, %v10311_v4 }
 0x1e3   : > { %8810 = vmatprep.mubr.msk.f32.mxu0 %vm673_vm1, %v10340_v19 }
 0x1e6   : > { %8811 = vmatmul.mubr.msk.f32.gmra.mrb[18].mxu0 %vm673_vm1, %v10331_v17 }
 0x1e7   : > { %8813 = vmatprep.mubr.msk.f32.mxu0 %vm673_vm1, %v10366_v33 }
 0x1ea   : > { %8814 = vmatmul.mubr.msk.f32.gmra.mrb[20].mxu0 %vm673_vm1, %v10357_v31 }
 0x1eb   : > { %8816 = vmatprep.mubr.msk.f32.mxu0 %vm673_vm1, %v10380_v41 }
 0x1ee   : > { %8817 = vmatmul.mubr.msk.f32.gmra.mrb[22].mxu0 %vm673_vm1, %v10374_v40 }
 0x2a5   : > { %v10414_v44 = vpop.f32.mrb[8].mxu0  ;;  %v8789_v45 = vpop.f32.mrb[8].mxu1 }
 0x2a6   : > { %v1076_v46 = vadd.f32 %v8789_v45, %v7570_v42  ;;  %v952_v47 = vpop.f32.mrb[9].mxu0  ;;  %v1070_v48 = vpop.f32.mrb[9].mxu1 }
 0x2a7   : > { %v953_v49 = vadd.f32 %v10412_v43, %v952_v47  ;;  %v1071_v50 = vadd.f32 %v7570_v42, %v1070_v48  ;;  %v7634_v47 = vld [vmem:[%s12498_s9 + $0xb8] sm:$0xff]  ;;  %v958_v48 = vadd.f32 %v10414_v44, %v10412_v43 }
 0x2a9   : > { %v9364_v52 = vpack.c.bf16 %v1076_v46, %v1071_v50  ;;  %v10423_v53 = vpop.f32.mrb[10].mxu0  ;;  %v8792_v54 = vpop.f32.mrb[10].mxu1  ;;  %8835 = vmatprep.mubr.msk.f32.mxu1 %vm1227_vm2, %v953_v49  ;;  %v7633_v46 = vld [vmem:[%s12498_s9 + $0xb0] sm:$0xff] }
 0x2aa   : > { %v1086_v55 = vadd.f32 %v8792_v54, %v7570_v42  ;;  %v10426_v56 = vpop.f32.mrb[11].mxu0  ;;  %v1080_v57 = vpop.f32.mrb[11].mxu1  ;;  %v9416_v49 = vpack.c.bf16 %v7634_v47, %v7633_v46 }
 0x2ab   : > { %v1081_v58 = vadd.f32 %v7570_v42, %v1080_v57  ;;  %9366 = vmatprep.subr.msk.bf16.mxu1 %vm10419_vm3, %v9364_v52  ;;  %v963_v50 = vadd.f32 %v10412_v43, %v10426_v56  ;;  %v10506_v57 = vld [vmem:[%s12492_s3 + $0x8] sm:$0xff] }
 0x2ac   : > { %9369 = vmatpush3.bf16.xpose.msk.msra.mxu1 %vm10419_vm3, %v9364_v52  ;;  %v968_v52 = vadd.f32 %v10423_v53, %v10412_v43 }
 0x2ad   : > { %v9370_v59 = vpack.c.bf16 %v1086_v55, %v1081_v58  ;;  %v10432_v60 = vpop.f32.mrb[12].mxu0  ;;  %v8795_v61 = vpop.f32.mrb[12].mxu1 }
 0x2ae   : > { %v1096_v62 = vadd.f32 %v8795_v61, %v7570_v42  ;;  %v972_v63 = vpop.f32.mrb[13].mxu0  ;;  %v1090_v0 = vpop.f32.mrb[13].mxu1  ;;  %v978_v44 = vadd.f32 %v10432_v60, %v10412_v43  ;;  %v10514_v60 = vld [vmem:[%s12492_s3 + $0x10] sm:$0xff] }
 0x2af   : > { %v1091_v1 = vadd.f32 %v7570_v42, %v1090_v0  ;;  %9372 = vmatprep.subr.msk.bf16.mxu1 %vm10419_vm3, %v9370_v59  ;;  %v973_v54 = vadd.f32 %v10412_v43, %v972_v63  ;;  %v10524_v0 = vld [vmem:[%s12492_s3 + $0x18] sm:$0xff] }
 0x2b1   : > { %v9376_v2 = vpack.c.bf16 %v1096_v62, %v1091_v1  ;;  %v10436_v3 = vpop.f32.mrb[14].mxu0  ;;  %v8798_v5 = vpop.f32.mrb[14].mxu1 }
 0x2b2   : > { %v1106_v7 = vadd.f32 %v8798_v5, %v7570_v42  ;;  %v982_v8 = vpop.f32.mrb[15].mxu0  ;;  %v1100_v9 = vpop.f32.mrb[15].mxu1  ;;  %v988_v53 = vadd.f32 %v10436_v3, %v10412_v43  ;;  %v10532_v3 = vld [vmem:[%s12492_s3 + $0x20] sm:$0xff] }
 0x2b3   : > { %v1101_v10 = vadd.f32 %v7570_v42, %v1100_v9  ;;  %v983_v55 = vadd.f32 %v10412_v43, %v982_v8  ;;  %v10501_v43 = vld [vmem:[%s12492_s3] sm:$0xff] }
 0x2b4   : > { %9375 = vmatpush3.bf16.xpose.msk.msra.mxu1 %vm10419_vm3, %v9370_v59 }
 0x2b5   : > { %v9382_v12 = vpack.c.bf16 %v1106_v7, %v1101_v10  ;;  %v8809_v13 = vpop.f32.mrb[16].mxu0  ;;  %9378 = vmatprep.subr.msk.bf16.mxu1 %vm10419_vm3, %v9376_v2  ;;  %v10544_v10 = vld [vmem:[%s12492_s3 + $0x28] sm:$0xff] }
 0x2b6   : > { %v1194_v14 = vadd.f32 %v8809_v13, %v7584_v11  ;;  %v1188_v15 = vpop.f32.mrb[17].mxu0  ;;  %v10552_v13 = vld [vmem:[%s12492_s3 + $0x30] sm:$0xff] }
 0x2b7   : > { %v1189_v16 = vadd.f32 %v7584_v11, %v1188_v15 }
 0x2b9   : > { %v9388_v18 = vpack.c.bf16 %v1194_v14, %v1189_v16  ;;  %v8812_v20 = vpop.f32.mrb[18].mxu0 }
 0x2ba   : > { %v1204_v21 = vadd.f32 %v8812_v20, %v7584_v11  ;;  %v1198_v22 = vpop.f32.mrb[19].mxu0  ;;  %v10564_v20 = vld [vmem:[%s12492_s3 + $0x38] sm:$0xff] }
 0x2bb   : > { %v1199_v23 = vadd.f32 %v7584_v11, %v1198_v22  ;;  %9389 = vmatprep.subr.bf16.mxu0 %v9388_v18 }
 0x2bc   : > { %9381 = vmatpush3.bf16.xpose.msk.msra.mxu1 %vm10419_vm3, %v9376_v2  ;;  %9391 = vmatpush3.bf16.msra.mxu0 %v9388_v18 }
 0x2bd   : > { %v9392_v26 = vpack.c.bf16 %v1204_v21, %v1199_v23  ;;  %v8815_v27 = vpop.f32.mrb[20].mxu0  ;;  %9384 = vmatprep.subr.msk.bf16.mxu1 %vm10419_vm3, %v9382_v12  ;;  %v7636_v23 = vld [vmem:[%s12496_s7 + $0x5] ss:$0 sm:$0xff] }
 0x2be   : > { %v1214_v28 = vadd.f32 %v8815_v27, %v7584_v11  ;;  %v1208_v29 = vpop.f32.mrb[21].mxu0 }
 0x2bf   : > { %v1209_v34 = vadd.f32 %v7584_v11, %v1208_v29  ;;  %9393 = vmatprep.subr.bf16.mxu0 %v9392_v26 }
 0x2c0   : > { %9395 = vmatpush3.bf16.msra.mxu0 %v9392_v26 }
 0x2c1   : > { %v9396_v35 = vpack.c.bf16 %v1214_v28, %v1209_v34  ;;  %v8818_v36 = vpop.f32.mrb[22].mxu0 }
 0x2c2   : > { %v1224_v38 = vadd.f32 %v8818_v36, %v7584_v11  ;;  %v1218_v39 = vpop.f32.mrb[23].mxu0 }
 0x2c3   : > { %v1219_v42 = vadd.f32 %v7584_v11, %v1218_v39  ;;  %9397 = vmatprep.subr.bf16.mxu0 %v9396_v35 }
 0x2c4   : > { %9387 = vmatpush3.bf16.xpose.msk.msra.mxu1 %vm10419_vm3, %v9382_v12  ;;  %9399 = vmatpush3.bf16.msra.mxu0 %v9396_v35 }
 0x2c5   : > { %v9400_v45 = vpack.c.bf16 %v1224_v38, %v1219_v42  ;;  %9413 = vmatprep.subr.bf16.mxu1 %v9412_v37 }
 0x2c7   : > { %9401 = vmatprep.subr.bf16.mxu0 %v9400_v45 }
 0x2c8   : > { %9403 = vmatpush3.bf16.msra.mxu0 %v9400_v45 }
 0x2cb   : > { %8836 = vmatmul.mubr.msk.f32.vlgmr.msra.gmra.mrb[16].mxu1 %vm1227_vm2, %v958_v48 }
 0x2cc   : > { %8838 = vmatprep.mubr.msk.f32.mxu1 %vm1227_vm2, %v963_v50  ;;  %9415 = vmatpush3.bf16.msra.mxu1 %v9412_v37 }
 0x2cd   : > { %9417 = vmatprep.subr.bf16.mxu1 %v9416_v49 }
 0x2cf   : > { %8839 = vmatmul.mubr.msk.f32.gmra.mrb[18].mxu1 %vm1227_vm2, %v968_v52 }
 0x2d0   : > { %8841 = vmatprep.mubr.msk.f32.mxu1 %vm1227_vm2, %v973_v54  ;;  %9419 = vmatpush3.bf16.msra.mxu1 %v9416_v49 }
 0x2d3   : > { %8842 = vmatmul.mubr.msk.f32.gmra.mrb[20].mxu1 %vm1227_vm2, %v978_v44 }
 0x2d4   : > { %8844 = vmatprep.mubr.msk.f32.mxu1 %vm1227_vm2, %v983_v55 }
 0x2d7   : > { %8845 = vmatmul.mubr.msk.f32.gmra.mrb[22].mxu1 %vm1227_vm2, %v988_v53 }
 0x2d8   : > { %8903 = vmatprep.mubr.msk.f32.mxu1 %vm673_vm1, %v10316_v6 }
 0x2db   : > { %8904 = vmatmul.mubr.msk.f32.vlgmr.msra.gmra.mrb[24].mxu1 %vm673_vm1, %v10311_v4 }
 0x2dc   : > { %8906 = vmatprep.mubr.msk.f32.mxu1 %vm673_vm1, %v10340_v19 }
 0x2df   : > { %8907 = vmatmul.mubr.msk.f32.gmra.mrb[26].mxu1 %vm673_vm1, %v10331_v17 }
 0x2e0   : > { %8909 = vmatprep.mubr.msk.f32.mxu1 %vm673_vm1, %v10366_v33 }
 0x2e3   : > { %8910 = vmatmul.mubr.msk.f32.gmra.mrb[28].mxu1 %vm673_vm1, %v10357_v31 }
 0x2e4   : > { %8912 = vmatprep.mubr.msk.f32.mxu1 %vm673_vm1, %v10380_v41 }
 0x2e7   : > { %8913 = vmatmul.mubr.msk.f32.gmra.mrb[30].mxu1 %vm673_vm1, %v10374_v40 }
 0x39e   : > { %v8837_v56 = vpop.f32.mrb[16].mxu1 }
 0x39f   : > { %v1342_v58 = vpop.f32.mrb[17].mxu1  ;;  %v10517_v61 = vadd.f32 %v8837_v56, %v10506_v57 }
 0x3a0   : > { %v10509_v59 = vadd.f32 %v1342_v58, %v10501_v43 }
 0x3a1   : > { %v1385_v9 = vsel %vm1381_vm4, %v10517_v61, -inf }
 0x3a2   : > { %v8840_v62 = vpop.f32.mrb[18].mxu1  ;;  %v1382_v63 = vsel %vm1381_vm4, %v10509_v59, -inf }
 0x3a3   : > { %v1352_v1 = vpop.f32.mrb[19].mxu1  ;;  %1383 = vmax.xlane.f32.xlu0 %v1382_v63  ;;  %v10535_v5 = vadd.f32 %v8840_v62, %v10524_v0 }
 0x3a4   : > { %v10527_v2 = vadd.f32 %v1352_v1, %v10514_v60 }
 0x3a5   : > { %v1391_v16 = vsel %vm1381_vm4, %v10535_v5, -inf }
 0x3a6   : > { %v8843_v7 = vpop.f32.mrb[20].mxu1  ;;  %v1388_v8 = vsel %vm1381_vm4, %v10527_v2, -inf }
 0x3a7   : > { %v1362_v11 = vpop.f32.mrb[21].mxu1  ;;  %1389 = vmax.xlane.f32.xlu1 %v1388_v8  ;;  %1386 = vmax.xlane.f32.xlu0 %v1385_v9  ;;  %v10555_v14 = vadd.f32 %v8843_v7, %v10544_v10 }
 0x3a8   : > { %v10547_v12 = vadd.f32 %v1362_v11, %v10532_v3 }
 0x3a9   : > { %v1397_v28 = vsel %vm1381_vm4, %v10555_v14, -inf }
 0x3aa   : > { %v8846_v15 = vpop.f32.mrb[22].mxu1  ;;  %v1394_v18 = vsel %vm1381_vm4, %v10547_v12, -inf }
 0x3ab   : > { %1392 = vmax.xlane.f32.xlu1 %v1391_v16  ;;  %1395 = vmax.xlane.f32.xlu0 %v1394_v18  ;;  %v1372_v21 = vpop.f32.mrb[23].mxu1  ;;  %v10573_v26 = vadd.f32 %v8846_v15, %v10564_v20 }
 0x3ac   : > { %v10567_v22 = vadd.f32 %v1372_v21, %v10552_v13 }
 0x3ad   : > { %v1403_v37 = vsel %vm1381_vm4, %v10573_v26, -inf }
 0x3ae   : > { %v8905_v27 = vpop.f32.mrb[24].mxu1  ;;  %v1400_v29 = vsel %vm1381_vm4, %v10567_v22, -inf }
 0x3af   : > { %v1803_v30 = vadd.f32 %v8905_v27, %v7636_v23  ;;  %1398 = vmax.xlane.f32.xlu1 %v1397_v28  ;;  %v1797_v32 = vpop.f32.mrb[25].mxu1  ;;  %1401 = vmax.xlane.f32.xlu0 %v1400_v29 }
 0x3b0   : > { %v1798_v34 = vadd.f32 %v7636_v23, %v1797_v32 }
 0x3b2   : > { %v9428_v35 = vpack.c.bf16 %v1803_v30, %v1798_v34  ;;  %v8908_v36 = vpop.f32.mrb[26].mxu1 }
 0x3b3   : > { %v1813_v38 = vadd.f32 %v8908_v36, %v7636_v23  ;;  %1404 = vmax.xlane.f32.xlu1 %v1403_v37  ;;  %v1807_v39 = vpop.f32.mrb[27].mxu1 }
 0x3b4   : > { %v1808_v42 = vadd.f32 %v7636_v23, %v1807_v39  ;;  %9430 = vmatprep.subr.msk.bf16.mxu1 %vm10419_vm3, %v9428_v35 }
 0x3b5   : > { %9433 = vmatpush3.bf16.xpose.msk.msra.mxu1 %vm10419_vm3, %v9428_v35 }
 0x3b6   : > { %v9434_v45 = vpack.c.bf16 %v1813_v38, %v1808_v42  ;;  %v8911_v46 = vpop.f32.mrb[28].mxu1 }
 0x3b7   : > { %v1823_v47 = vadd.f32 %v8911_v46, %v7636_v23  ;;  %v1817_v48 = vpop.f32.mrb[29].mxu1 }
 0x3b8   : > { %v1818_v49 = vadd.f32 %v7636_v23, %v1817_v48  ;;  %9436 = vmatprep.subr.msk.bf16.mxu1 %vm10419_vm3, %v9434_v45 }
 0x3ba   : > { %v9440_v50 = vpack.c.bf16 %v1823_v47, %v1818_v49  ;;  %v8914_v52 = vpop.f32.mrb[30].mxu1 }
 0x3bb   : > { %v1833_v54 = vadd.f32 %v8914_v52, %v7636_v23  ;;  %v1827_v44 = vpop.f32.mrb[31].mxu1  ;;  %v7617_v52 = vld [vmem:[%s12498_s9 + $0x20] sm:$0xff] }
 0x3bc   : > { %v1828_v55 = vadd.f32 %v7636_v23, %v1827_v44 }
 0x3bd   : > { %9439 = vmatpush3.bf16.xpose.msk.msra.mxu1 %vm10419_vm3, %v9434_v45 }
 0x3be   : > { %v9446_v53 = vpack.c.bf16 %v1833_v54, %v1828_v55  ;;  %9442 = vmatprep.subr.msk.bf16.mxu1 %vm10419_vm3, %v9440_v50  ;;  %v7618_v54 = vld [vmem:[%s12498_s9 + $0x28] sm:$0xff] }
 0x3bf   : > { %v9404_v44 = vpack.c.bf16 %v7618_v54, %v7617_v52 }
 0x3c1   : > { %9405 = vmatprep.subr.bf16.mxu0 %v9404_v44 }
 0x3c5   : > { %9445 = vmatpush3.bf16.xpose.msk.msra.mxu1 %vm10419_vm3, %v9440_v50 }
 0x3c6   : > { %9448 = vmatprep.subr.msk.bf16.mxu1 %vm10419_vm3, %v9446_v53 }
 0x3cd   : > { %9451 = vmatpush3.bf16.xpose.msk.msra.mxu1 %vm10419_vm3, %v9446_v53 }
 0x430   : > { %v1384_v56 = vpop.xlane.xlu0 %1383 }
 0x431   : > { %v1406_v58 = vsub.f32 %v10509_v59, %v1384_v56 }
 0x433   : > { %v1414_v62 = vmul.f32 1.442695, %v1406_v58 }
 0x434   : > { %v1390_v63 = vpop.xlane.xlu1 %1389  ;;  %v1387_v1 = vpop.xlane.xlu0 %1386 }
 0x435   : > { %9821 = vpow2.f32 %v1414_v62  ;;  %v1408_v7 = vsub.f32 %v10527_v2, %v1390_v63  ;;  %v1407_v8 = vsub.f32 %v10517_v61, %v1387_v1 }
 0x437   : > { %v1418_v9 = vmul.f32 1.442695, %v1408_v7  ;;  %v1416_v11 = vmul.f32 1.442695, %v1407_v8 }
 0x438   : > { %v1393_v15 = vpop.xlane.xlu1 %1392  ;;  %v1396_v16 = vpop.xlane.xlu0 %1395 }
 0x439   : > { %9823 = vpow2.f32 %v1418_v9  ;;  %v1409_v18 = vsub.f32 %v10535_v5, %v1393_v15  ;;  %v1410_v21 = vsub.f32 %v10547_v12, %v1396_v16  ;;  %v7619_v9 = vld [vmem:[%s12498_s9 + $0x30] sm:$0xff] }
 0x43a   : > { %9825 = vpow2.f32 %v1416_v11  ;;  %v7620_v11 = vld [vmem:[%s12498_s9 + $0x38] sm:$0xff] }
 0x43b   : > { %v1420_v23 = vmul.f32 1.442695, %v1409_v18  ;;  %v1422_v59 = vmul.f32 1.442695, %v1410_v21 }
 0x43c   : > { %v1399_v27 = vpop.xlane.xlu1 %1398  ;;  %v1402_v28 = vpop.xlane.xlu0 %1401 }
 0x43d   : > { %9827 = vpow2.f32 %v1420_v23  ;;  %v1411_v29 = vsub.f32 %v10555_v14, %v1399_v27  ;;  %v1412_v2 = vsub.f32 %v10567_v22, %v1402_v28  ;;  %v7645_v27 = vld [vmem:[%s12498_s9 + $0x120] sm:$0xff]  ;;  %v7646_v28 = vld [vmem:[%s12498_s9 + $0x128] sm:$0xff] }
 0x43e   : > { %9829 = vpow2.f32 %v1422_v59  ;;  %v9408_v59 = vpack.c.bf16 %v7620_v11, %v7619_v9  ;;  %v7715_v9 = vld [vmem:[%s12498_s9 + $0xc8] sm:$0xff] }
 0x43f   : > { %v9822_v61 = vpop.eup %9821  ;;  %v1424_v30 = vmul.f32 1.442695, %v1411_v29  ;;  %v1426_v32 = vmul.f32 1.442695, %v1412_v2 }
 0x440   : > { %v1405_v34 = vpop.xlane.xlu1 %1404  ;;  %v1430_v35 = vsel %vm1381_vm4, %v9822_v61, 0.0 }
 0x441   : > { %9831 = vpow2.f32 %v1424_v30  ;;  %v1413_v5 = vsub.f32 %v10573_v26, %v1405_v34  ;;  %1431 = vadd.xlane.f32.xlu0 %v1430_v35  ;;  %v9420_v30 = vpack.c.bf16 %v7646_v28, %v7645_v27 }
 0x442   : > { %9833 = vpow2.f32 %v1426_v32 }
 0x443   : > { %v9824_v12 = vpop.eup %9823  ;;  %v1428_v36 = vmul.f32 1.442695, %v1413_v5 }
 0x444   : > { %v9826_v37 = vpop.eup %9825  ;;  %v1436_v38 = vsel %vm1381_vm4, %v9824_v12, 0.0 }
 0x445   : > { %9835 = vpow2.f32 %v1428_v36  ;;  %v1433_v14 = vsel %vm1381_vm4, %v9826_v37, 0.0  ;;  %1437 = vadd.xlane.f32.xlu0 %v1436_v38  ;;  %v7647_v38 = vld [vmem:[%s12498_s9 + $0x130] sm:$0xff] }
 0x446   : > { %1434 = vadd.xlane.f32.xlu1 %v1433_v14  ;;  %v7648_v14 = vld [vmem:[%s12498_s9 + $0x138] sm:$0xff] }
 0x447   : > { %v9828_v22 = vpop.eup %9827 }
 0x448   : > { %v9830_v39 = vpop.eup %9829  ;;  %v1439_v42 = vsel %vm1381_vm4, %v9828_v22, 0.0 }
 0x449   : > { %v1442_v45 = vsel %vm1381_vm4, %v9830_v39, 0.0 }
 0x44a   : > { %1440 = vadd.xlane.f32.xlu1 %v1439_v42  ;;  %1443 = vadd.xlane.f32.xlu0 %v1442_v45  ;;  %v7701_v42 = vld [vmem:[%s12498_s9 + $0x48] sm:$0xff] }
 0x44b   : > { %v9832_v26 = vpop.eup %9831 }
 0x44c   : > { %v9834_v46 = vpop.eup %9833  ;;  %v1445_v47 = vsel %vm1381_vm4, %v9832_v26, 0.0 }
 0x44d   : > { %v1448_v48 = vsel %vm1381_vm4, %v9834_v46, 0.0 }
 0x44e   : > { %1446 = vadd.xlane.f32.xlu1 %v1445_v47  ;;  %1449 = vadd.xlane.f32.xlu0 %v1448_v48 }
 0x44f   : > { %v9836_v49 = vpop.eup %9835 }
 0x450   : > { %v1451_v50 = vsel %vm1381_vm4, %v9836_v49, 0.0 }
 0x452   : > { %1452 = vadd.xlane.f32.xlu1 %v1451_v50 }
 0x4ce   : > { %v1432_v55 = vpop.xlane.xlu0 %1431 }
 0x4cf   : > { %9837 = vrcp.f32 %v1432_v55 }
 0x4d2   : > { %v1438_v53 = vpop.xlane.xlu0 %1437 }
 0x4d3   : > { %v1435_v56 = vpop.xlane.xlu1 %1434  ;;  %9839 = vrcp.f32 %v1438_v53  ;;  %v7702_v53 = vld [vmem:[%s12498_s9 + $0x50] sm:$0xff] }
 0x4d4   : > { %9841 = vrcp.f32 %v1435_v56  ;;  %v7703_v56 = vld [vmem:[%s12498_s9 + $0x58] sm:$0xff] }
 0x4d7   : > { %v1441_v58 = vpop.xlane.xlu1 %1440  ;;  %v1444_v62 = vpop.xlane.xlu0 %1443 }
 0x4d8   : > { %9843 = vrcp.f32 %v1441_v58 }
 0x4d9   : > { %v9838_v63 = vpop.eup %9837  ;;  %9845 = vrcp.f32 %v1444_v62 }
 0x4da   : > { %v1462_v1 = vmul.f32 %v9838_v63, %v9822_v61 }
 0x4db   : > { %v1447_v7 = vpop.xlane.xlu1 %1446  ;;  %v1450_v8 = vpop.xlane.xlu0 %1449 }
 0x4dc   : > { %9847 = vrcp.f32 %v1447_v7  ;;  %8863 = vmatprep.mubr.msk.f32.mxu0 %vm1381_vm4, %v1462_v1  ;;  %v9472_v1 = vpack.c.bf16 %v7703_v56, %v7702_v53 }
 0x4dd   : > { %v9840_v15 = vpop.eup %9839  ;;  %9849 = vrcp.f32 %v1450_v8  ;;  %v7714_v8 = vld [vmem:[%s12498_s9 + $0xc0] sm:$0xff] }
 0x4de   : > { %v9842_v16 = vpop.eup %9841  ;;  %v1464_v18 = vmul.f32 %v9840_v15, %v9824_v12 }
 0x4df   : > { %v1463_v21 = vmul.f32 %v9842_v16, %v9826_v37  ;;  %v1453_v23 = vpop.xlane.xlu1 %1452 }
 0x4e0   : > { %9851 = vrcp.f32 %v1453_v23 }
 0x4e1   : > { %8864 = vmatmul.mubr.msk.f32.vlgmr.msra.gmra.mrb[24].mxu0 %vm1381_vm4, %v1463_v21 }
 0x4e2   : > { %v9844_v29 = vpop.eup %9843  ;;  %8866 = vmatprep.mubr.msk.f32.mxu0 %vm1381_vm4, %v1464_v18  ;;  %9407 = vmatpush3.bf16.msra.mxu0 %v9404_v44  ;;  %v7622_v44 = vld [vmem:[%s12496_s7 + $0x1] ss:$0 sm:$0xff]  ;;  %v9476_v18 = vpack.c.bf16 %v7715_v9, %v7714_v8 }
 0x4e3   : > { %v9846_v2 = vpop.eup %9845  ;;  %v1465_v61 = vmul.f32 %v9844_v29, %v9828_v22  ;;  %9409 = vmatprep.subr.bf16.mxu0 %v9408_v59  ;;  %v9424_v22 = vpack.c.bf16 %v7648_v14, %v7647_v38 }
 0x4e4   : > { %v1466_v32 = vmul.f32 %v9846_v2, %v9830_v39  ;;  %v7700_v39 = vld [vmem:[%s12498_s9 + $0x40] sm:$0xff] }
 0x4e5   : > { %8867 = vmatmul.mubr.msk.f32.gmra.mrb[26].mxu0 %vm1381_vm4, %v1465_v61  ;;  %v9468_v45 = vpack.c.bf16 %v7701_v42, %v7700_v39  ;;  %v7650_v61 = vld [vmem:[%s12496_s7 + $0x9] ss:$0 sm:$0xff] }
 0x4e6   : > { %v9848_v34 = vpop.eup %9847  ;;  %8869 = vmatprep.mubr.msk.f32.mxu0 %vm1381_vm4, %v1466_v32  ;;  %9411 = vmatpush3.bf16.msra.mxu0 %v9408_v59 }
 0x4e7   : > { %v9850_v35 = vpop.eup %9849  ;;  %v1467_v5 = vmul.f32 %v9848_v34, %v9832_v26  ;;  %9421 = vmatprep.subr.bf16.mxu0 %v9420_v30  ;;  %9469 = vmatprep.subr.bf16.mxu1 %v9468_v45 }
 0x4e8   : > { %v1468_v12 = vmul.f32 %v9850_v35, %v9834_v46 }
 0x4e9   : > { %8870 = vmatmul.mubr.msk.f32.gmra.mrb[28].mxu0 %vm1381_vm4, %v1467_v5  ;;  %v7716_v5 = vld [vmem:[%s12498_s9 + $0xd0] sm:$0xff] }
 0x4ea   : > { %v9852_v36 = vpop.eup %9851  ;;  %8872 = vmatprep.mubr.msk.f32.mxu0 %vm1381_vm4, %v1468_v12  ;;  %v7717_v12 = vld [vmem:[%s12498_s9 + $0xd8] sm:$0xff] }
 0x4eb   : > { %v1469_v37 = vmul.f32 %v9852_v36, %v9836_v49  ;;  %v9480_v14 = vpack.c.bf16 %v7717_v12, %v7716_v5 }
 0x4ed   : > { %8873 = vmatmul.mubr.msk.f32.gmra.mrb[30].mxu0 %vm1381_vm4, %v1469_v37 }
 0x4ee   : > { %8883 = vmatprep.mubr.msk.f32.mxu0 %vm673_vm1, %v10316_v6 }
 0x4f1   : > { %8884 = vmatmul.mubr.msk.f32.vlgmr.msra.gmra.mrb[32].mxu0 %vm673_vm1, %v10311_v4 }
 0x4f2   : > { %8886 = vmatprep.mubr.msk.f32.mxu0 %vm673_vm1, %v10340_v19  ;;  %9423 = vmatpush3.bf16.msra.mxu0 %v9420_v30 }
 0x4f3   : > { %9425 = vmatprep.subr.bf16.mxu0 %v9424_v22 }
 0x4f5   : > { %8887 = vmatmul.mubr.msk.f32.gmra.mrb[34].mxu0 %vm673_vm1, %v10331_v17 }
 0x4f6   : > { %8889 = vmatprep.mubr.msk.f32.mxu0 %vm673_vm1, %v10366_v33  ;;  %9427 = vmatpush3.bf16.msra.mxu0 %v9424_v22 }
 0x4f9   : > { %8890 = vmatmul.mubr.msk.f32.gmra.mrb[36].mxu0 %vm673_vm1, %v10357_v31 }
 0x4fa   : > { %8892 = vmatprep.mubr.msk.f32.mxu0 %vm673_vm1, %v10380_v41 }
 0x4fd   : > { %8893 = vmatmul.mubr.msk.f32.gmra.mrb[38].mxu0 %vm673_vm1, %v10374_v40 }
 0x4fe   : > { %8923 = vmatprep.mubr.msk.f32.mxu0 %vm673_vm1, %v10316_v6 }
 0x501   : > { %8924 = vmatmul.mubr.msk.f32.vlgmr.msra.gmra.mrb[40].mxu0 %vm673_vm1, %v10311_v4 }
 0x502   : > { %8926 = vmatprep.mubr.msk.f32.mxu0 %vm673_vm1, %v10340_v19 }
 0x505   : > { %8927 = vmatmul.mubr.msk.f32.gmra.mrb[42].mxu0 %vm673_vm1, %v10331_v17 }
 0x506   : > { %8929 = vmatprep.mubr.msk.f32.mxu0 %vm673_vm1, %v10366_v33 }
 0x509   : > { %8930 = vmatmul.mubr.msk.f32.gmra.mrb[44].mxu0 %vm673_vm1, %v10357_v31 }
 0x50a   : > { %8932 = vmatprep.mubr.msk.f32.mxu0 %vm673_vm1, %v10380_v41 }
 0x50d   : > { %8933 = vmatmul.mubr.msk.f32.gmra.mrb[46].mxu0 %vm673_vm1, %v10374_v40 }
 0x5b4   : > { %v10683_v26 = vpop.f32.mrb[24].mxu0 }
 0x5b5   : > { %v10685_v46 = vpop.f32.mrb[25].mxu0 }
 0x5b8   : > { %v10687_v47 = vpop.f32.mrb[26].mxu0 }
 0x5b9   : > { %v10689_v48 = vpop.f32.mrb[27].mxu0 }
 0x5bc   : > { %v10691_v49 = vpop.f32.mrb[28].mxu0 }
 0x5bd   : > { %v10693_v50 = vpop.f32.mrb[29].mxu0 }
 0x5c0   : > { %v10695_v52 = vpop.f32.mrb[30].mxu0 }
 0x5c1   : > { %v10697_v54 = vpop.f32.mrb[31].mxu0 }
 0x5c4   : > { %v8885_v55 = vpop.f32.mrb[32].mxu0 }
 0x5c5   : > { %v1679_v58 = vpop.f32.mrb[33].mxu0  ;;  %v1685_v63 = vadd.f32 %v8885_v55, %v7622_v44 }
 0x5c6   : > { %v1680_v62 = vadd.f32 %v7622_v44, %v1679_v58 }
 0x5c8   : > { %v8888_v7 = vpop.f32.mrb[34].mxu0  ;;  %8951 = vmatprep.mubr.msk.f32.mxu1 %vm1227_vm2, %v1680_v62 }
 0x5c9   : > { %v1689_v11 = vpop.f32.mrb[35].mxu0  ;;  %8952 = vmatmul.mubr.msk.f32.vlgmr.msra.gmra.mrb[32].mxu1 %vm1227_vm2, %v1685_v63  ;;  %v1695_v16 = vadd.f32 %v8888_v7, %v7622_v44 }
 0x5ca   : > { %v1690_v15 = vadd.f32 %v7622_v44, %v1689_v11  ;;  %9471 = vmatpush3.bf16.msra.mxu1 %v9468_v45 }
 0x5cb   : > { %9473 = vmatprep.subr.bf16.mxu1 %v9472_v1 }
 0x5cc   : > { %v8891_v21 = vpop.f32.mrb[36].mxu0  ;;  %8954 = vmatprep.mubr.msk.f32.mxu1 %vm1227_vm2, %v1690_v15 }
 0x5cd   : > { %v1699_v23 = vpop.f32.mrb[37].mxu0  ;;  %8955 = vmatmul.mubr.msk.f32.gmra.mrb[34].mxu1 %vm1227_vm2, %v1695_v16  ;;  %v1705_v27 = vadd.f32 %v8891_v21, %v7622_v44 }
 0x5ce   : > { %v1700_v59 = vadd.f32 %v7622_v44, %v1699_v23  ;;  %9475 = vmatpush3.bf16.msra.mxu1 %v9472_v1 }
 0x5cf   : > { %9477 = vmatprep.subr.bf16.mxu1 %v9476_v18 }
 0x5d0   : > { %v8894_v28 = vpop.f32.mrb[38].mxu0  ;;  %8957 = vmatprep.mubr.msk.f32.mxu1 %vm1227_vm2, %v1700_v59 }
 0x5d1   : > { %v1709_v29 = vpop.f32.mrb[39].mxu0  ;;  %8958 = vmatmul.mubr.msk.f32.gmra.mrb[36].mxu1 %vm1227_vm2, %v1705_v27  ;;  %v1715_v30 = vadd.f32 %v8894_v28, %v7622_v44 }
 0x5d2   : > { %v1710_v2 = vadd.f32 %v7622_v44, %v1709_v29 }
 0x5d4   : > { %v8925_v32 = vpop.f32.mrb[40].mxu0  ;;  %8960 = vmatprep.mubr.msk.f32.mxu1 %vm1227_vm2, %v1710_v2 }
 0x5d5   : > { %v1921_v34 = vadd.f32 %v8925_v32, %v7650_v61  ;;  %v1915_v35 = vpop.f32.mrb[41].mxu0  ;;  %8961 = vmatmul.mubr.msk.f32.gmra.mrb[38].mxu1 %vm1227_vm2, %v1715_v30 }
 0x5d6   : > { %v1916_v36 = vadd.f32 %v7650_v61, %v1915_v35  ;;  %9027 = vmatprep.mubr.msk.f32.mxu1 %vm673_vm1, %v10316_v6 }
 0x5d8   : > { %v9452_v37 = vpack.c.bf16 %v1921_v34, %v1916_v36  ;;  %v8928_v38 = vpop.f32.mrb[42].mxu0 }
 0x5d9   : > { %v1931_v22 = vadd.f32 %v8928_v38, %v7650_v61  ;;  %v1925_v39 = vpop.f32.mrb[43].mxu0  ;;  %9028 = vmatmul.mubr.msk.f32.vlgmr.msra.gmra.mrb[40].mxu1 %vm673_vm1, %v10311_v4 }
 0x5da   : > { %v1926_v42 = vadd.f32 %v7650_v61, %v1925_v39  ;;  %9453 = vmatprep.subr.bf16.mxu0 %v9452_v37  ;;  %9030 = vmatprep.mubr.msk.f32.mxu1 %vm673_vm1, %v10340_v19 }
 0x5db   : > { %9455 = vmatpush3.bf16.msra.mxu0 %v9452_v37  ;;  %9479 = vmatpush3.bf16.msra.mxu1 %v9476_v18 }
 0x5dc   : > { %v9456_v45 = vpack.c.bf16 %v1931_v22, %v1926_v42  ;;  %v8931_v44 = vpop.f32.mrb[44].mxu0  ;;  %9481 = vmatprep.subr.bf16.mxu1 %v9480_v14  ;;  %v10804_v22 = vld [vmem:[%s12496_s7 + $0x2] ss:$0 sm:$0xff] }
 0x5dd   : > { %v1941_v55 = vadd.f32 %v8931_v44, %v7650_v61  ;;  %v1935_v53 = vpop.f32.mrb[45].mxu0  ;;  %9031 = vmatmul.mubr.msk.f32.gmra.mrb[42].mxu1 %vm673_vm1, %v10331_v17 }
 0x5de   : > { %v1936_v56 = vadd.f32 %v7650_v61, %v1935_v53  ;;  %9457 = vmatprep.subr.bf16.mxu0 %v9456_v45  ;;  %9033 = vmatprep.mubr.msk.f32.mxu1 %vm673_vm1, %v10366_v33 }
 0x5df   : > { %9459 = vmatpush3.bf16.msra.mxu0 %v9456_v45  ;;  %9483 = vmatpush3.bf16.msra.mxu1 %v9480_v14 }
 0x5e0   : > { %v9460_v58 = vpack.c.bf16 %v1941_v55, %v1936_v56  ;;  %v8934_v62 = vpop.f32.mrb[46].mxu0 }
 0x5e1   : > { %v1951_v63 = vadd.f32 %v8934_v62, %v7650_v61  ;;  %v1945_v1 = vpop.f32.mrb[47].mxu0  ;;  %9034 = vmatmul.mubr.msk.f32.gmra.mrb[44].mxu1 %vm673_vm1, %v10357_v31 }
 0x5e2   : > { %v1946_v7 = vadd.f32 %v7650_v61, %v1945_v1  ;;  %9461 = vmatprep.subr.bf16.mxu0 %v9460_v58  ;;  %9036 = vmatprep.mubr.msk.f32.mxu1 %vm673_vm1, %v10380_v41  ;;  %v7719_v1 = vld [vmem:[%s12496_s7 + $0x6] ss:$0 sm:$0xff] }
 0x5e3   : > { %9463 = vmatpush3.bf16.msra.mxu0 %v9460_v58 }
 0x5e4   : > { %v9464_v8 = vpack.c.bf16 %v1951_v63, %v1946_v7 }
 0x5e5   : > { %9037 = vmatmul.mubr.msk.f32.gmra.mrb[46].mxu1 %vm673_vm1, %v10374_v40 }
 0x5e6   : > { %9465 = vmatprep.subr.bf16.mxu0 %v9464_v8  ;;  %9047 = vmatprep.mubr.msk.f32.mxu1 %vm673_vm1, %v10316_v6 }
 0x5e7   : > { %9467 = vmatpush3.bf16.msra.mxu0 %v9464_v8 }
 0x5e9   : > { %9048 = vmatmul.mubr.msk.f32.vlgmr.msra.gmra.mrb[48].mxu1 %vm673_vm1, %v10311_v4 }
 0x5ea   : > { %9050 = vmatprep.mubr.msk.f32.mxu1 %vm673_vm1, %v10340_v19 }
 0x5ed   : > { %9051 = vmatmul.mubr.msk.f32.gmra.mrb[50].mxu1 %vm673_vm1, %v10331_v17 }
 0x5ee   : > { %9053 = vmatprep.mubr.msk.f32.mxu1 %vm673_vm1, %v10366_v33 }
 0x5f1   : > { %9054 = vmatmul.mubr.msk.f32.gmra.mrb[52].mxu1 %vm673_vm1, %v10357_v31 }
 0x5f2   : > { %9056 = vmatprep.mubr.msk.f32.mxu1 %vm673_vm1, %v10380_v41 }
 0x5f5   : > { %9057 = vmatmul.mubr.msk.f32.gmra.mrb[54].mxu1 %vm673_vm1, %v10374_v40 }
 0x69c   : > { %v8953_v9 = vpop.f32.mrb[32].mxu1 }
 0x69d   : > { %v10764_v11 = vadd.f32 %v8953_v9, %v10506_v57  ;;  %v2068_v15 = vpop.f32.mrb[33].mxu1 }
 0x69e   : > { %v10767_v16 = vadd.f32 %v2068_v15, %v10501_v43 }
 0x69f   : > { %v2110_v18 = vsel %vm1381_vm4, %v10764_v11, -inf }
 0x6a0   : > { %2111 = vmax.xlane.f32.xlu1 %v2110_v18  ;;  %v8956_v21 = vpop.f32.mrb[34].mxu1  ;;  %v2107_v23 = vsel %vm1381_vm4, %v10767_v16, -inf }
 0x6a1   : > { %v10774_v59 = vadd.f32 %v8956_v21, %v10524_v0  ;;  %v2078_v27 = vpop.f32.mrb[35].mxu1  ;;  %2108 = vmax.xlane.f32.xlu0 %v2107_v23 }
 0x6a2   : > { %v10777_v28 = vadd.f32 %v2078_v27, %v10514_v60 }
 0x6a3   : > { %v2116_v29 = vsel %vm1381_vm4, %v10774_v59, -inf }
 0x6a4   : > { %2117 = vmax.xlane.f32.xlu1 %v2116_v29  ;;  %v8959_v2 = vpop.f32.mrb[36].mxu1  ;;  %v2113_v61 = vsel %vm1381_vm4, %v10777_v28, -inf }
 0x6a5   : > { %v10784_v30 = vadd.f32 %v8959_v2, %v10544_v10  ;;  %v2088_v32 = vpop.f32.mrb[37].mxu1  ;;  %2114 = vmax.xlane.f32.xlu0 %v2113_v61 }
 0x6a6   : > { %v10787_v34 = vadd.f32 %v2088_v32, %v10532_v3 }
 0x6a7   : > { %v2122_v35 = vsel %vm1381_vm4, %v10784_v30, -inf }
 0x6a8   : > { %2123 = vmax.xlane.f32.xlu1 %v2122_v35  ;;  %v8962_v5 = vpop.f32.mrb[38].mxu1  ;;  %v2119_v12 = vsel %vm1381_vm4, %v10787_v34, -inf }
 0x6a9   : > { %v10794_v36 = vadd.f32 %v8962_v5, %v10564_v20  ;;  %v2098_v37 = vpop.f32.mrb[39].mxu1  ;;  %2120 = vmax.xlane.f32.xlu0 %v2119_v12 }
 0x6aa   : > { %v10797_v38 = vadd.f32 %v2098_v37, %v10552_v13 }
 0x6ab   : > { %v2128_v14 = vsel %vm1381_vm4, %v10794_v36, -inf }
 0x6ac   : > { %2129 = vmax.xlane.f32.xlu1 %v2128_v14  ;;  %v9029_v39 = vpop.f32.mrb[40].mxu1  ;;  %v2125_v42 = vsel %vm1381_vm4, %v10797_v38, -inf }
 0x6ad   : > { %v2663_v45 = vpop.f32.mrb[41].mxu1  ;;  %2126 = vmax.xlane.f32.xlu0 %v2125_v42 }
 0x6ae   : > { %v2664_v44 = vadd.f32 %v10804_v22, %v2663_v45 }
 0x6b0   : > { %v9032_v55 = vpop.f32.mrb[42].mxu1  ;;  %9095 = vmatprep.mubr.msk.f32.mxu1 %vm1227_vm2, %v2664_v44 }
 0x6b1   : > { %v2673_v53 = vpop.f32.mrb[43].mxu1 }
 0x6b4   : > { %v9035_v56 = vpop.f32.mrb[44].mxu1 }
 0x6b5   : > { %v2683_v58 = vpop.f32.mrb[45].mxu1 }
 0x6b8   : > { %v9038_v62 = vpop.f32.mrb[46].mxu1 }
 0x6b9   : > { %v2693_v63 = vpop.f32.mrb[47].mxu1 }
 0x6bc   : > { %v9049_v7 = vpop.f32.mrb[48].mxu1 }
 0x6bd   : > { %v2787_v8 = vadd.f32 %v9049_v7, %v7719_v1  ;;  %v2781_v9 = vpop.f32.mrb[49].mxu1  ;;  %v7775_v7 = vld [vmem:[%s12498_s9 + $0x60] sm:$0xff] }
 0x6be   : > { %v2782_v15 = vadd.f32 %v7719_v1, %v2781_v9  ;;  %v7777_v9 = vld [vmem:[%s12498_s9 + $0x70] sm:$0xff] }
 0x6c0   : > { %v9492_v18 = vpack.c.bf16 %v2787_v8, %v2782_v15  ;;  %v9052_v21 = vpop.f32.mrb[50].mxu1  ;;  %v7778_v15 = vld [vmem:[%s12498_s9 + $0x78] sm:$0xff] }
 0x6c1   : > { %v2797_v23 = vadd.f32 %v9052_v21, %v7719_v1  ;;  %v2791_v27 = vpop.f32.mrb[51].mxu1  ;;  %v9536_v21 = vpack.c.bf16 %v7778_v15, %v7777_v9 }
 0x6c2   : > { %v2792_v29 = vadd.f32 %v7719_v1, %v2791_v27  ;;  %9494 = vmatprep.subr.msk.bf16.mxu1 %vm10419_vm3, %v9492_v18  ;;  %v7803_v27 = vld [vmem:[%s12498_s9 + $0x160] sm:$0xff] }
 0x6c3   : > { %9497 = vmatpush3.bf16.xpose.msk.msra.mxu1 %vm10419_vm3, %v9492_v18  ;;  %v2669_v18 = vadd.f32 %v9029_v39, %v10804_v22 }
 0x6c4   : > { %v9498_v2 = vpack.c.bf16 %v2797_v23, %v2792_v29  ;;  %v9055_v61 = vpop.f32.mrb[52].mxu1  ;;  %v2674_v23 = vadd.f32 %v10804_v22, %v2673_v53  ;;  %v7804_v29 = vld [vmem:[%s12498_s9 + $0x168] sm:$0xff]  ;;  %v2689_v53 = vadd.f32 %v9035_v56, %v10804_v22 }
 0x6c5   : > { %v2807_v32 = vadd.f32 %v9055_v61, %v7719_v1  ;;  %v2801_v35 = vpop.f32.mrb[53].mxu1  ;;  %v9548_v39 = vpack.c.bf16 %v7804_v29, %v7803_v27  ;;  %v2684_v61 = vadd.f32 %v10804_v22, %v2683_v58  ;;  %v7805_v58 = vld [vmem:[%s12498_s9 + $0x170] sm:$0xff] }
 0x6c6   : > { %v2802_v5 = vadd.f32 %v7719_v1, %v2801_v35  ;;  %9500 = vmatprep.subr.msk.bf16.mxu1 %vm10419_vm3, %v9498_v2  ;;  %v7806_v35 = vld [vmem:[%s12498_s9 + $0x178] sm:$0xff] }
 0x6c7   : > { %v9552_v56 = vpack.c.bf16 %v7806_v35, %v7805_v58 }
 0x6c8   : > { %v9504_v12 = vpack.c.bf16 %v2807_v32, %v2802_v5  ;;  %v9058_v37 = vpop.f32.mrb[54].mxu1  ;;  %v2694_v32 = vadd.f32 %v10804_v22, %v2693_v63 }
 0x6c9   : > { %v2817_v14 = vadd.f32 %v9058_v37, %v7719_v1  ;;  %v2811_v42 = vpop.f32.mrb[55].mxu1 }
 0x6ca   : > { %v2812_v45 = vadd.f32 %v7719_v1, %v2811_v42  ;;  %v7776_v1 = vld [vmem:[%s12498_s9 + $0x68] sm:$0xff] }
 0x6cb   : > { %9503 = vmatpush3.bf16.xpose.msk.msra.mxu1 %vm10419_vm3, %v9498_v2  ;;  %v9532_v8 = vpack.c.bf16 %v7776_v1, %v7775_v7  ;;  %v2679_v2 = vadd.f32 %v9032_v55, %v10804_v22  ;;  %v2699_v55 = vadd.f32 %v9038_v62, %v10804_v22 }
 0x6cc   : > { %v9510_v44 = vpack.c.bf16 %v2817_v14, %v2812_v45  ;;  %9506 = vmatprep.subr.msk.bf16.mxu1 %vm10419_vm3, %v9504_v12 }
 0x6d3   : > { %9509 = vmatpush3.bf16.xpose.msk.msra.mxu1 %vm10419_vm3, %v9504_v12 }
 0x6d4   : > { %9512 = vmatprep.subr.msk.bf16.mxu1 %vm10419_vm3, %v9510_v44 }
 0x6db   : > { %9515 = vmatpush3.bf16.xpose.msk.msra.mxu1 %vm10419_vm3, %v9510_v44 }
 0x6dc   : > { %9533 = vmatprep.subr.bf16.mxu1 %v9532_v8 }
 0x6e2   : > { %9096 = vmatmul.mubr.msk.f32.vlgmr.msra.gmra.mrb[56].mxu1 %vm1227_vm2, %v2669_v18 }
 0x6e3   : > { %9098 = vmatprep.mubr.msk.f32.mxu1 %vm1227_vm2, %v2674_v23  ;;  %9535 = vmatpush3.bf16.msra.mxu1 %v9532_v8 }
 0x6e4   : > { %9537 = vmatprep.subr.bf16.mxu1 %v9536_v21 }
 0x6e6   : > { %9099 = vmatmul.mubr.msk.f32.gmra.mrb[58].mxu1 %vm1227_vm2, %v2679_v2 }
 0x6e7   : > { %9101 = vmatprep.mubr.msk.f32.mxu1 %vm1227_vm2, %v2684_v61  ;;  %9539 = vmatpush3.bf16.msra.mxu1 %v9536_v21 }
 0x6e8   : > { %9549 = vmatprep.subr.bf16.mxu1 %v9548_v39 }
 0x6ea   : > { %9102 = vmatmul.mubr.msk.f32.gmra.mrb[60].mxu1 %vm1227_vm2, %v2689_v53 }
 0x6eb   : > { %9104 = vmatprep.mubr.msk.f32.mxu1 %vm1227_vm2, %v2694_v32 }
 0x6ee   : > { %9105 = vmatmul.mubr.msk.f32.gmra.mrb[62].mxu1 %vm1227_vm2, %v2699_v55 }
 0x6ef   : > { %9157 = vmatprep.mubr.msk.f32.mxu1 %vm673_vm1, %v10316_v6 }
 0x6f2   : > { %9158 = vmatmul.mubr.msk.f32.vlgmr.msra.gmra.mrb[64].mxu1 %vm673_vm1, %v10311_v4 }
 0x6f3   : > { %9160 = vmatprep.mubr.msk.f32.mxu1 %vm673_vm1, %v10340_v19  ;;  %9551 = vmatpush3.bf16.msra.mxu1 %v9548_v39 }
 0x6f4   : > { %9553 = vmatprep.subr.bf16.mxu1 %v9552_v56 }
 0x6f6   : > { %9161 = vmatmul.mubr.msk.f32.gmra.mrb[66].mxu1 %vm673_vm1, %v10331_v17 }
 0x6f7   : > { %9163 = vmatprep.mubr.msk.f32.mxu1 %vm673_vm1, %v10366_v33  ;;  %9555 = vmatpush3.bf16.msra.mxu1 %v9552_v56 }
 0x6fa   : > { %9164 = vmatmul.mubr.msk.f32.gmra.mrb[68].mxu1 %vm673_vm1, %v10357_v31 }
 0x6fb   : > { %9166 = vmatprep.mubr.msk.f32.mxu1 %vm673_vm1, %v10380_v41 }
 0x6fe   : > { %9167 = vmatmul.mubr.msk.f32.gmra.mrb[70].mxu1 %vm673_vm1, %v10374_v40 }
 0x6ff   : > { %9197 = vmatprep.mubr.msk.f32.mxu1 %vm673_vm1, %v10316_v6 }
 0x702   : > { %9198 = vmatmul.mubr.msk.f32.vlgmr.msra.gmra.mrb[72].mxu1 %vm673_vm1, %v10311_v4 }
 0x703   : > { %9200 = vmatprep.mubr.msk.f32.mxu1 %vm673_vm1, %v10340_v19 }
 0x706   : > { %9201 = vmatmul.mubr.msk.f32.gmra.mrb[74].mxu1 %vm673_vm1, %v10331_v17 }
 0x707   : > { %9203 = vmatprep.mubr.msk.f32.mxu1 %vm673_vm1, %v10366_v33 }
 0x70a   : > { %9204 = vmatmul.mubr.msk.f32.gmra.mrb[76].mxu1 %vm673_vm1, %v10357_v31 }
 0x70b   : > { %9206 = vmatprep.mubr.msk.f32.mxu1 %vm673_vm1, %v10380_v41 }
 0x70e   : > { %9207 = vmatmul.mubr.msk.f32.gmra.mrb[78].mxu1 %vm673_vm1, %v10374_v40 }
 0x72d   : > { %v2112_v22 = vpop.xlane.xlu1 %2111 }
 0x72e   : > { %v2132_v62 = vsub.f32 %v10764_v11, %v2112_v22  ;;  %v2109_v63 = vpop.xlane.xlu0 %2108 }
 0x72f   : > { %v2131_v5 = vsub.f32 %v10767_v16, %v2109_v63 }
 0x730   : > { %v2141_v12 = vmul.f32 1.442695, %v2132_v62 }
 0x731   : > { %v2139_v37 = vmul.f32 1.442695, %v2131_v5  ;;  %v2118_v14 = vpop.xlane.xlu1 %2117 }
 0x732   : > { %9853 = vpow2.f32 %v2141_v12  ;;  %v2134_v42 = vsub.f32 %v10774_v59, %v2118_v14  ;;  %v2115_v45 = vpop.xlane.xlu0 %2114 }
 0x733   : > { %9855 = vpow2.f32 %v2139_v37  ;;  %v2133_v44 = vsub.f32 %v10777_v28, %v2115_v45 }
 0x734   : > { %v2145_v7 = vmul.f32 1.442695, %v2134_v42 }
 0x735   : > { %v2143_v1 = vmul.f32 1.442695, %v2133_v44  ;;  %v2124_v8 = vpop.xlane.xlu1 %2123 }
 0x736   : > { %9857 = vpow2.f32 %v2145_v7  ;;  %v2136_v9 = vsub.f32 %v10784_v30, %v2124_v8  ;;  %v2121_v11 = vpop.xlane.xlu0 %2120 }
 0x737   : > { %9859 = vpow2.f32 %v2143_v1  ;;  %v2135_v16 = vsub.f32 %v10787_v34, %v2121_v11 }
 0x738   : > { %v2149_v15 = vmul.f32 1.442695, %v2136_v9 }
 0x739   : > { %v2147_v18 = vmul.f32 1.442695, %v2135_v16  ;;  %v2130_v21 = vpop.xlane.xlu1 %2129 }
 0x73a   : > { %9861 = vpow2.f32 %v2149_v15  ;;  %v2138_v59 = vsub.f32 %v10794_v36, %v2130_v21  ;;  %v2127_v23 = vpop.xlane.xlu0 %2126 }
 0x73b   : > { %9863 = vpow2.f32 %v2147_v18  ;;  %v2137_v28 = vsub.f32 %v10797_v38, %v2127_v23 }
 0x73c   : > { %v10907_v27 = vpop.eup %9853  ;;  %v2153_v29 = vmul.f32 1.442695, %v2138_v59 }
 0x73d   : > { %v10909_v2 = vpop.eup %9855  ;;  %v2151_v30 = vmul.f32 1.442695, %v2137_v28  ;;  %v2158_v39 = vsel %vm1381_vm4, %v10907_v27, 0.0 }
 0x73e   : > { %9865 = vpow2.f32 %v2153_v29  ;;  %2159 = vadd.xlane.f32.xlu1 %v2158_v39  ;;  %v2155_v34 = vsel %vm1381_vm4, %v10909_v2, 0.0 }
 0x73f   : > { %9867 = vpow2.f32 %v2151_v30  ;;  %2156 = vadd.xlane.f32.xlu0 %v2155_v34 }
 0x740   : > { %v10915_v36 = vpop.eup %9857 }
 0x741   : > { %v10917_v61 = vpop.eup %9859  ;;  %v2164_v38 = vsel %vm1381_vm4, %v10915_v36, 0.0 }
 0x742   : > { %2165 = vadd.xlane.f32.xlu1 %v2164_v38  ;;  %v2161_v53 = vsel %vm1381_vm4, %v10917_v61, 0.0 }
 0x743   : > { %2162 = vadd.xlane.f32.xlu0 %v2161_v53 }
 0x744   : > { %v10923_v32 = vpop.eup %9861 }
 0x745   : > { %v10925_v55 = vpop.eup %9863  ;;  %v2170_v58 = vsel %vm1381_vm4, %v10923_v32, 0.0 }
 0x746   : > { %2171 = vadd.xlane.f32.xlu1 %v2170_v58  ;;  %v2167_v35 = vsel %vm1381_vm4, %v10925_v55, 0.0 }
 0x747   : > { %2168 = vadd.xlane.f32.xlu0 %v2167_v35 }
 0x748   : > { %v10931_v56 = vpop.eup %9865 }
 0x749   : > { %v10933_v22 = vpop.eup %9867  ;;  %v2176_v62 = vsel %vm1381_vm4, %v10931_v56, 0.0 }
 0x74a   : > { %2177 = vadd.xlane.f32.xlu1 %v2176_v62  ;;  %v2173_v63 = vsel %vm1381_vm4, %v10933_v22, 0.0 }
 0x74b   : > { %2174 = vadd.xlane.f32.xlu0 %v2173_v63 }
 0x7b5   : > { %v9097_v5 = vpop.f32.mrb[56].mxu1 }
 0x7b6   : > { %v10940_v12 = vadd.f32 %v9097_v5, %v10506_v57  ;;  %v3052_v37 = vpop.f32.mrb[57].mxu1 }
 0x7b7   : > { %v10943_v14 = vadd.f32 %v3052_v37, %v10501_v43 }
 0x7b8   : > { %v3094_v42 = vsel %vm1381_vm4, %v10940_v12, -inf }
 0x7b9   : > { %3095 = vmax.xlane.f32.xlu1 %v3094_v42  ;;  %v9100_v45 = vpop.f32.mrb[58].mxu1  ;;  %v3091_v44 = vsel %vm1381_vm4, %v10943_v14, -inf }
 0x7ba   : > { %v10950_v7 = vadd.f32 %v9100_v45, %v10524_v0  ;;  %v3062_v1 = vpop.f32.mrb[59].mxu1  ;;  %3092 = vmax.xlane.f32.xlu0 %v3091_v44 }
 0x7bb   : > { %v10953_v57 = vadd.f32 %v3062_v1, %v10514_v60 }
 0x7bc   : > { %v3100_v43 = vsel %vm1381_vm4, %v10950_v7, -inf }
 0x7bd   : > { %3101 = vmax.xlane.f32.xlu1 %v3100_v43  ;;  %v9103_v8 = vpop.f32.mrb[60].mxu1  ;;  %v3097_v9 = vsel %vm1381_vm4, %v10953_v57, -inf }
 0x7be   : > { %v10960_v11 = vadd.f32 %v9103_v8, %v10544_v10  ;;  %v3072_v16 = vpop.f32.mrb[61].mxu1  ;;  %3098 = vmax.xlane.f32.xlu0 %v3097_v9  ;;  %v7808_v9 = vld [vmem:[%s12496_s7 + $0xb] ss:$0 sm:$0xff] }
 0x7bf   : > { %v10963_v0 = vadd.f32 %v3072_v16, %v10532_v3  ;;  %v10978_v3 = vld [vmem:[%s12496_s7 + $0x3] ss:$0 sm:$0xff] }
 0x7c0   : > { %v3106_v60 = vsel %vm1381_vm4, %v10960_v11, -inf }
 0x7c1   : > { %3107 = vmax.xlane.f32.xlu1 %v3106_v60  ;;  %v9106_v15 = vpop.f32.mrb[62].mxu1  ;;  %v3103_v18 = vsel %vm1381_vm4, %v10963_v0, -inf }
 0x7c2   : > { %v10970_v21 = vadd.f32 %v9106_v15, %v10564_v20  ;;  %v3082_v59 = vpop.f32.mrb[63].mxu1  ;;  %3104 = vmax.xlane.f32.xlu0 %v3103_v18 }
 0x7c3   : > { %v10973_v10 = vadd.f32 %v3082_v59, %v10552_v13 }
 0x7c4   : > { %v3112_v23 = vsel %vm1381_vm4, %v10970_v21, -inf }
 0x7c5   : > { %3113 = vmax.xlane.f32.xlu1 %v3112_v23  ;;  %v9159_v28 = vpop.f32.mrb[64].mxu1  ;;  %v3109_v29 = vsel %vm1381_vm4, %v10973_v10, -inf }
 0x7c6   : > { %v10985_v20 = vadd.f32 %v9159_v28, %v10978_v3  ;;  %v10987_v30 = vpop.f32.mrb[65].mxu1  ;;  %3110 = vmax.xlane.f32.xlu0 %v3109_v29 }
 0x7c9   : > { %v9162_v13 = vpop.f32.mrb[66].mxu1 }
 0x7ca   : > { %v10990_v39 = vadd.f32 %v9162_v13, %v10978_v3  ;;  %v3536_v34 = vpop.f32.mrb[67].mxu1 }
 0x7cb   : > { %v10993_v38 = vadd.f32 %v10978_v3, %v3536_v34  ;;  %v2160_v53 = vpop.xlane.xlu1 %2159 }
 0x7cc   : > { %9869 = vrcp.f32 %v2160_v53  ;;  %v2157_v58 = vpop.xlane.xlu0 %2156 }
 0x7cd   : > { %9871 = vrcp.f32 %v2157_v58  ;;  %v9165_v35 = vpop.f32.mrb[68].mxu1 }
 0x7ce   : > { %v10996_v62 = vadd.f32 %v9165_v35, %v10978_v3  ;;  %v3546_v63 = vpop.f32.mrb[69].mxu1 }
 0x7cf   : > { %v10999_v5 = vadd.f32 %v10978_v3, %v3546_v63  ;;  %v2166_v37 = vpop.xlane.xlu1 %2165 }
 0x7d0   : > { %9873 = vrcp.f32 %v2166_v37  ;;  %v2163_v42 = vpop.xlane.xlu0 %2162 }
 0x7d1   : > { %9875 = vrcp.f32 %v2163_v42  ;;  %v9168_v45 = vpop.f32.mrb[70].mxu1 }
 0x7d2   : > { %v11002_v44 = vadd.f32 %v9168_v45, %v10978_v3  ;;  %v3556_v1 = vpop.f32.mrb[71].mxu1 }
 0x7d3   : > { %v11005_v43 = vadd.f32 %v10978_v3, %v3556_v1  ;;  %v2172_v8 = vpop.xlane.xlu1 %2171 }
 0x7d4   : > { %9877 = vrcp.f32 %v2172_v8  ;;  %v2169_v16 = vpop.xlane.xlu0 %2168 }
 0x7d5   : > { %9879 = vrcp.f32 %v2169_v16  ;;  %v9199_v60 = vpop.f32.mrb[72].mxu1 }
 0x7d6   : > { %v9870_v15 = vpop.eup %9869  ;;  %v3768_v18 = vadd.f32 %v9199_v60, %v7808_v9  ;;  %v3762_v59 = vpop.f32.mrb[73].mxu1 }
 0x7d7   : > { %v9872_v23 = vpop.eup %9871  ;;  %v3763_v28 = vadd.f32 %v7808_v9, %v3762_v59  ;;  %v2178_v29 = vpop.xlane.xlu1 %2177  ;;  %v2188_v53 = vmul.f32 %v9870_v15, %v10907_v27 }
 0x7d8   : > { %9881 = vrcp.f32 %v2178_v29  ;;  %v2175_v13 = vpop.xlane.xlu0 %2174  ;;  %v2187_v34 = vmul.f32 %v9872_v23, %v10909_v2 }
 0x7d9   : > { %v9580_v58 = vpack.c.bf16 %v3768_v18, %v3763_v28  ;;  %9883 = vrcp.f32 %v2175_v13  ;;  %v9202_v35 = vpop.f32.mrb[74].mxu1 }
 0x7da   : > { %v9874_v63 = vpop.eup %9873  ;;  %v3778_v37 = vadd.f32 %v9202_v35, %v7808_v9  ;;  %8979 = vmatprep.mubr.msk.f32.mxu0 %vm1381_vm4, %v2187_v34  ;;  %v3772_v42 = vpop.f32.mrb[75].mxu1 }
 0x7db   : > { %v9876_v45 = vpop.eup %9875  ;;  %v3773_v1 = vadd.f32 %v7808_v9, %v3772_v42  ;;  %8980 = vmatmul.mubr.msk.f32.vlgmr.msra.gmra.mrb[48].mxu0 %vm1381_vm4, %v2188_v53  ;;  %9581 = vmatprep.subr.bf16.mxu1 %v9580_v58  ;;  %v2190_v27 = vmul.f32 %v9874_v63, %v10915_v36 }
 0x7dc   : > { %9583 = vmatpush3.bf16.msra.mxu1 %v9580_v58  ;;  %v2189_v8 = vmul.f32 %v9876_v45, %v10917_v61 }
 0x7dd   : > { %v9584_v16 = vpack.c.bf16 %v3778_v37, %v3773_v1  ;;  %v9205_v2 = vpop.f32.mrb[76].mxu1 }
 0x7de   : > { %v9878_v60 = vpop.eup %9877  ;;  %v3788_v15 = vadd.f32 %v9205_v2, %v7808_v9  ;;  %8982 = vmatprep.mubr.msk.f32.mxu0 %vm1381_vm4, %v2189_v8  ;;  %v3782_v18 = vpop.f32.mrb[77].mxu1 }
 0x7df   : > { %v9880_v59 = vpop.eup %9879  ;;  %v3783_v23 = vadd.f32 %v7808_v9, %v3782_v18  ;;  %8983 = vmatmul.mubr.msk.f32.gmra.mrb[50].mxu0 %vm1381_vm4, %v2190_v27  ;;  %9585 = vmatprep.subr.bf16.mxu1 %v9584_v16  ;;  %v2192_v61 = vmul.f32 %v9878_v60, %v10923_v32 }
 0x7e0   : > { %9587 = vmatpush3.bf16.msra.mxu1 %v9584_v16  ;;  %v2191_v28 = vmul.f32 %v9880_v59, %v10925_v55  ;;  %v7683_v55 = vld [vmem:[%s12499_s10 + $0x8] sm:$0xff] }
 0x7e1   : > { %v9588_v29 = vpack.c.bf16 %v3788_v15, %v3783_v23  ;;  %v9208_v13 = vpop.f32.mrb[78].mxu1  ;;  %8991 = vmatprep.subr.mxu0 %v7683_v55 }
 0x7e2   : > { %v9882_v34 = vpop.eup %9881  ;;  %v3798_v53 = vadd.f32 %v9208_v13, %v7808_v9  ;;  %8985 = vmatprep.mubr.msk.f32.mxu0 %vm1381_vm4, %v2191_v28  ;;  %v3792_v36 = vpop.f32.mrb[79].mxu1  ;;  %8992 = vmatpush3.msra.mxu0 %v7683_v55 }
 0x7e3   : > { %v9884_v58 = vpop.eup %9883  ;;  %v3793_v35 = vadd.f32 %v7808_v9, %v3792_v36  ;;  %8986 = vmatmul.mubr.msk.f32.gmra.mrb[52].mxu0 %vm1381_vm4, %v2192_v61  ;;  %9589 = vmatprep.subr.bf16.mxu1 %v9588_v29  ;;  %v2194_v32 = vmul.f32 %v9882_v34, %v10931_v56  ;;  %v11032_v9 = vld [vmem:[%s12499_s10] sm:$0xff] }
 0x7e4   : > { %9591 = vmatpush3.bf16.msra.mxu1 %v9588_v29  ;;  %v2193_v63 = vmul.f32 %v9884_v58, %v10933_v22  ;;  %9005 = vmatprep.subr.mxu0 %v11032_v9 }
 0x7e5   : > { %v9592_v37 = vpack.c.bf16 %v3798_v53, %v3793_v35 }
 0x7e6   : > { %8988 = vmatprep.mubr.msk.f32.mxu0 %vm1381_vm4, %v2193_v63 }
 0x7e7   : > { %8989 = vmatmul.mubr.msk.f32.gmra.mrb[54].mxu0 %vm1381_vm4, %v2194_v32  ;;  %9593 = vmatprep.subr.bf16.mxu1 %v9592_v37 }
 0x7e8   : > { %9595 = vmatpush3.bf16.msra.mxu1 %v9592_v37 }
 0x846   : > { %v3096_v22 = vpop.xlane.xlu1 %3095 }
 0x847   : > { %v3116_v42 = vsub.f32 %v10940_v12, %v3096_v22  ;;  %v3093_v45 = vpop.xlane.xlu0 %3092 }
 0x848   : > { %v3115_v56 = vsub.f32 %v10943_v14, %v3093_v45 }
 0x849   : > { %v3125_v1 = vmul.f32 1.442695, %v3116_v42 }
 0x84a   : > { %v3123_v8 = vmul.f32 1.442695, %v3115_v56  ;;  %v3102_v16 = vpop.xlane.xlu1 %3101 }
 0x84b   : > { %9885 = vpow2.f32 %v3125_v1  ;;  %v3118_v2 = vsub.f32 %v10950_v7, %v3102_v16  ;;  %v3099_v27 = vpop.xlane.xlu0 %3098  ;;  %v7729_v16 = vld [vmem:[%s12498_s9 + $0x148] sm:$0xff] }
 0x84c   : > { %9887 = vpow2.f32 %v3123_v8  ;;  %v3117_v60 = vsub.f32 %v10953_v57, %v3099_v27  ;;  %v7728_v8 = vld [vmem:[%s12498_s9 + $0x140] sm:$0xff] }
 0x84d   : > { %v3129_v15 = vmul.f32 1.442695, %v3118_v2 }
 0x84e   : > { %v3127_v18 = vmul.f32 1.442695, %v3117_v60  ;;  %v3108_v59 = vpop.xlane.xlu1 %3107  ;;  %v9484_v60 = vpack.c.bf16 %v7729_v16, %v7728_v8 }
 0x84f   : > { %9889 = vpow2.f32 %v3129_v15  ;;  %v3120_v23 = vsub.f32 %v10960_v11, %v3108_v59  ;;  %v3105_v12 = vpop.xlane.xlu0 %3104 }
 0x850   : > { %9891 = vpow2.f32 %v3127_v18  ;;  %v3119_v14 = vsub.f32 %v10963_v0, %v3105_v12 }
 0x851   : > { %v3133_v28 = vmul.f32 1.442695, %v3120_v23 }
 0x852   : > { %v3131_v29 = vmul.f32 1.442695, %v3119_v14  ;;  %v3114_v13 = vpop.xlane.xlu1 %3113 }
 0x853   : > { %9893 = vpow2.f32 %v3133_v28  ;;  %v3122_v7 = vsub.f32 %v10970_v21, %v3114_v13  ;;  %v3111_v61 = vpop.xlane.xlu0 %3110  ;;  %v7731_v28 = vld [vmem:[%s12498_s9 + $0x158] sm:$0xff] }
 0x854   : > { %9895 = vpow2.f32 %v3131_v29  ;;  %v3121_v57 = vsub.f32 %v10973_v10, %v3111_v61 }
 0x855   : > { %v11043_v34 = vpop.eup %9885  ;;  %v3137_v53 = vmul.f32 1.442695, %v3122_v7 }
 0x856   : > { %v11045_v36 = vpop.eup %9887  ;;  %v3135_v11 = vmul.f32 1.442695, %v3121_v57  ;;  %v3142_v58 = vsel %vm1381_vm4, %v11043_v34, 0.0 }
 0x857   : > { %9897 = vpow2.f32 %v3137_v53  ;;  %3143 = vadd.xlane.f32.xlu1 %v3142_v58  ;;  %v3139_v0 = vsel %vm1381_vm4, %v11045_v36, 0.0 }
 0x858   : > { %9899 = vpow2.f32 %v3135_v11  ;;  %3140 = vadd.xlane.f32.xlu0 %v3139_v0 }
 0x859   : > { %v11051_v21 = vpop.eup %9889 }
 0x85a   : > { %v11053_v35 = vpop.eup %9891  ;;  %v3148_v10 = vsel %vm1381_vm4, %v11051_v21, 0.0 }
 0x85b   : > { %3149 = vadd.xlane.f32.xlu1 %v3148_v10  ;;  %v3145_v63 = vsel %vm1381_vm4, %v11053_v35, 0.0 }
 0x85c   : > { %3146 = vadd.xlane.f32.xlu0 %v3145_v63 }
 0x85d   : > { %v11059_v55 = vpop.eup %9893 }
 0x85e   : > { %v11061_v37 = vpop.eup %9895  ;;  %v3154_v32 = vsel %vm1381_vm4, %v11059_v55, 0.0 }
 0x85f   : > { %3155 = vadd.xlane.f32.xlu1 %v3154_v32  ;;  %v3151_v22 = vsel %vm1381_vm4, %v11061_v37, 0.0 }
 0x860   : > { %3152 = vadd.xlane.f32.xlu0 %v3151_v22 }
 0x861   : > { %v11067_v42 = vpop.eup %9897 }
 0x862   : > { %v11069_v45 = vpop.eup %9899  ;;  %v3160_v56 = vsel %vm1381_vm4, %v11067_v42, 0.0 }
 0x863   : > { %3161 = vadd.xlane.f32.xlu1 %v3160_v56  ;;  %v3157_v1 = vsel %vm1381_vm4, %v11069_v45, 0.0 }
 0x864   : > { %3158 = vadd.xlane.f32.xlu0 %v3157_v1 }
 0x8ae   : > { %v8981_v2 = vpop.f32.mrb[48].mxu0 }
 0x8af   : > { %v2285_v27 = vpop.f32.mrb[49].mxu0 }
 0x8b0   : > { %8993 = vmatprep.mubr.msk.f32.mxu0 %vm1227_vm2, %v2285_v27 }
 0x8b1   : > { %8994 = vmatmul.mubr.msk.f32.vlgmr.msra.gmra.mrb[56].mxu0 %vm1227_vm2, %v8981_v2 }
 0x8b2   : > { %v8984_v15 = vpop.f32.mrb[50].mxu0  ;;  %9006 = vmatpush3.msra.mxu0 %v11032_v9  ;;  %v7730_v9 = vld [vmem:[%s12498_s9 + $0x150] sm:$0xff] }
 0x8b3   : > { %v2295_v18 = vpop.f32.mrb[51].mxu0  ;;  %9485 = vmatprep.subr.bf16.mxu0 %v9484_v60  ;;  %v9488_v29 = vpack.c.bf16 %v7731_v28, %v7730_v9 }
 0x8b4   : > { %8996 = vmatprep.mubr.msk.f32.mxu0 %vm1227_vm2, %v2295_v18 }
 0x8b5   : > { %8997 = vmatmul.mubr.msk.f32.gmra.mrb[58].mxu0 %vm1227_vm2, %v8984_v15 }
 0x8b6   : > { %v8987_v59 = vpop.f32.mrb[52].mxu0 }
 0x8b7   : > { %v2305_v23 = vpop.f32.mrb[53].mxu0 }
 0x8b8   : > { %8999 = vmatprep.mubr.msk.f32.mxu0 %vm1227_vm2, %v2305_v23 }
 0x8b9   : > { %9000 = vmatmul.mubr.msk.f32.gmra.mrb[60].mxu0 %vm1227_vm2, %v8987_v59 }
 0x8ba   : > { %v8990_v12 = vpop.f32.mrb[54].mxu0 }
 0x8bb   : > { %v2315_v14 = vpop.f32.mrb[55].mxu0 }
 0x8bc   : > { %9002 = vmatprep.mubr.msk.f32.mxu0 %vm1227_vm2, %v2315_v14 }
 0x8bd   : > { %9003 = vmatmul.mubr.msk.f32.gmra.mrb[62].mxu0 %vm1227_vm2, %v8990_v12  ;;  %v7766_v12 = vld [vmem:[%s12499_s10 + $0x10] sm:$0xff] }
 0x8be   : > { %9007 = vmatprep.mubr.msk.f32.mxu0 %vm1227_vm2, %v10685_v46 }
 0x8c1   : > { %9008 = vmatmul.mubr.msk.f32.vlgmr.msra.gmra.mrb[56].mxu0 %vm1227_vm2, %v10683_v26 }
 0x8c2   : > { %9010 = vmatprep.mubr.msk.f32.mxu0 %vm1227_vm2, %v10689_v48  ;;  %9487 = vmatpush3.bf16.msra.mxu0 %v9484_v60 }
 0x8c3   : > { %9489 = vmatprep.subr.bf16.mxu0 %v9488_v29 }
 0x8c5   : > { %9011 = vmatmul.mubr.msk.f32.gmra.mrb[58].mxu0 %vm1227_vm2, %v10687_v47 }
 0x8c6   : > { %9013 = vmatprep.mubr.msk.f32.mxu0 %vm1227_vm2, %v10693_v50  ;;  %9491 = vmatpush3.bf16.msra.mxu0 %v9488_v29 }
 0x8c9   : > { %9014 = vmatmul.mubr.msk.f32.gmra.mrb[60].mxu0 %vm1227_vm2, %v10691_v49  ;;  %v7733_v49 = vld [vmem:[%s12496_s7 + $0xa] ss:$0 sm:$0xff] }
 0x8ca   : > { %9016 = vmatprep.mubr.msk.f32.mxu0 %vm1227_vm2, %v10697_v54 }
 0x8cd   : > { %9017 = vmatmul.mubr.msk.f32.gmra.mrb[62].mxu0 %vm1227_vm2, %v10695_v52 }
 0x8ce   : > { %9067 = vmatprep.mubr.msk.f32.mxu0 %vm673_vm1, %v10316_v6 }
 0x8d1   : > { %9068 = vmatmul.mubr.msk.f32.vlgmr.msra.gmra.mrb[64].mxu0 %vm673_vm1, %v10311_v4 }
 0x8d2   : > { %9070 = vmatprep.mubr.msk.f32.mxu0 %vm673_vm1, %v10340_v19 }
 0x8d5   : > { %9071 = vmatmul.mubr.msk.f32.gmra.mrb[66].mxu0 %vm673_vm1, %v10331_v17 }
 0x8d6   : > { %9073 = vmatprep.mubr.msk.f32.mxu0 %vm673_vm1, %v10366_v33 }
 0x8d9   : > { %9074 = vmatmul.mubr.msk.f32.gmra.mrb[68].mxu0 %vm673_vm1, %v10357_v31 }
 0x8da   : > { %9076 = vmatprep.mubr.msk.f32.mxu0 %vm673_vm1, %v10380_v41 }
 0x8dd   : > { %9077 = vmatmul.mubr.msk.f32.gmra.mrb[70].mxu0 %vm673_vm1, %v10374_v40 }
 0x8e4   : > { %v3144_v48 = vpop.xlane.xlu1 %3143 }
 0x8e5   : > { %v3141_v26 = vpop.xlane.xlu0 %3140 }
 0x8e6   : > { %9901 = vrcp.f32 %v3141_v26 }
 0x8e7   : > { %9903 = vrcp.f32 %v3144_v48 }
 0x8e8   : > { %v3150_v61 = vpop.xlane.xlu1 %3149 }
 0x8e9   : > { %v3147_v52 = vpop.xlane.xlu0 %3146 }
 0x8ea   : > { %9905 = vrcp.f32 %v3147_v52 }
 0x8eb   : > { %9907 = vrcp.f32 %v3150_v61 }
 0x8ec   : > { %v3156_v56 = vpop.xlane.xlu1 %3155 }
 0x8f0   : > { %v9902_v46 = vpop.eup %9901  ;;  %v3162_v18 = vpop.xlane.xlu1 %3161 }
 0x8f1   : > { %v3171_v47 = vmul.f32 %v9902_v46, %v11045_v36  ;;  %v3153_v36 = vpop.xlane.xlu0 %3152  ;;  %v9904_v23 = vpop.eup %9903 }
 0x8f2   : > { %9909 = vrcp.f32 %v3153_v36  ;;  %v3172_v9 = vmul.f32 %v9904_v23, %v11043_v34  ;;  %v3527_v36 = vadd.f32 %v10978_v3, %v10987_v30 }
 0x8f3   : > { %9123 = vmatprep.mubr.msk.f32.mxu0 %vm1381_vm4, %v3171_v47  ;;  %9911 = vrcp.f32 %v3156_v56 }
 0x8f4   : > { %v9906_v14 = vpop.eup %9905 }
 0x8f5   : > { %v3159_v2 = vpop.xlane.xlu0 %3158  ;;  %v9908_v28 = vpop.eup %9907  ;;  %v3173_v29 = vmul.f32 %v9906_v14, %v11053_v35 }
 0x8f6   : > { %9913 = vrcp.f32 %v3159_v2  ;;  %v3174_v46 = vmul.f32 %v9908_v28, %v11051_v21  ;;  %v7789_v21 = vld [vmem:[%s12498_s9 + $0xe0] sm:$0xff] }
 0x8f7   : > { %9915 = vrcp.f32 %v3162_v18 }
 0x8fc   : > { %v9910_v26 = vpop.eup %9909 }
 0x8fd   : > { %v9912_v47 = vpop.eup %9911  ;;  %v3175_v48 = vmul.f32 %v9910_v26, %v11061_v37  ;;  %v7790_v37 = vld [vmem:[%s12498_s9 + $0xe8] sm:$0xff] }
 0x8fe   : > { %v3176_v34 = vmul.f32 %v9912_v47, %v11059_v55  ;;  %v9540_v55 = vpack.c.bf16 %v7790_v37, %v7789_v21 }
 0x9a4   : > { %v9069_v50 = vpop.f32.mrb[64].mxu0 }
 0x9a5   : > { %v2905_v54 = vadd.f32 %v9069_v50, %v7733_v49  ;;  %v2899_v13 = vpop.f32.mrb[65].mxu0 }
 0x9a6   : > { %v2900_v7 = vadd.f32 %v7733_v49, %v2899_v13 }
 0x9a8   : > { %v9516_v57 = vpack.c.bf16 %v2905_v54, %v2900_v7  ;;  %v9072_v53 = vpop.f32.mrb[66].mxu0 }
 0x9a9   : > { %v2915_v11 = vadd.f32 %v9072_v53, %v7733_v49  ;;  %v2909_v58 = vpop.f32.mrb[67].mxu0 }
 0x9aa   : > { %v2910_v0 = vadd.f32 %v7733_v49, %v2909_v58  ;;  %9517 = vmatprep.subr.bf16.mxu0 %v9516_v57 }
 0x9ab   : > { %9519 = vmatpush3.bf16.msra.mxu0 %v9516_v57 }
 0x9ac   : > { %v9520_v10 = vpack.c.bf16 %v2915_v11, %v2910_v0  ;;  %v9075_v63 = vpop.f32.mrb[68].mxu0 }
 0x9ad   : > { %v2925_v32 = vadd.f32 %v9075_v63, %v7733_v49  ;;  %v2919_v22 = vpop.f32.mrb[69].mxu0 }
 0x9ae   : > { %v2920_v1 = vadd.f32 %v7733_v49, %v2919_v22  ;;  %9521 = vmatprep.subr.bf16.mxu0 %v9520_v10 }
 0x9af   : > { %9523 = vmatpush3.bf16.msra.mxu0 %v9520_v10  ;;  %v7794_v10 = vld [vmem:[%s12496_s7 + $0x7] ss:$0 sm:$0xff] }
 0x9b0   : > { %v9524_v8 = vpack.c.bf16 %v2925_v32, %v2920_v1  ;;  %v9078_v16 = vpop.f32.mrb[70].mxu0 }
 0x9b1   : > { %v2935_v27 = vadd.f32 %v9078_v16, %v7733_v49  ;;  %v2929_v60 = vpop.f32.mrb[71].mxu0 }
 0x9b2   : > { %v2930_v15 = vadd.f32 %v7733_v49, %v2929_v60  ;;  %9525 = vmatprep.subr.bf16.mxu0 %v9524_v8  ;;  %v9914_v49 = vpop.eup %9913 }
 0x9b3   : > { %9527 = vmatpush3.bf16.msra.mxu0 %v9524_v8  ;;  %v9916_v50 = vpop.eup %9915  ;;  %v3177_v35 = vmul.f32 %v9914_v49, %v11069_v45  ;;  %v7791_v45 = vld [vmem:[%s12498_s9 + $0xf0] sm:$0xff] }
 0x9b4   : > { %v9528_v59 = vpack.c.bf16 %v2935_v27, %v2930_v15  ;;  %v3178_v52 = vmul.f32 %v9916_v50, %v11067_v42  ;;  %v7792_v42 = vld [vmem:[%s12498_s9 + $0xf8] sm:$0xff] }
 0x9b5   : > { %v9544_v7 = vpack.c.bf16 %v7792_v42, %v7791_v45 }
 0x9b6   : > { %9529 = vmatprep.subr.bf16.mxu0 %v9528_v59 }
 0x9b7   : > { %9531 = vmatpush3.bf16.msra.mxu0 %v9528_v59 }
 0x9b8   : > { %9135 = vmatprep.subr.mxu0 %v7766_v12 }
 0x9ba   : > { %9124 = vmatmul.mubr.msk.f32.vlgmr.msra.gmra.mrb[72].mxu0 %vm1381_vm4, %v3172_v9 }
 0x9bb   : > { %9126 = vmatprep.mubr.msk.f32.mxu0 %vm1381_vm4, %v3173_v29  ;;  %9136 = vmatpush3.msra.mxu0 %v7766_v12 }
 0x9bc   : > { %9541 = vmatprep.subr.bf16.mxu0 %v9540_v55 }
 0x9be   : > { %9127 = vmatmul.mubr.msk.f32.gmra.mrb[74].mxu0 %vm1381_vm4, %v3174_v46 }
 0x9bf   : > { %9129 = vmatprep.mubr.msk.f32.mxu0 %vm1381_vm4, %v3175_v48  ;;  %v9986_v48 = vld [vmem:[%s12492_s3 + $0x10] sm:$0xff] }
 0x9c2   : > { %9130 = vmatmul.mubr.msk.f32.gmra.mrb[76].mxu0 %vm1381_vm4, %v3176_v34 }
 0x9c3   : > { %9132 = vmatprep.mubr.msk.f32.mxu0 %vm1381_vm4, %v3177_v35 }
 0x9c6   : > { %9133 = vmatmul.mubr.msk.f32.gmra.mrb[78].mxu0 %vm1381_vm4, %v3178_v52  ;;  %v9987_v52 = vld [vmem:[%s12492_s3 + $0x28] sm:$0xff] }
 0xa8d   : > { %v9125_v54 = vpop.f32.mrb[72].mxu0 }
 0xa8e   : > { %v3269_v13 = vpop.f32.mrb[73].mxu0 }
 0xa8f   : > { %9137 = vmatprep.mubr.msk.f32.mxu0 %vm1227_vm2, %v3269_v13 }
 0xa90   : > { %9138 = vmatmul.mubr.msk.f32.vlgmr.msra.gmra.mrb[56].mxu0 %vm1227_vm2, %v9125_v54 }
 0xa91   : > { %v9128_v61 = vpop.f32.mrb[74].mxu0  ;;  %9543 = vmatpush3.bf16.msra.mxu0 %v9540_v55  ;;  %v9988_v55 = vld [vmem:[%s12492_s3 + $0x20] sm:$0xff] }
 0xa92   : > { %v3279_v57 = vpop.f32.mrb[75].mxu0  ;;  %9545 = vmatprep.subr.bf16.mxu0 %v9544_v7 }
 0xa93   : > { %9140 = vmatprep.mubr.msk.f32.mxu0 %vm1227_vm2, %v3279_v57 }
 0xa94   : > { %9141 = vmatmul.mubr.msk.f32.gmra.mrb[58].mxu0 %vm1227_vm2, %v9128_v61 }
 0xa95   : > { %v9131_v53 = vpop.f32.mrb[76].mxu0  ;;  %9547 = vmatpush3.bf16.msra.mxu0 %v9544_v7  ;;  %v9989_v7 = vld [vmem:[%s12492_s3 + $0x38] sm:$0xff] }
 0xa96   : > { %v3289_v11 = vpop.f32.mrb[77].mxu0 }
 0xa97   : > { %9143 = vmatprep.mubr.msk.f32.mxu0 %vm1227_vm2, %v3289_v11 }
 0xa98   : > { %9144 = vmatmul.mubr.msk.f32.gmra.mrb[60].mxu0 %vm1227_vm2, %v9131_v53  ;;  %v9990_v53 = vld [vmem:[%s12492_s3 + $0x30] sm:$0xff] }
 0xa99   : > { %v9134_v58 = vpop.f32.mrb[78].mxu0 }
 0xa9a   : > { %v3299_v0 = vpop.f32.mrb[79].mxu0 }
 0xa9b   : > { %9146 = vmatprep.mubr.msk.f32.mxu0 %vm1227_vm2, %v3299_v0 }
 0xa9c   : > { %9147 = vmatmul.mubr.msk.f32.gmra.mrb[62].mxu0 %vm1227_vm2, %v9134_v58 }
 0xa9d   : > { %9177 = vmatprep.mubr.msk.f32.mxu0 %vm673_vm1, %v10316_v6 }
 0xaa0   : > { %9178 = vmatmul.mubr.msk.f32.vlgmr.msra.gmra.mrb[80].mxu0 %vm673_vm1, %v10311_v4 }
 0xaa1   : > { %9180 = vmatprep.mubr.msk.f32.mxu0 %vm673_vm1, %v10340_v19 }
 0xaa4   : > { %9181 = vmatmul.mubr.msk.f32.gmra.mrb[82].mxu0 %vm673_vm1, %v10331_v17 }
 0xaa5   : > { %9183 = vmatprep.mubr.msk.f32.mxu0 %vm673_vm1, %v10366_v33 }
 0xaa8   : > { %9184 = vmatmul.mubr.msk.f32.gmra.mrb[84].mxu0 %vm673_vm1, %v10357_v31 }
 0xaa9   : > { %9186 = vmatprep.mubr.msk.f32.mxu0 %vm673_vm1, %v10380_v41 }
 0xaac   : > { %9187 = vmatmul.mubr.msk.f32.gmra.mrb[86].mxu0 %vm673_vm1, %v10374_v40 }
 0xaad   : > { %9225 = vmatprep.mubr.msk.f32.mxu0 %vm1227_vm2, %v3527_v36 }
 0xb73   : > { %v9179_v63 = vpop.f32.mrb[80].mxu0 }
 0xb74   : > { %v3650_v32 = vadd.f32 %v9179_v63, %v7794_v10  ;;  %v3644_v22 = vpop.f32.mrb[81].mxu0 }
 0xb75   : > { %v3645_v56 = vadd.f32 %v7794_v10, %v3644_v22 }
 0xb77   : > { %v9556_v1 = vpack.c.bf16 %v3650_v32, %v3645_v56  ;;  %v9182_v8 = vpop.f32.mrb[82].mxu0 }
 0xb78   : > { %v3660_v16 = vadd.f32 %v9182_v8, %v7794_v10  ;;  %v3654_v2 = vpop.f32.mrb[83].mxu0 }
 0xb79   : > { %v3655_v27 = vadd.f32 %v7794_v10, %v3654_v2  ;;  %9558 = vmatprep.subr.msk.bf16.mxu0 %vm10419_vm3, %v9556_v1 }
 0xb7a   : > { %9561 = vmatpush3.bf16.xpose.msk.msra.mxu0 %vm10419_vm3, %v9556_v1 }
 0xb7b   : > { %v9562_v3 = vpack.c.bf16 %v3660_v16, %v3655_v27  ;;  %v9185_v30 = vpop.f32.mrb[84].mxu0 }
 0xb7c   : > { %v3670_v60 = vadd.f32 %v9185_v30, %v7794_v10  ;;  %v3664_v15 = vpop.f32.mrb[85].mxu0 }
 0xb7d   : > { %v3665_v18 = vadd.f32 %v7794_v10, %v3664_v15  ;;  %9564 = vmatprep.subr.msk.bf16.mxu0 %vm10419_vm3, %v9562_v3 }
 0xb7f   : > { %v9568_v59 = vpack.c.bf16 %v3670_v60, %v3665_v18  ;;  %v9188_v23 = vpop.f32.mrb[86].mxu0 }
 0xb80   : > { %v3680_v12 = vadd.f32 %v9188_v23, %v7794_v10  ;;  %v3674_v14 = vpop.f32.mrb[87].mxu0 }
 0xb81   : > { %v3675_v9 = vadd.f32 %v7794_v10, %v3674_v14 }
 0xb82   : > { %9567 = vmatpush3.bf16.xpose.msk.msra.mxu0 %vm10419_vm3, %v9562_v3 }
 0xb83   : > { %v9574_v28 = vpack.c.bf16 %v3680_v12, %v3675_v9  ;;  %9570 = vmatprep.subr.msk.bf16.mxu0 %vm10419_vm3, %v9568_v59 }
 0xb8a   : > { %9573 = vmatpush3.bf16.xpose.msk.msra.mxu0 %vm10419_vm3, %v9568_v59 }
 0xb8b   : > { %9576 = vmatprep.subr.msk.bf16.mxu0 %vm10419_vm3, %v9574_v28 }
 0xb92   : > { %9579 = vmatpush3.bf16.xpose.msk.msra.mxu0 %vm10419_vm3, %v9574_v28 }
 0xb99   : > { %9226 = vmatmul.mubr.msk.f32.vlgmr.msra.gmra.mrb[88].mxu0 %vm1227_vm2, %v10985_v20  ;;  %v9983_v20 = vld [vmem:[%s12492_s3 + $0x8] sm:$0xff] }
 0xb9a   : > { %9228 = vmatprep.mubr.msk.f32.mxu0 %vm1227_vm2, %v10993_v38 }
 0xb9d   : > { %9229 = vmatmul.mubr.msk.f32.gmra.mrb[90].mxu0 %vm1227_vm2, %v10990_v39  ;;  %v9984_v39 = vld [vmem:[%s12492_s3] sm:$0xff] }
 0xb9e   : > { %9231 = vmatprep.mubr.msk.f32.mxu0 %vm1227_vm2, %v10999_v5 }
 0xba1   : > { %9232 = vmatmul.mubr.msk.f32.gmra.mrb[92].mxu0 %vm1227_vm2, %v10996_v62 }
 0xba2   : > { %9234 = vmatprep.mubr.msk.f32.mxu0 %vm1227_vm2, %v11005_v43 }
 0xba5   : > { %9235 = vmatmul.mubr.msk.f32.gmra.mrb[94].mxu0 %vm1227_vm2, %v11002_v44  ;;  %v9985_v44 = vld [vmem:[%s12492_s3 + $0x18] sm:$0xff] }
 0xc6c   : > { %v9227_v51 = vpop.f32.mrb[88].mxu0 }
 0xc6d   : > { %v3921_v38 = vadd.f32 %v9983_v20, %v9227_v51  ;;  %v3915_v29 = vpop.f32.mrb[89].mxu0 }
 0xc6e   : > { %v3916_v5 = vadd.f32 %v9984_v39, %v3915_v29 }
 0xc6f   : > { %v3957_v62 = vsel %vm1381_vm4, %v3921_v38, -inf }
 0xc70   : > { %3958 = vmax.xlane.f32.xlu1 %v3957_v62  ;;  %v9230_v26 = vpop.f32.mrb[90].mxu0  ;;  %v3954_v43 = vsel %vm1381_vm4, %v3916_v5, -inf }
 0xc71   : > { %v3931_v46 = vadd.f32 %v9985_v44, %v9230_v26  ;;  %v3925_v47 = vpop.f32.mrb[91].mxu0  ;;  %3955 = vmax.xlane.f32.xlu0 %v3954_v43 }
 0xc72   : > { %v3926_v49 = vadd.f32 %v9986_v48, %v3925_v47 }
 0xc73   : > { %v3963_v34 = vsel %vm1381_vm4, %v3931_v46, -inf }
 0xc74   : > { %3964 = vmax.xlane.f32.xlu1 %v3963_v34  ;;  %v9233_v50 = vpop.f32.mrb[92].mxu0  ;;  %v3960_v35 = vsel %vm1381_vm4, %v3926_v49, -inf }
 0xc75   : > { %v3941_v21 = vadd.f32 %v9987_v52, %v9233_v50  ;;  %v3935_v37 = vpop.f32.mrb[93].mxu0  ;;  %3961 = vmax.xlane.f32.xlu0 %v3960_v35 }
 0xc76   : > { %v3936_v45 = vadd.f32 %v9988_v55, %v3935_v37 }
 0xc77   : > { %v3969_v42 = vsel %vm1381_vm4, %v3941_v21, -inf }
 0xc78   : > { %3970 = vmax.xlane.f32.xlu1 %v3969_v42  ;;  %v9236_v54 = vpop.f32.mrb[94].mxu0  ;;  %v3966_v13 = vsel %vm1381_vm4, %v3936_v45, -inf }
 0xc79   : > { %v3951_v61 = vadd.f32 %v9989_v7, %v9236_v54  ;;  %v3945_v57 = vpop.f32.mrb[95].mxu0  ;;  %3967 = vmax.xlane.f32.xlu0 %v3966_v13 }
 0xc7a   : > { %v3946_v11 = vadd.f32 %v9990_v53, %v3945_v57 }
 0xc7b   : > { %v3975_v58 = vsel %vm1381_vm4, %v3951_v61, -inf }
 0xc7c   : > { %3976 = vmax.xlane.f32.xlu1 %v3975_v58  ;;  %v3972_v0 = vsel %vm1381_vm4, %v3946_v11, -inf }
 0xc7d   : > { %3973 = vmax.xlane.f32.xlu0 %v3972_v0 }
 0xcfd   : > { %v3959_v36 = vpop.xlane.xlu1 %3958 }
 0xcfe   : > { %v3979_v10 = vsub.f32 %v3921_v38, %v3959_v36  ;;  %v3956_v63 = vpop.xlane.xlu0 %3955 }
 0xcff   : > { %v3978_v32 = vsub.f32 %v3916_v5, %v3956_v63 }
 0xd00   : > { %v3988_v22 = vmul.f32 1.442695, %v3979_v10 }
 0xd01   : > { %v3986_v56 = vmul.f32 1.442695, %v3978_v32  ;;  %v3965_v1 = vpop.xlane.xlu1 %3964 }
 0xd02   : > { %9917 = vpow2.f32 %v3988_v22  ;;  %v3981_v8 = vsub.f32 %v3931_v46, %v3965_v1  ;;  %v3962_v16 = vpop.xlane.xlu0 %3961 }
 0xd03   : > { %9919 = vpow2.f32 %v3986_v56  ;;  %v3980_v2 = vsub.f32 %v3926_v49, %v3962_v16 }
 0xd04   : > { %v3992_v27 = vmul.f32 1.442695, %v3981_v8 }
 0xd05   : > { %v3990_v3 = vmul.f32 1.442695, %v3980_v2  ;;  %v3971_v30 = vpop.xlane.xlu1 %3970 }
 0xd06   : > { %9921 = vpow2.f32 %v3992_v27  ;;  %v3983_v60 = vsub.f32 %v3941_v21, %v3971_v30  ;;  %v3968_v15 = vpop.xlane.xlu0 %3967  ;;  %v7841_v21 = vld [vmem:[%s12499_s10 + $0x18] sm:$0xff] }
 0xd07   : > { %9923 = vpow2.f32 %v3990_v3  ;;  %v3982_v18 = vsub.f32 %v3936_v45, %v3968_v15  ;;  %9265 = vmatprep.subr.mxu0 %v7841_v21 }
 0xd08   : > { %v3996_v59 = vmul.f32 1.442695, %v3983_v60  ;;  %9266 = vmatpush3.msra.mxu0 %v7841_v21 }
 0xd09   : > { %v3994_v23 = vmul.f32 1.442695, %v3982_v18  ;;  %v3977_v12 = vpop.xlane.xlu1 %3976 }
 0xd0a   : > { %9925 = vpow2.f32 %v3996_v59  ;;  %v3985_v14 = vsub.f32 %v3951_v61, %v3977_v12  ;;  %v3974_v9 = vpop.xlane.xlu0 %3973 }
 0xd0b   : > { %9927 = vpow2.f32 %v3994_v23  ;;  %v3984_v28 = vsub.f32 %v3946_v11, %v3974_v9  ;;  %v11287_v9 = vld [vmem:[%s12495_s6] sm:$0xff] }
 0xd0c   : > { %v9918_v51 = vpop.eup %9917  ;;  %v4000_v20 = vmul.f32 1.442695, %v3985_v14  ;;  %v11282_v14 = vsub.s32 1, %v10237_v24 }
 0xd0d   : > { %v9920_v38 = vpop.eup %9919  ;;  %v3998_v29 = vmul.f32 1.442695, %v3984_v28  ;;  %v4005_v39 = vsel %vm1381_vm4, %v9918_v51, 0.0 }
 0xd0e   : > { %9929 = vpow2.f32 %v4000_v20  ;;  %4006 = vadd.xlane.f32.xlu1 %v4005_v39  ;;  %v4002_v5 = vsel %vm1381_vm4, %v9920_v38, 0.0  ;;  %v4313_v28 = vrot.slane %v11287_v9, %v11282_v14 }
 0xd0f   : > { %9931 = vpow2.f32 %v3998_v29  ;;  %4003 = vadd.xlane.f32.xlu0 %v4002_v5 }
 0xd10   : > { %v9922_v62 = vpop.eup %9921 }
 0xd11   : > { %v9924_v26 = vpop.eup %9923  ;;  %v4011_v43 = vsel %vm1381_vm4, %v9922_v62, 0.0 }
 0xd12   : > { %4012 = vadd.xlane.f32.xlu1 %v4011_v43  ;;  %v4008_v44 = vsel %vm1381_vm4, %v9924_v26, 0.0 }
 0xd13   : > { %4009 = vadd.xlane.f32.xlu0 %v4008_v44 }
 0xd14   : > { %v9926_v46 = vpop.eup %9925 }
 0xd15   : > { %v9928_v47 = vpop.eup %9927  ;;  %v4017_v48 = vsel %vm1381_vm4, %v9926_v46, 0.0 }
 0xd16   : > { %4018 = vadd.xlane.f32.xlu1 %v4017_v48  ;;  %v4014_v49 = vsel %vm1381_vm4, %v9928_v47, 0.0 }
 0xd17   : > { %4015 = vadd.xlane.f32.xlu0 %v4014_v49 }
 0xd18   : > { %v9930_v34 = vpop.eup %9929 }
 0xd19   : > { %v9932_v50 = vpop.eup %9931  ;;  %v4023_v35 = vsel %vm1381_vm4, %v9930_v34, 0.0 }
 0xd1a   : > { %4024 = vadd.xlane.f32.xlu1 %v4023_v35  ;;  %v4020_v52 = vsel %vm1381_vm4, %v9932_v50, 0.0 }
 0xd1b   : > { %4021 = vadd.xlane.f32.xlu0 %v4020_v52 }
 0xd9b   : > { %v4007_v37 = vpop.xlane.xlu1 %4006 }
 0xd9c   : > { %9933 = vrcp.f32 %v4007_v37  ;;  %v4004_v55 = vpop.xlane.xlu0 %4003 }
 0xd9d   : > { %9935 = vrcp.f32 %v4004_v55 }
 0xd9f   : > { %v4013_v45 = vpop.xlane.xlu1 %4012 }
 0xda0   : > { %9937 = vrcp.f32 %v4013_v45  ;;  %v4010_v42 = vpop.xlane.xlu0 %4009 }
 0xda1   : > { %9939 = vrcp.f32 %v4010_v42 }
 0xda3   : > { %v4019_v54 = vpop.xlane.xlu1 %4018 }
 0xda4   : > { %9941 = vrcp.f32 %v4019_v54  ;;  %v4016_v13 = vpop.xlane.xlu0 %4015 }
 0xda5   : > { %9943 = vrcp.f32 %v4016_v13 }
 0xda6   : > { %v9934_v7 = vpop.eup %9933 }
 0xda7   : > { %v9936_v61 = vpop.eup %9935  ;;  %v4025_v57 = vpop.xlane.xlu1 %4024  ;;  %v4035_v58 = vmul.f32 %v9934_v7, %v9918_v51 }
 0xda8   : > { %9945 = vrcp.f32 %v4025_v57  ;;  %v4022_v53 = vpop.xlane.xlu0 %4021  ;;  %v4034_v11 = vmul.f32 %v9936_v61, %v9920_v38 }
 0xda9   : > { %9947 = vrcp.f32 %v4022_v53 }
 0xdaa   : > { %v9938_v0 = vpop.eup %9937  ;;  %9253 = vmatprep.mubr.msk.f32.mxu1 %vm1381_vm4, %v4034_v11 }
 0xdab   : > { %v9940_v36 = vpop.eup %9939  ;;  %9254 = vmatmul.mubr.msk.f32.vlgmr.msra.gmra.mrb[80].mxu1 %vm1381_vm4, %v4035_v58  ;;  %v4037_v63 = vmul.f32 %v9938_v0, %v9922_v62 }
 0xdac   : > { %v4036_v10 = vmul.f32 %v9940_v36, %v9924_v26 }
 0xdae   : > { %v9942_v32 = vpop.eup %9941  ;;  %9256 = vmatprep.mubr.msk.f32.mxu1 %vm1381_vm4, %v4036_v10 }
 0xdaf   : > { %v9944_v22 = vpop.eup %9943  ;;  %9257 = vmatmul.mubr.msk.f32.gmra.mrb[82].mxu1 %vm1381_vm4, %v4037_v63  ;;  %v4039_v1 = vmul.f32 %v9942_v32, %v9926_v46 }
 0xdb0   : > { %v4038_v56 = vmul.f32 %v9944_v22, %v9928_v47 }
 0xdb2   : > { %v9946_v8 = vpop.eup %9945  ;;  %9259 = vmatprep.mubr.msk.f32.mxu1 %vm1381_vm4, %v4038_v56 }
 0xdb3   : > { %v9948_v16 = vpop.eup %9947  ;;  %9260 = vmatmul.mubr.msk.f32.gmra.mrb[84].mxu1 %vm1381_vm4, %v4039_v1  ;;  %v4041_v27 = vmul.f32 %v9946_v8, %v9930_v34 }
 0xdb4   : > { %v4040_v2 = vmul.f32 %v9948_v16, %v9932_v50 }
 0xdb6   : > { %9262 = vmatprep.mubr.msk.f32.mxu1 %vm1381_vm4, %v4040_v2 }
 0xdb7   : > { %9263 = vmatmul.mubr.msk.f32.gmra.mrb[86].mxu1 %vm1381_vm4, %v4041_v27 }
 0xe7e   : > { %v9255_v3 = vpop.f32.mrb[80].mxu1 }
 0xe7f   : > { %v4132_v30 = vpop.f32.mrb[81].mxu1 }
 0xe80   : > { %9267 = vmatprep.mubr.msk.f32.mxu0 %vm1227_vm2, %v4132_v30 }
 0xe81   : > { %9268 = vmatmul.mubr.msk.f32.vlgmr.msra.gmra.mrb[56].mxu0 %vm1227_vm2, %v9255_v3 }
 0xe82   : > { %v9258_v60 = vpop.f32.mrb[82].mxu1 }
 0xe83   : > { %v4142_v15 = vpop.f32.mrb[83].mxu1 }
 0xe84   : > { %9270 = vmatprep.mubr.msk.f32.mxu0 %vm1227_vm2, %v4142_v15 }
 0xe85   : > { %9271 = vmatmul.mubr.msk.f32.gmra.mrb[58].mxu0 %vm1227_vm2, %v9258_v60 }
 0xe86   : > { %v9261_v18 = vpop.f32.mrb[84].mxu1 }
 0xe87   : > { %v4152_v59 = vpop.f32.mrb[85].mxu1 }
 0xe88   : > { %9273 = vmatprep.mubr.msk.f32.mxu0 %vm1227_vm2, %v4152_v59 }
 0xe89   : > { %9274 = vmatmul.mubr.msk.f32.gmra.mrb[60].mxu0 %vm1227_vm2, %v9261_v18 }
 0xe8a   : > { %v9264_v23 = vpop.f32.mrb[86].mxu1 }
 0xe8b   : > { %v4162_v12 = vpop.f32.mrb[87].mxu1 }
 0xe8c   : > { %9276 = vmatprep.mubr.msk.f32.mxu0 %vm1227_vm2, %v4162_v12 }
 0xe8d   : > { %9277 = vmatmul.mubr.msk.f32.gmra.mrb[62].mxu0 %vm1227_vm2, %v9264_v23 }
 0xf54   : > { %v9269_v51 = vpop.f32.mrb[56].mxu0 }
 0xf55   : > { %v4315_v20 = vadd.f32 %v9269_v51, %v4313_v28  ;;  %v4263_v38 = vpop.f32.mrb[57].mxu0 }
 0xf56   : > { %v4314_v29 = vadd.f32 %v4313_v28, %v4263_v38 }
 0xf57   : > { %v4323_v39 = vadd.f32 %v4315_v20, %v10311_v4 }
 0xf58   : > { %v9272_v5 = vpop.f32.mrb[58].mxu0  ;;  %v4322_v62 = vadd.f32 %v4314_v29, %v10316_v6 }
 0xf59   : > { %v4317_v26 = vadd.f32 %v9272_v5, %v4313_v28  ;;  %v4273_v43 = vpop.f32.mrb[59].mxu0  ;;  %v4333_v44 = vsel %vm673_vm1, %v4323_v39, 0.0 }
 0xf5a   : > { %v4316_v46 = vadd.f32 %v4313_v28, %v4273_v43  ;;  %4334 = vadd.xlane.f32.xlu1 %v4333_v44  ;;  %v4330_v47 = vsel %vm673_vm1, %v4322_v62, 0.0 }
 0xf5b   : > { %4331 = vadd.xlane.f32.xlu0 %v4330_v47  ;;  %v4325_v48 = vadd.f32 %v4317_v26, %v10331_v17 }
 0xf5c   : > { %v9275_v49 = vpop.f32.mrb[60].mxu0  ;;  %v4324_v34 = vadd.f32 %v4316_v46, %v10340_v19 }
 0xf5d   : > { %v4319_v50 = vadd.f32 %v9275_v49, %v4313_v28  ;;  %v4283_v35 = vpop.f32.mrb[61].mxu0  ;;  %v4339_v4 = vsel %vm673_vm1, %v4325_v48, 0.0  ;;  %v4471_v49 = vld [vmem:[%s12500_s11 + $0x40] sm:$0xff] }
 0xf5e   : > { %v4318_v52 = vadd.f32 %v4313_v28, %v4283_v35  ;;  %4340 = vadd.xlane.f32.xlu1 %v4339_v4  ;;  %v4336_v6 = vsel %vm673_vm1, %v4324_v34, 0.0  ;;  %v4472_v35 = vld [vmem:[%s12500_s11 + $0x48] sm:$0xff] }
 0xf5f   : > { %4337 = vadd.xlane.f32.xlu0 %v4336_v6  ;;  %v4327_v21 = vadd.f32 %v4319_v50, %v10357_v31 }
 0xf60   : > { %v9278_v37 = vpop.f32.mrb[62].mxu0  ;;  %v4326_v55 = vadd.f32 %v4318_v52, %v10366_v33 }
 0xf61   : > { %v4321_v45 = vadd.f32 %v9278_v37, %v4313_v28  ;;  %v4293_v42 = vpop.f32.mrb[63].mxu0  ;;  %v4345_v17 = vsel %vm673_vm1, %v4327_v21, 0.0  ;;  %v4487_v37 = vld [vmem:[%s12500_s11 + $0xc0] sm:$0xff] }
 0xf62   : > { %v4320_v54 = vadd.f32 %v4313_v28, %v4293_v42  ;;  %4346 = vadd.xlane.f32.xlu1 %v4345_v17  ;;  %v4342_v19 = vsel %vm673_vm1, %v4326_v55, 0.0  ;;  %v4488_v42 = vld [vmem:[%s12500_s11 + $0xc8] sm:$0xff] }
 0xf63   : > { %4343 = vadd.xlane.f32.xlu0 %v4342_v19  ;;  %v4329_v13 = vadd.f32 %v4321_v45, %v10374_v40 }
 0xf64   : > { %v4328_v7 = vadd.f32 %v4320_v54, %v10380_v41 }
 0xf65   : > { %v4351_v61 = vsel %vm673_vm1, %v4329_v13, 0.0 }
 0xf66   : > { %4352 = vadd.xlane.f32.xlu1 %v4351_v61  ;;  %v4348_v31 = vsel %vm673_vm1, %v4328_v7, 0.0  ;;  %v11381_v61 = vld [vmem:[%s12500_s11 + $0x50] sm:$0xff] }
 0xf67   : > { %4349 = vadd.xlane.f32.xlu0 %v4348_v31  ;;  %v11386_v31 = vld [vmem:[%s12500_s11 + $0x18] sm:$0xff] }
 0xfe7   : > { %v4335_v33 = vpop.xlane.xlu1 %4334 }
 0xfe8   : > { %v4356_v57 = vmul.f32 0.03125, %v4335_v33  ;;  %v4332_v53 = vpop.xlane.xlu0 %4331 }
 0xfe9   : > { %v4355_v11 = vmul.f32 0.03125, %v4332_v53  ;;  %v11395_v53 = vld [vmem:[%s12500_s11 + $0x58] sm:$0xff] }
 0xfea   : > { %v11307_v58 = vsub.f32 %v4323_v39, %v4356_v57 }
 0xfeb   : > { %v11309_v0 = vsub.f32 %v4322_v62, %v4355_v11  ;;  %v4341_v36 = vpop.xlane.xlu1 %4340  ;;  %v7856_v11 = vcombine.low %v11386_v31, %v11395_v53 }
 0xfec   : > { %v4358_v10 = vmul.f32 0.03125, %v4341_v36  ;;  %v4338_v63 = vpop.xlane.xlu0 %4337  ;;  %v4372_v40 = vmul.f32 %v11307_v58, %v11307_v58  ;;  %v7857_v36 = vcombine.high %v11386_v31, %v11395_v53 }
 0xfed   : > { %v4357_v41 = vmul.f32 0.03125, %v4338_v63  ;;  %v4371_v32 = vmul.f32 %v11309_v0, %v11309_v0 }
 0xfee   : > { %v11315_v22 = vsub.f32 %v4325_v48, %v4358_v10  ;;  %v4382_v56 = vsel %vm673_vm1, %v4372_v40, 0.0  ;;  %v4463_v48 = vld [vmem:[%s12500_s11] sm:$0xff] }
 0xfef   : > { %v11318_v1 = vsub.f32 %v4324_v34, %v4357_v41  ;;  %v4347_v8 = vpop.xlane.xlu1 %4346  ;;  %4383 = vadd.xlane.f32.xlu1 %v4382_v56  ;;  %v4379_v16 = vsel %vm673_vm1, %v4371_v32, 0.0  ;;  %v4464_v34 = vld [vmem:[%s12500_s11 + $0x8] sm:$0xff]  ;;  %v7851_v50 = vcombine.high %v4463_v48, %v4471_v49  ;;  %v7850_v4 = vcombine.low %v4463_v48, %v4471_v49 }
 0xff0   : > { %v4360_v2 = vmul.f32 0.03125, %v4347_v8  ;;  %4380 = vadd.xlane.f32.xlu0 %v4379_v16  ;;  %v4344_v27 = vpop.xlane.xlu0 %4343  ;;  %v4374_v3 = vmul.f32 %v11315_v22, %v11315_v22  ;;  %v7852_v52 = vcombine.low %v4464_v34, %v4472_v35  ;;  %v7853_v6 = vcombine.high %v4464_v34, %v4472_v35 }
 0xff1   : > { %v4359_v30 = vmul.f32 0.03125, %v4344_v27  ;;  %v4373_v60 = vmul.f32 %v11318_v1, %v11318_v1  ;;  %4751 = vmatprep.subr.bf16.mxu1 %v7851_v50 }
 0xff2   : > { %v11325_v15 = vsub.f32 %v4327_v21, %v4360_v2  ;;  %v4388_v18 = vsel %vm673_vm1, %v4374_v3, 0.0  ;;  %4752 = vmatpush1.bf16.msra.mxu1 %v7850_v4  ;;  %4824 = vmatprep.subr.bf16.mxu0 %v7853_v6  ;;  %v4479_v21 = vld [vmem:[%s12500_s11 + $0x80] sm:$0xff] }
 0xff3   : > { %v11328_v59 = vsub.f32 %v4326_v55, %v4359_v30  ;;  %4389 = vadd.xlane.f32.xlu1 %v4388_v18  ;;  %v4353_v23 = vpop.xlane.xlu1 %4352  ;;  %v4385_v12 = vsel %vm673_vm1, %v4373_v60, 0.0  ;;  %v4480_v55 = vld [vmem:[%s12500_s11 + $0x88] sm:$0xff]  ;;  %4825 = vmatpush1.bf16.msra.mxu0 %v7852_v52  ;;  %v7867_v45 = vcombine.high %v4479_v21, %v4487_v37  ;;  %v7866_v17 = vcombine.low %v4479_v21, %v4487_v37 }
 0xff4   : > { %v4362_v28 = vmul.f32 0.03125, %v4353_v23  ;;  %4386 = vadd.xlane.f32.xlu0 %v4385_v12  ;;  %v4350_v51 = vpop.xlane.xlu0 %4349  ;;  %v4376_v20 = vmul.f32 %v11325_v15, %v11325_v15  ;;  %v7868_v54 = vcombine.low %v4480_v55, %v4488_v42  ;;  %v7869_v19 = vcombine.high %v4480_v55, %v4488_v42  ;;  %v4482_v42 = vld [vmem:[%s12500_s11 + $0x98] sm:$0xff] }
 0xff5   : > { %v4361_v38 = vmul.f32 0.03125, %v4350_v51  ;;  %v4375_v29 = vmul.f32 %v11328_v59, %v11328_v59  ;;  %4753 = vmatprep.subr.bf16.mxu1 %v7867_v45  ;;  %v11402_v12 = vsub.s32 2, %v10237_v24  ;;  %v4489_v45 = vld [vmem:[%s12500_s11 + $0xd0] sm:$0xff] }
 0xff6   : > { %v11335_v39 = vsub.f32 %v4329_v13, %v4362_v28  ;;  %v4394_v5 = vsel %vm673_vm1, %v4376_v20, 0.0  ;;  %4826 = vmatprep.subr.bf16.mxu0 %v7869_v19  ;;  %4754 = vmatpush1.bf16.msra.mxu1 %v7866_v17  ;;  %v10057_v13 = vmov 0   ;;  %v11405_v20 = vsub.s32 3, %v10237_v24 }
 0xff7   : > { %v11338_v62 = vsub.f32 %v4328_v7, %v4361_v38  ;;  %4395 = vadd.xlane.f32.xlu1 %v4394_v5  ;;  %v4391_v26 = vsel %vm673_vm1, %v4375_v29, 0.0  ;;  %4827 = vmatpush1.bf16.msra.mxu0 %v7868_v54  ;;  %v11376_v7 = vld [vmem:[%s12500_s11 + $0x10] sm:$0xff] }
 0xff8   : > { %4392 = vadd.xlane.f32.xlu0 %v4391_v26  ;;  %v4378_v43 = vmul.f32 %v11335_v39, %v11335_v39  ;;  %4783 = vmatprep.mubr.bf16.mxu1 %v10057_v13  ;;  %v7854_v33 = vcombine.low %v11376_v7, %v11381_v61  ;;  %v7855_v57 = vcombine.high %v11376_v7, %v11381_v61 }
 0xff9   : > { %v4377_v44 = vmul.f32 %v11338_v62, %v11338_v62  ;;  %4856 = vmatprep.mubr.bf16.mxu0 %v10057_v13  ;;  %4970 = vmatprep.subr.bf16.mxu0 %v7857_v36  ;;  %v11413_v48 = vrot.slane %v11287_v9, %v11405_v20  ;;  %v11453_v36 = vld [vmem:[%s12500_s11 + $0x60] sm:$0xff] }
 0xffa   : > { %v4400_v46 = vsel %vm673_vm1, %v4378_v43, 0.0  ;;  %4897 = vmatprep.subr.bf16.mxu1 %v7855_v57  ;;  %v11409_v43 = vrot.slane %v11287_v9, %v11402_v12  ;;  %v4481_v9 = vld [vmem:[%s12500_s11 + $0x90] sm:$0xff]  ;;  %v11448_v57 = vld [vmem:[%s12500_s11 + $0x20] sm:$0xff] }
 0xffb   : > { %4401 = vadd.xlane.f32.xlu1 %v4400_v46  ;;  %v4397_v47 = vsel %vm673_vm1, %v4377_v44, 0.0 }
 0xffc   : > { %4398 = vadd.xlane.f32.xlu0 %v4397_v47 }
0x107c   : > { %v4384_v10 = vpop.xlane.xlu1 %4383 }
0x107d   : > { %v4404_v63 = vmul.f32 0.03125, %v4384_v10  ;;  %v4381_v40 = vpop.xlane.xlu0 %4380 }
0x107e   : > { %v4403_v41 = vmul.f32 0.03125, %v4381_v40 }
0x107f   : > { %v4412_v32 = vadd.f32 1e-05, %v4404_v63  ;;  %v7871_v63 = vcombine.high %v4481_v9, %v4489_v45 }
0x1080   : > { %v4411_v56 = vadd.f32 1e-05, %v4403_v41  ;;  %v4390_v8 = vpop.xlane.xlu1 %4389  ;;  %v7870_v41 = vcombine.low %v4481_v9, %v4489_v45  ;;  %v4493_v9 = vld [vmem:[%s12500_s11 + $0xf0] sm:$0xff]  ;;  %v4494_v45 = vld [vmem:[%s12500_s11 + $0xf8] sm:$0xff] }
0x1081   : > { %9949 = vrsqrt.f32 %v4412_v32  ;;  %v4406_v16 = vmul.f32 0.03125, %v4390_v8  ;;  %v4387_v2 = vpop.xlane.xlu0 %4386  ;;  %v11462_v32 = vld [vmem:[%s12500_s11 + $0x28] sm:$0xff] }
0x1082   : > { %9951 = vrsqrt.f32 %v4411_v56  ;;  %v4405_v27 = vmul.f32 0.03125, %v4387_v2  ;;  %v11467_v56 = vld [vmem:[%s12500_s11 + $0x68] sm:$0xff]  ;;  %v7859_v2 = vcombine.high %v11448_v57, %v11453_v36 }
0x1083   : > { %v4414_v3 = vadd.f32 1e-05, %v4406_v16  ;;  %v7861_v7 = vcombine.high %v11462_v32, %v11467_v56 }
0x1084   : > { %v4413_v30 = vadd.f32 1e-05, %v4405_v27  ;;  %v4396_v60 = vpop.xlane.xlu1 %4395 }
0x1085   : > { %9953 = vrsqrt.f32 %v4414_v3  ;;  %v4408_v18 = vmul.f32 0.03125, %v4396_v60  ;;  %v4393_v23 = vpop.xlane.xlu0 %4392 }
0x1086   : > { %9955 = vrsqrt.f32 %v4413_v30  ;;  %v4407_v28 = vmul.f32 0.03125, %v4393_v23 }
0x1087   : > { %v4416_v51 = vadd.f32 1e-05, %v4408_v18 }
0x1088   : > { %v4415_v38 = vadd.f32 1e-05, %v4407_v28  ;;  %v4402_v29 = vpop.xlane.xlu1 %4401 }
0x1089   : > { %9957 = vrsqrt.f32 %v4416_v51  ;;  %v4410_v5 = vmul.f32 0.03125, %v4402_v29  ;;  %v4399_v26 = vpop.xlane.xlu0 %4398  ;;  %v4483_v29 = vld [vmem:[%s12500_s11 + $0xa0] sm:$0xff] }
0x108a   : > { %9959 = vrsqrt.f32 %v4415_v38  ;;  %v4409_v44 = vmul.f32 0.03125, %v4399_v26  ;;  %v4484_v26 = vld [vmem:[%s12500_s11 + $0xa8] sm:$0xff] }
0x108b   : > { %v9950_v46 = vpop.eup %9949  ;;  %v4418_v50 = vadd.f32 1e-05, %v4410_v5  ;;  %v4491_v5 = vld [vmem:[%s12500_s11 + $0xe0] sm:$0xff] }
0x108c   : > { %v9952_v47 = vpop.eup %9951  ;;  %v4428_v49 = vmul.f32 %v9950_v46, %v11307_v58  ;;  %v4417_v4 = vadd.f32 1e-05, %v4409_v44  ;;  %v7858_v44 = vcombine.low %v11448_v57, %v11453_v36  ;;  %v7860_v46 = vcombine.low %v11462_v32, %v11467_v56  ;;  %v9693_v36 = vld [vmem:[%s12502_s13 + $0x40] sm:$0xff]   ;;  %v9698_v32 = vld [vmem:[%s12502_s13 + $0xc8] sm:$0xff]  }
0x108d   : > { %v4427_v34 = vmul.f32 %v9952_v47, %v11309_v0  ;;  %9961 = vrsqrt.f32 %v4418_v50  ;;  %v7875_v47 = vcombine.high %v4483_v29, %v4491_v5  ;;  %v4470_v50 = vld [vmem:[%s12500_s11 + $0x38] sm:$0xff]  ;;  %v9699_v56 = vld [vmem:[%s12502_s13 + $0x8] sm:$0xff]  }
0x108e   : > { %v4440_v35 = vmul.f32 %v11409_v43, %v4428_v49  ;;  %9963 = vrsqrt.f32 %v4417_v4  ;;  %v4469_v49 = vld [vmem:[%s12500_s11 + $0x30] sm:$0xff]  ;;  %v7874_v4 = vcombine.low %v4483_v29, %v4491_v5  ;;  %v9715_v29 = vld [vmem:[%s12502_s13 + $0x28] sm:$0xff]  }
0x108f   : > { %v9954_v52 = vpop.eup %9953  ;;  %v4439_v6 = vmul.f32 %v11409_v43, %v4427_v34  ;;  %v4477_v34 = vld [vmem:[%s12500_s11 + $0x70] sm:$0xff]  ;;  %v9716_v5 = vld [vmem:[%s12502_s13 + $0xa8] sm:$0xff]  }
0x1090   : > { %v9956_v21 = vpop.eup %9955  ;;  %v11420_v37 = vadd.f32 %v11413_v48, %v4440_v35  ;;  %v4430_v55 = vmul.f32 %v9954_v52, %v11315_v22  ;;  %v4490_v22 = vld [vmem:[%s12500_s11 + $0xd8] sm:$0xff] }
0x1091   : > { %v11427_v58 = vadd.f32 %v11413_v48, %v4439_v6  ;;  %v4429_v0 = vmul.f32 %v9956_v21, %v11318_v1  ;;  %v7873_v40 = vcombine.high %v4482_v42, %v4490_v22  ;;  %v7872_v16 = vcombine.low %v4482_v42, %v4490_v22  ;;  %v4478_v35 = vld [vmem:[%s12500_s11 + $0x78] sm:$0xff] }
0x1092   : > { %v4442_v17 = vmul.f32 %v11409_v43, %v4430_v55  ;;  %v7863_v6 = vcombine.high %v4469_v49, %v4477_v34  ;;  %v7865_v21 = vcombine.high %v4470_v50, %v4478_v35  ;;  %v4485_v55 = vld [vmem:[%s12500_s11 + $0xb0] sm:$0xff]  ;;  %v7862_v42 = vcombine.low %v4469_v49, %v4477_v34  ;;  %v9725_v49 = vld [vmem:[%s12502_s13 + $0x140] sm:$0xff]  }
0x1093   : > { %v9958_v54 = vpop.eup %9957  ;;  %v11442_v1 = vpack.c.bf16 %v11420_v37, %v11427_v58  ;;  %v4441_v19 = vmul.f32 %v11409_v43, %v4429_v0  ;;  %v4486_v0 = vld [vmem:[%s12500_s11 + $0xb8] sm:$0xff]  ;;  %v7864_v22 = vcombine.low %v4470_v50, %v4478_v35  ;;  %v11752_v34 = vld [vmem:[%s12501_s12] sm:$0xff] }
0x1094   : > { %v9960_v10 = vpop.eup %9959  ;;  %v11470_v8 = vadd.f32 %v11413_v48, %v4442_v17  ;;  %v4432_v3 = vmul.f32 %v9958_v54, %v11325_v15  ;;  %v7879_v17 = vcombine.high %v4485_v55, %v4493_v9  ;;  %v7881_v54 = vcombine.high %v4486_v0, %v4494_v45 }
0x1095   : > { %7882 = vmatmul.mubr.msk.bf16.vlgmr.msra.gmra.mrb[88].mxu1 %vm673_vm1, %v11442_v1  ;;  %7886 = vmatmul.mubr.msk.bf16.vlgmr.msra.gmra.mrb[96].mxu0 %vm673_vm1, %v11442_v1  ;;  %v11479_v27 = vadd.f32 %v11413_v48, %v4441_v19  ;;  %v4431_v30 = vmul.f32 %v9960_v10, %v11328_v59  ;;  %v7878_v19 = vcombine.low %v4485_v55, %v4493_v9  ;;  %v9694_v10 = vld [vmem:[%s12502_s13 + $0xc0] sm:$0xff]  }
0x1096   : > { %4898 = vmatpush1.bf16.msra.mxu1 %v7854_v33  ;;  %4793 = vmatprep.mubr.bf16.mxu1 %v10057_v13  ;;  %v4444_v15 = vmul.f32 %v11409_v43, %v4432_v3  ;;  %v7880_v57 = vcombine.low %v4486_v0, %v4494_v45  ;;  %v9703_v3 = vld [vmem:[%s12502_s13 + $0x10] sm:$0xff]   ;;  %v11756_v50 = vrot.slane %v11752_v34, %v10240_v25 }
0x1097   : > { %4866 = vmatprep.mubr.bf16.mxu0 %v10057_v13  ;;  %4971 = vmatpush1.bf16.msra.mxu0 %v7856_v11  ;;  %v9962_v61 = vpop.eup %9961  ;;  %v11491_v33 = vpack.c.bf16 %v11470_v8, %v11479_v27  ;;  %v4443_v59 = vmul.f32 %v11409_v43, %v4431_v30  ;;  %v9704_v30 = vld [vmem:[%s12502_s13 + $0x90] sm:$0xff]   ;;  %v11760_v35 = vrot.slane %v11752_v34, %v11402_v12 }
0x1098   : > { %4899 = vmatprep.subr.bf16.mxu1 %v7871_v63  ;;  %4972 = vmatprep.subr.bf16.mxu0 %v7873_v40  ;;  %v9964_v60 = vpop.eup %9963  ;;  %v11502_v31 = vadd.f32 %v11413_v48, %v4444_v15  ;;  %v4434_v11 = vmul.f32 %v9962_v61, %v11335_v39  ;;  %v9695_v63 = vld [vmem:[%s12502_s13] sm:$0xff]   ;;  %v9706_v61 = vld [vmem:[%s12502_s13 + $0xd8] sm:$0xff]  }
0x1099   : > { %v11505_v53 = vadd.f32 %v11413_v48, %v4443_v59  ;;  %v4433_v18 = vmul.f32 %v9964_v60, %v11338_v62  ;;  %v9696_v40 = vld [vmem:[%s12502_s13 + $0x80] sm:$0xff]   ;;  %v9707_v15 = vld [vmem:[%s12502_s13 + $0x18] sm:$0xff]  }
0x109a   : > { %4900 = vmatpush1.bf16.msra.mxu1 %v7870_v41  ;;  %v4446_v28 = vmul.f32 %v11409_v43, %v4434_v11  ;;  %v9697_v41 = vld [vmem:[%s12502_s13 + $0x48] sm:$0xff]   ;;  %v9708_v59 = vld [vmem:[%s12502_s13 + $0x98] sm:$0xff]   ;;  %v9710_v60 = vld [vmem:[%s12502_s13 + $0xe0] sm:$0xff]  }
0x109b   : > { %4973 = vmatpush1.bf16.msra.mxu0 %v7872_v16  ;;  %5043 = vmatprep.subr.bf16.mxu1 %v7859_v2  ;;  %v11511_v23 = vpack.c.bf16 %v11502_v31, %v11505_v53  ;;  %v4445_v51 = vmul.f32 %v11409_v43, %v4433_v18  ;;  %v4492_v43 = vld [vmem:[%s12500_s11 + $0xe8] sm:$0xff]  ;;  %v9702_v2 = vld [vmem:[%s12502_s13 + $0xd0] sm:$0xff]   ;;  %v9711_v11 = vld [vmem:[%s12502_s13 + $0x20] sm:$0xff]  }
0x109c   : > { %5116 = vmatprep.subr.bf16.mxu0 %v7861_v7  ;;  %v11522_v39 = vadd.f32 %v11413_v48, %v4446_v28  ;;  %v7876_v52 = vcombine.low %v4484_v26, %v4492_v43  ;;  %v9700_v16 = vld [vmem:[%s12502_s13 + $0x88] sm:$0xff]   ;;  %v9705_v7 = vld [vmem:[%s12502_s13 + $0x58] sm:$0xff]   ;;  %v9712_v18 = vld [vmem:[%s12502_s13 + $0xa0] sm:$0xff]  }
0x109d   : > { %7883 = vmatmul.mubr.msk.bf16.gmra.mrb[92].mxu1 %vm673_vm1, %v11491_v33  ;;  %7887 = vmatmul.mubr.msk.bf16.gmra.mrb[100].mxu0 %vm673_vm1, %v11491_v33  ;;  %v11525_v62 = vadd.f32 %v11413_v48, %v4445_v51  ;;  %v7877_v48 = vcombine.high %v4484_v26, %v4492_v43  ;;  %v9713_v28 = vld [vmem:[%s12502_s13 + $0x68] sm:$0xff]   ;;  %v9719_v26 = vld [vmem:[%s12502_s13 + $0x30] sm:$0xff]  }
0x109e   : > { %4803 = vmatprep.mubr.bf16.mxu1 %v10057_v13  ;;  %4876 = vmatprep.mubr.bf16.mxu0 %v10057_v13  ;;  %v9714_v51 = vld [vmem:[%s12502_s13 + $0xe8] sm:$0xff]   ;;  %v9720_v43 = vld [vmem:[%s12502_s13 + $0xb0] sm:$0xff]  }
0x109f   : > { %v11529_v38 = vpack.c.bf16 %v11522_v39, %v11525_v62 }
0x10a5   : > { %7884 = vmatmul.mubr.msk.bf16.gmra.mrb[96].mxu1 %vm673_vm1, %v11511_v23  ;;  %7888 = vmatmul.mubr.msk.bf16.gmra.mrb[104].mxu0 %vm673_vm1, %v11511_v23 }
0x10a6   : > { %4813 = vmatprep.mubr.bf16.mxu1 %v10057_v13  ;;  %4886 = vmatprep.mubr.bf16.mxu0 %v10057_v13 }
0x10ad   : > { %7885 = vmatmul.mubr.msk.bf16.gmra.mrb[100].mxu1 %vm673_vm1, %v11529_v38  ;;  %7889 = vmatmul.mubr.msk.bf16.gmra.mrb[108].mxu0 %vm673_vm1, %v11529_v38 }
0x10ae   : > { %4929 = vmatprep.mubr.bf16.mxu1 %v10057_v13  ;;  %5002 = vmatprep.mubr.bf16.mxu0 %v10057_v13 }
0x10b5   : > { %7890 = vmatmul.mubr.msk.bf16.vlgmr.msra.gmra.mrb[104].mxu1 %vm673_vm1, %v11442_v1  ;;  %7894 = vmatmul.mubr.msk.bf16.vlgmr.msra.gmra.mrb[112].mxu0 %vm673_vm1, %v11442_v1 }
0x10b6   : > { %5044 = vmatpush1.bf16.msra.mxu1 %v7858_v44  ;;  %4939 = vmatprep.mubr.bf16.mxu1 %v10057_v13  ;;  %v9721_v44 = vld [vmem:[%s12502_s13 + $0x78] sm:$0xff]  }
0x10b7   : > { %5012 = vmatprep.mubr.bf16.mxu0 %v10057_v13  ;;  %5117 = vmatpush1.bf16.msra.mxu0 %v7860_v46  ;;  %v9722_v46 = vld [vmem:[%s12502_s13 + $0xf8] sm:$0xff]  }
0x10b8   : > { %5045 = vmatprep.subr.bf16.mxu1 %v7875_v47  ;;  %5118 = vmatprep.subr.bf16.mxu0 %v7877_v48  ;;  %v9723_v47 = vld [vmem:[%s12502_s13 + $0x38] sm:$0xff]  }
0x10b9   : > { %v9724_v48 = vld [vmem:[%s12502_s13 + $0xb8] sm:$0xff]  }
0x10ba   : > { %5046 = vmatpush1.bf16.msra.mxu1 %v7874_v4  ;;  %v11764_v4 = vrot.slane %v11752_v34, %v11282_v14 }
0x10bb   : > { %5119 = vmatpush1.bf16.msra.mxu0 %v7876_v52  ;;  %5189 = vmatprep.subr.bf16.mxu1 %v7863_v6  ;;  %v11768_v52 = vrot.slane %v11752_v34, %v11405_v20 }
0x10bc   : > { %5262 = vmatprep.subr.bf16.mxu0 %v7865_v21 }
0x10bd   : > { %7891 = vmatmul.mubr.msk.bf16.gmra.mrb[108].mxu1 %vm673_vm1, %v11491_v33  ;;  %7895 = vmatmul.mubr.msk.bf16.gmra.mrb[116].mxu0 %vm673_vm1, %v11491_v33 }
0x10be   : > { %4949 = vmatprep.mubr.bf16.mxu1 %v10057_v13  ;;  %5022 = vmatprep.mubr.bf16.mxu0 %v10057_v13 }
0x10c5   : > { %7892 = vmatmul.mubr.msk.bf16.gmra.mrb[112].mxu1 %vm673_vm1, %v11511_v23  ;;  %7896 = vmatmul.mubr.msk.bf16.gmra.mrb[120].mxu0 %vm673_vm1, %v11511_v23 }
0x10c6   : > { %4959 = vmatprep.mubr.bf16.mxu1 %v10057_v13  ;;  %5032 = vmatprep.mubr.bf16.mxu0 %v10057_v13 }
0x10cd   : > { %7893 = vmatmul.mubr.msk.bf16.gmra.mrb[116].mxu1 %vm673_vm1, %v11529_v38  ;;  %7897 = vmatmul.mubr.msk.bf16.gmra.mrb[124].mxu0 %vm673_vm1, %v11529_v38 }
0x10ce   : > { %5075 = vmatprep.mubr.bf16.mxu1 %v10057_v13  ;;  %5148 = vmatprep.mubr.bf16.mxu0 %v10057_v13 }
0x10d5   : > { %7898 = vmatmul.mubr.msk.bf16.vlgmr.msra.gmra.mrb[120].mxu1 %vm673_vm1, %v11442_v1  ;;  %7902 = vmatmul.mubr.msk.bf16.vlgmr.msra.gmra.mrb[128].mxu0 %vm673_vm1, %v11442_v1 }
0x10d6   : > { %5190 = vmatpush1.bf16.msra.mxu1 %v7862_v42  ;;  %5085 = vmatprep.mubr.bf16.mxu1 %v10057_v13 }
0x10d7   : > { %5158 = vmatprep.mubr.bf16.mxu0 %v10057_v13  ;;  %5263 = vmatpush1.bf16.msra.mxu0 %v7864_v22 }
0x10d8   : > { %5191 = vmatprep.subr.bf16.mxu1 %v7879_v17  ;;  %5264 = vmatprep.subr.bf16.mxu0 %v7881_v54 }
0x10da   : > { %5192 = vmatpush1.bf16.msra.mxu1 %v7878_v19 }
0x10db   : > { %5265 = vmatpush1.bf16.msra.mxu0 %v7880_v57  ;;  %8380 = vmatprep.subr.bf16.mxu1 %v9693_v36 }
0x10dc   : > { %8420 = vmatprep.subr.bf16.mxu0 %v9694_v10 }
0x10dd   : > { %7899 = vmatmul.mubr.msk.bf16.gmra.mrb[124].mxu1 %vm673_vm1, %v11491_v33  ;;  %7903 = vmatmul.mubr.msk.bf16.gmra.mrb[132].mxu0 %vm673_vm1, %v11491_v33 }
0x10de   : > { %5095 = vmatprep.mubr.bf16.mxu1 %v10057_v13  ;;  %5168 = vmatprep.mubr.bf16.mxu0 %v10057_v13 }
0x10e5   : > { %7900 = vmatmul.mubr.msk.bf16.gmra.mrb[128].mxu1 %vm673_vm1, %v11511_v23  ;;  %7904 = vmatmul.mubr.msk.bf16.gmra.mrb[136].mxu0 %vm673_vm1, %v11511_v23 }
0x10e6   : > { %5105 = vmatprep.mubr.bf16.mxu1 %v10057_v13  ;;  %5178 = vmatprep.mubr.bf16.mxu0 %v10057_v13 }
0x10ed   : > { %7901 = vmatmul.mubr.msk.bf16.gmra.mrb[132].mxu1 %vm673_vm1, %v11529_v38  ;;  %7905 = vmatmul.mubr.msk.bf16.gmra.mrb[140].mxu0 %vm673_vm1, %v11529_v38 }
0x10ee   : > { %5221 = vmatprep.mubr.bf16.mxu1 %v10057_v13  ;;  %5294 = vmatprep.mubr.bf16.mxu0 %v10057_v13 }
0x10f5   : > { %7906 = vmatmul.mubr.msk.bf16.vlgmr.msra.gmra.mrb[136].mxu1 %vm673_vm1, %v11442_v1  ;;  %7910 = vmatmul.mubr.msk.bf16.vlgmr.msra.gmra.mrb[144].mxu0 %vm673_vm1, %v11442_v1  ;;  %v9701_v1 = vld [vmem:[%s12502_s13 + $0x50] sm:$0xff]  }
0x10f6   : > { %5231 = vmatprep.mubr.bf16.mxu1 %v10057_v13  ;;  %5304 = vmatprep.mubr.bf16.mxu0 %v10057_v13 }
0x10f7   : > { %8381 = vmatpush3.bf16.msra.mxu1 %v9695_v63  ;;  %8421 = vmatpush3.bf16.msra.mxu0 %v9696_v40 }
0x10f8   : > { %8382 = vmatprep.subr.bf16.mxu1 %v9697_v41  ;;  %8422 = vmatprep.subr.bf16.mxu0 %v9698_v32 }
0x10fb   : > { %8383 = vmatpush3.bf16.msra.mxu1 %v9699_v56  ;;  %8423 = vmatpush3.bf16.msra.mxu0 %v9700_v16 }
0x10fc   : > { %8384 = vmatprep.subr.bf16.mxu1 %v9701_v1  ;;  %8424 = vmatprep.subr.bf16.mxu0 %v9702_v2 }
0x10fd   : > { %7907 = vmatmul.mubr.msk.bf16.gmra.mrb[140].mxu1 %vm673_vm1, %v11491_v33  ;;  %7911 = vmatmul.mubr.msk.bf16.gmra.mrb[148].mxu0 %vm673_vm1, %v11491_v33  ;;  %v9709_v33 = vld [vmem:[%s12502_s13 + $0x60] sm:$0xff]  }
0x10fe   : > { %5241 = vmatprep.mubr.bf16.mxu1 %v10057_v13  ;;  %5314 = vmatprep.mubr.bf16.mxu0 %v10057_v13 }
0x10ff   : > { %8385 = vmatpush3.bf16.msra.mxu1 %v9703_v3  ;;  %8425 = vmatpush3.bf16.msra.mxu0 %v9704_v30 }
0x1100   : > { %8386 = vmatprep.subr.bf16.mxu1 %v9705_v7  ;;  %8426 = vmatprep.subr.bf16.mxu0 %v9706_v61 }
0x1103   : > { %8387 = vmatpush3.bf16.msra.mxu1 %v9707_v15  ;;  %8427 = vmatpush3.bf16.msra.mxu0 %v9708_v59 }
0x1104   : > { %8388 = vmatprep.subr.bf16.mxu1 %v9709_v33  ;;  %8428 = vmatprep.subr.bf16.mxu0 %v9710_v60 }
0x1105   : > { %7908 = vmatmul.mubr.msk.bf16.gmra.mrb[144].mxu1 %vm673_vm1, %v11511_v23  ;;  %7912 = vmatmul.mubr.msk.bf16.gmra.mrb[152].mxu0 %vm673_vm1, %v11511_v23  ;;  %v9717_v23 = vld [vmem:[%s12502_s13 + $0x70] sm:$0xff]  }
0x1106   : > { %5251 = vmatprep.mubr.bf16.mxu1 %v10057_v13  ;;  %5324 = vmatprep.mubr.bf16.mxu0 %v10057_v13  ;;  %v9718_v13 = vld [vmem:[%s12502_s13 + $0xf0] sm:$0xff]  }
0x1107   : > { %8389 = vmatpush3.bf16.msra.mxu1 %v9711_v11  ;;  %8429 = vmatpush3.bf16.msra.mxu0 %v9712_v18  ;;  %v9727_v11 = vld [vmem:[%s12502_s13 + $0x100] sm:$0xff]  }
0x1108   : > { %8390 = vmatprep.subr.bf16.mxu1 %v9713_v28  ;;  %8430 = vmatprep.subr.bf16.mxu0 %v9714_v51  ;;  %v9728_v18 = vld [vmem:[%s12502_s13 + $0x180] sm:$0xff]  }
0x110b   : > { %8391 = vmatpush3.bf16.msra.mxu1 %v9715_v29  ;;  %8431 = vmatpush3.bf16.msra.mxu0 %v9716_v5 }
0x110c   : > { %8392 = vmatprep.subr.bf16.mxu1 %v9717_v23  ;;  %8432 = vmatprep.subr.bf16.mxu0 %v9718_v13  ;;  %v9729_v23 = vld [vmem:[%s12502_s13 + $0x148] sm:$0xff]  }
0x110d   : > { %7909 = vmatmul.mubr.msk.bf16.gmra.mrb[148].mxu1 %vm673_vm1, %v11529_v38  ;;  %7913 = vmatmul.mubr.msk.bf16.gmra.mrb[156].mxu0 %vm673_vm1, %v11529_v38  ;;  %v9726_v38 = vld [vmem:[%s12502_s13 + $0x1c0] sm:$0xff]   ;;  %v9730_v13 = vld [vmem:[%s12502_s13 + $0x1c8] sm:$0xff]  }
0x110f   : > { %8393 = vmatpush3.bf16.msra.mxu1 %v9719_v26  ;;  %8433 = vmatpush3.bf16.msra.mxu0 %v9720_v43 }
0x1110   : > { %8394 = vmatprep.subr.bf16.mxu1 %v9721_v44  ;;  %8434 = vmatprep.subr.bf16.mxu0 %v9722_v46 }
0x1113   : > { %8395 = vmatpush3.bf16.msra.mxu1 %v9723_v47  ;;  %8435 = vmatpush3.bf16.msra.mxu0 %v9724_v48 }
0x1114   : > { %8460 = vmatprep.subr.bf16.mxu1 %v9725_v49  ;;  %8500 = vmatprep.subr.bf16.mxu0 %v9726_v38 }
0x1168   : > { %v4785_v6 = vpop.f32.mrb[88].mxu1  ;;  %v4858_v21 = vpop.f32.mrb[96].mxu0 }
0x1169   : > { %v4786_v55 = vadd.f32 %v4785_v6, %v11756_v50  ;;  %v4859_v9 = vadd.f32 %v4858_v21, %v11760_v35  ;;  %v4787_v0 = vpop.f32.mrb[89].mxu1  ;;  %v4860_v45 = vpop.f32.mrb[97].mxu0 }
0x116a   : > { %v4788_v42 = vadd.f32 %v4787_v0, %v11764_v4  ;;  %v4861_v22 = vadd.f32 %v4860_v45, %v11768_v52  ;;  %v4789_v17 = vpop.f32.mrb[90].mxu1  ;;  %v4862_v54 = vpop.f32.mrb[98].mxu0 }
0x116b   : > { %v4790_v19 = vadd.f32 %v4789_v17, %v11756_v50  ;;  %v4863_v57 = vadd.f32 %v4862_v54, %v11760_v35  ;;  %v4791_v36 = vpop.f32.mrb[91].mxu1  ;;  %v4864_v10 = vpop.f32.mrb[99].mxu0  ;;  %v5335_v41 = vmax.f32 %v4786_v55, 0.0  ;;  %v5337_v32 = vmax.f32 %v4859_v9, 0.0  ;;  %v9731_v55 = vld [vmem:[%s12502_s13 + $0x108] sm:$0xff]   ;;  %v9733_v17 = vld [vmem:[%s12502_s13 + $0x150] sm:$0xff]  }
0x116c   : > { %v4792_v63 = vadd.f32 %v4791_v36, %v11764_v4  ;;  %v4865_v40 = vadd.f32 %v4864_v10, %v11768_v52  ;;  %v5336_v1 = vmax.f32 %v4788_v42, 0.0  ;;  %v5338_v2 = vmax.f32 %v4861_v22, 0.0  ;;  %v9732_v9 = vld [vmem:[%s12502_s13 + $0x188] sm:$0xff]   ;;  %v9734_v54 = vld [vmem:[%s12502_s13 + $0x1d0] sm:$0xff]  }
0x116d   : > { %v5351_v56 = vmax.f32 %v4790_v19, 0.0  ;;  %v5353_v16 = vmax.f32 %v4863_v57, 0.0 }
0x116e   : > { %v5352_v3 = vmax.f32 %v4792_v63, 0.0  ;;  %v5354_v30 = vmax.f32 %v4865_v40, 0.0 }
0x116f   : > { %v5463_v7 = vpack.c.bf16 %v5351_v56, %v5335_v41  ;;  %v5465_v61 = vpack.c.bf16 %v5353_v16, %v5337_v32 }
0x1170   : > { %v5464_v15 = vpack.c.bf16 %v5352_v3, %v5336_v1  ;;  %v5466_v59 = vpack.c.bf16 %v5354_v30, %v5338_v2  ;;  %v4795_v33 = vpop.f32.mrb[92].mxu1  ;;  %v4868_v60 = vpop.f32.mrb[100].mxu0  ;;  %v9735_v1 = vld [vmem:[%s12502_s13 + $0x110] sm:$0xff]  }
0x1171   : > { %v4796_v28 = vadd.f32 %v4795_v33, %v11756_v50  ;;  %v4869_v51 = vadd.f32 %v4868_v60, %v11760_v35  ;;  %v4797_v29 = vpop.f32.mrb[93].mxu1  ;;  %v4870_v5 = vpop.f32.mrb[101].mxu0  ;;  %v9736_v2 = vld [vmem:[%s12502_s13 + $0x190] sm:$0xff]  }
0x1172   : > { %v4798_v26 = vadd.f32 %v4797_v29, %v11764_v4  ;;  %v4871_v43 = vadd.f32 %v4870_v5, %v11768_v52  ;;  %v4799_v44 = vpop.f32.mrb[94].mxu1  ;;  %v4872_v46 = vpop.f32.mrb[102].mxu0  ;;  %6587 = vmatprep.mubr.bf16.mxu1 %v5464_v15  ;;  %6652 = vmatprep.mubr.bf16.mxu0 %v5466_v59  ;;  %v9737_v15 = vld [vmem:[%s12502_s13 + $0x158] sm:$0xff]  }
0x1173   : > { %v4800_v47 = vadd.f32 %v4799_v44, %v11756_v50  ;;  %v4873_v48 = vadd.f32 %v4872_v46, %v11760_v35  ;;  %v4801_v49 = vpop.f32.mrb[95].mxu1  ;;  %v4874_v38 = vpop.f32.mrb[103].mxu0  ;;  %6588 = vmatmul.mubr.bf16.vlgmr.msra.gmra.mrb[152].mxu1 %v5463_v7  ;;  %6653 = vmatmul.mubr.bf16.vlgmr.msra.gmra.mrb[160].mxu0 %v5465_v61  ;;  %v5367_v0 = vmax.f32 %v4796_v28, 0.0  ;;  %v5369_v45 = vmax.f32 %v4869_v51, 0.0  ;;  %v9738_v59 = vld [vmem:[%s12502_s13 + $0x1d8] sm:$0xff]  }
0x1174   : > { %v4802_v6 = vadd.f32 %v4801_v49, %v11764_v4  ;;  %v4875_v21 = vadd.f32 %v4874_v38, %v11768_v52  ;;  %8461 = vmatpush3.bf16.msra.mxu1 %v9727_v11  ;;  %8501 = vmatpush3.bf16.msra.mxu0 %v9728_v18  ;;  %v5368_v19 = vmax.f32 %v4798_v26, 0.0  ;;  %v5370_v57 = vmax.f32 %v4871_v43, 0.0  ;;  %v9739_v26 = vld [vmem:[%s12502_s13 + $0x118] sm:$0xff]  }
0x1175   : > { %v5383_v42 = vmax.f32 %v4800_v47, 0.0  ;;  %v5385_v22 = vmax.f32 %v4873_v48, 0.0  ;;  %8462 = vmatprep.subr.bf16.mxu1 %v9729_v23  ;;  %8502 = vmatprep.subr.bf16.mxu0 %v9730_v13  ;;  %v9740_v43 = vld [vmem:[%s12502_s13 + $0x198] sm:$0xff]   ;;  %v11837_v44 = vsub.s32 4, %v10237_v24  ;;  %v11840_v46 = vsub.s32 6, %v10237_v24 }
0x1176   : > { %v5384_v36 = vmax.f32 %v4802_v6, 0.0  ;;  %v5386_v10 = vmax.f32 %v4875_v21, 0.0  ;;  %v9741_v6 = vld [vmem:[%s12502_s13 + $0x160] sm:$0xff]  }
0x1177   : > { %v5479_v63 = vpack.c.bf16 %v5383_v42, %v5367_v0  ;;  %v5481_v40 = vpack.c.bf16 %v5385_v22, %v5369_v45  ;;  %v9742_v21 = vld [vmem:[%s12502_s13 + $0x1e0] sm:$0xff]  }
0x1178   : > { %v5480_v41 = vpack.c.bf16 %v5384_v36, %v5368_v19  ;;  %v5482_v32 = vpack.c.bf16 %v5386_v10, %v5370_v57  ;;  %v4805_v56 = vpop.f32.mrb[96].mxu1  ;;  %v4878_v16 = vpop.f32.mrb[104].mxu0  ;;  %8463 = vmatpush3.bf16.msra.mxu1 %v9731_v55  ;;  %8503 = vmatpush3.bf16.msra.mxu0 %v9732_v9  ;;  %v9743_v10 = vld [vmem:[%s12502_s13 + $0x120] sm:$0xff]  }
0x1179   : > { %v4806_v3 = vadd.f32 %v4805_v56, %v11756_v50  ;;  %v4879_v30 = vadd.f32 %v4878_v16, %v11760_v35  ;;  %v4807_v7 = vpop.f32.mrb[97].mxu1  ;;  %v4880_v61 = vpop.f32.mrb[105].mxu0  ;;  %8464 = vmatprep.subr.bf16.mxu1 %v9733_v17  ;;  %8504 = vmatprep.subr.bf16.mxu0 %v9734_v54  ;;  %v11849_v17 = vsub.s32 5, %v10237_v24 }
0x117a   : > { %v4808_v33 = vadd.f32 %v4807_v7, %v11764_v4  ;;  %v4881_v60 = vadd.f32 %v4880_v61, %v11768_v52  ;;  %v4809_v11 = vpop.f32.mrb[98].mxu1  ;;  %v4882_v18 = vpop.f32.mrb[106].mxu0  ;;  %6595 = vmatprep.mubr.bf16.mxu1 %v5480_v41  ;;  %6660 = vmatprep.mubr.bf16.mxu0 %v5482_v32 }
0x117b   : > { %v4810_v28 = vadd.f32 %v4809_v11, %v11756_v50  ;;  %v4883_v51 = vadd.f32 %v4882_v18, %v11760_v35  ;;  %v4811_v29 = vpop.f32.mrb[99].mxu1  ;;  %v4884_v5 = vpop.f32.mrb[107].mxu0  ;;  %6596 = vmatmul.mubr.bf16.gmra.mrb[156].mxu1 %v5479_v63  ;;  %6661 = vmatmul.mubr.bf16.gmra.mrb[164].mxu0 %v5481_v40  ;;  %v5399_v47 = vmax.f32 %v4806_v3, 0.0  ;;  %v5401_v48 = vmax.f32 %v4879_v30, 0.0  ;;  %v9744_v63 = vld [vmem:[%s12502_s13 + $0x1a0] sm:$0xff]  }
0x117c   : > { %v4812_v23 = vadd.f32 %v4811_v29, %v11764_v4  ;;  %v4885_v13 = vadd.f32 %v4884_v5, %v11768_v52  ;;  %8465 = vmatpush3.bf16.msra.mxu1 %v9735_v1  ;;  %8505 = vmatpush3.bf16.msra.mxu0 %v9736_v2  ;;  %v5400_v55 = vmax.f32 %v4808_v33, 0.0  ;;  %v5402_v9 = vmax.f32 %v4881_v60, 0.0  ;;  %v9745_v1 = vld [vmem:[%s12502_s13 + $0x168] sm:$0xff]  }
0x117d   : > { %v5415_v49 = vmax.f32 %v4810_v28, 0.0  ;;  %v5417_v38 = vmax.f32 %v4883_v51, 0.0  ;;  %8466 = vmatprep.subr.bf16.mxu1 %v9737_v15  ;;  %8506 = vmatprep.subr.bf16.mxu0 %v9738_v59  ;;  %v11858_v40 = vsub.s32 7, %v10237_v24  ;;  %v9746_v2 = vld [vmem:[%s12502_s13 + $0x1e8] sm:$0xff]   ;;  %v11870_v24 = vrot.slane %v11752_v34, %v11837_v44 }
0x117e   : > { %v5416_v0 = vmax.f32 %v4812_v23, 0.0  ;;  %v5418_v45 = vmax.f32 %v4885_v13, 0.0  ;;  %v11876_v15 = vrot.slane %v11752_v34, %v11840_v46  ;;  %v11882_v18 = vrot.slane %v11752_v34, %v11849_v17 }
0x117f   : > { %v5495_v42 = vpack.c.bf16 %v5415_v49, %v5399_v47  ;;  %v5497_v22 = vpack.c.bf16 %v5417_v38, %v5401_v48  ;;  %v11894_v29 = vrot.slane %v11752_v34, %v11858_v40 }
0x1180   : > { %v5496_v54 = vpack.c.bf16 %v5416_v0, %v5400_v55  ;;  %v5498_v19 = vpack.c.bf16 %v5418_v45, %v5402_v9  ;;  %v4815_v57 = vpop.f32.mrb[100].mxu1  ;;  %v4888_v36 = vpop.f32.mrb[108].mxu0  ;;  %8467 = vmatpush3.bf16.msra.mxu1 %v9739_v26  ;;  %8507 = vmatpush3.bf16.msra.mxu0 %v9740_v43  ;;  %v9750_v26 = vld [vmem:[%s12502_s13 + $0x1f0] sm:$0xff]  }
0x1181   : > { %v4816_v41 = vadd.f32 %v4815_v57, %v11756_v50  ;;  %v4889_v32 = vadd.f32 %v4888_v36, %v11760_v35  ;;  %v4817_v56 = vpop.f32.mrb[101].mxu1  ;;  %v4890_v16 = vpop.f32.mrb[109].mxu0  ;;  %8468 = vmatprep.subr.bf16.mxu1 %v9741_v6  ;;  %8508 = vmatprep.subr.bf16.mxu0 %v9742_v21  ;;  %v9751_v0 = vld [vmem:[%s12502_s13 + $0x130] sm:$0xff]   ;;  %v9753_v57 = vld [vmem:[%s12502_s13 + $0x178] sm:$0xff]  }
0x1182   : > { %v4818_v3 = vadd.f32 %v4817_v56, %v11764_v4  ;;  %v4891_v30 = vadd.f32 %v4890_v16, %v11768_v52  ;;  %v4819_v7 = vpop.f32.mrb[102].mxu1  ;;  %v4892_v61 = vpop.f32.mrb[110].mxu0  ;;  %6603 = vmatprep.mubr.bf16.mxu1 %v5496_v54  ;;  %6668 = vmatprep.mubr.bf16.mxu0 %v5498_v19  ;;  %v9752_v45 = vld [vmem:[%s12502_s13 + $0x1b0] sm:$0xff]   ;;  %v9754_v36 = vld [vmem:[%s12502_s13 + $0x1f8] sm:$0xff]  }
0x1183   : > { %v4820_v59 = vadd.f32 %v4819_v7, %v11756_v50  ;;  %v4893_v33 = vadd.f32 %v4892_v61, %v11760_v35  ;;  %v4821_v60 = vpop.f32.mrb[103].mxu1  ;;  %v4894_v11 = vpop.f32.mrb[111].mxu0  ;;  %6604 = vmatmul.mubr.bf16.gmra.mrb[160].mxu1 %v5495_v42  ;;  %6669 = vmatmul.mubr.bf16.gmra.mrb[168].mxu0 %v5497_v22  ;;  %v9747_v50 = vld [vmem:[%s12502_s13 + $0x128] sm:$0xff]   ;;  %v5431_v5 = vmax.f32 %v4816_v41, 0.0  ;;  %v5433_v23 = vmax.f32 %v4889_v32, 0.0  ;;  %v9755_v7 = vld [vmem:[%s12502_s13 + $0x138] sm:$0xff]  }
0x1184   : > { %v4822_v28 = vadd.f32 %v4821_v60, %v11764_v4  ;;  %v4895_v51 = vadd.f32 %v4894_v11, %v11768_v52  ;;  %8469 = vmatpush3.bf16.msra.mxu1 %v9743_v10  ;;  %8509 = vmatpush3.bf16.msra.mxu0 %v9744_v63  ;;  %v9748_v35 = vld [vmem:[%s12502_s13 + $0x1a8] sm:$0xff]   ;;  %v9749_v52 = vld [vmem:[%s12502_s13 + $0x170] sm:$0xff]   ;;  %v5432_v43 = vmax.f32 %v4818_v3, 0.0  ;;  %v5434_v47 = vmax.f32 %v4891_v30, 0.0  ;;  %v9756_v61 = vld [vmem:[%s12502_s13 + $0x1b8] sm:$0xff]  }
0x1185   : > { %v5447_v13 = vmax.f32 %v4820_v59, 0.0  ;;  %v5449_v4 = vmax.f32 %v4893_v33, 0.0  ;;  %8470 = vmatprep.subr.bf16.mxu1 %v9745_v1  ;;  %8510 = vmatprep.subr.bf16.mxu0 %v9746_v2 }
0x1186   : > { %v5448_v48 = vmax.f32 %v4822_v28, 0.0  ;;  %v5450_v49 = vmax.f32 %v4895_v51, 0.0  ;;  %v9757_v28 = vld [vmem:[%s12502_s13 + $0x240] sm:$0xff]  }
0x1187   : > { %v5511_v34 = vpack.c.bf16 %v5447_v13, %v5431_v5  ;;  %v5513_v38 = vpack.c.bf16 %v5449_v4, %v5433_v23  ;;  %v9758_v51 = vld [vmem:[%s12502_s13 + $0x2c0] sm:$0xff]  }
0x1188   : > { %v5512_v6 = vpack.c.bf16 %v5448_v48, %v5432_v43  ;;  %v5514_v21 = vpack.c.bf16 %v5450_v49, %v5434_v47  ;;  %v4931_v55 = vpop.f32.mrb[104].mxu1  ;;  %v5004_v9 = vpop.f32.mrb[112].mxu0  ;;  %8471 = vmatpush3.bf16.msra.mxu1 %v9747_v50  ;;  %8511 = vmatpush3.bf16.msra.mxu0 %v9748_v35  ;;  %v9759_v48 = vld [vmem:[%s12502_s13 + $0x200] sm:$0xff]  }
0x1189   : > { %v4932_v42 = vadd.f32 %v4931_v55, %v11870_v24  ;;  %v5005_v22 = vadd.f32 %v5004_v9, %v11876_v15  ;;  %v4933_v54 = vpop.f32.mrb[105].mxu1  ;;  %v5006_v19 = vpop.f32.mrb[113].mxu0  ;;  %8472 = vmatprep.subr.bf16.mxu1 %v9749_v52  ;;  %8512 = vmatprep.subr.bf16.mxu0 %v9750_v26  ;;  %v9760_v49 = vld [vmem:[%s12502_s13 + $0x280] sm:$0xff]   ;;  %v9761_v55 = vld [vmem:[%s12502_s13 + $0x248] sm:$0xff]  }
0x118a   : > { %v4934_v10 = vadd.f32 %v4933_v54, %v11882_v18  ;;  %v5007_v63 = vadd.f32 %v5006_v19, %v11894_v29  ;;  %v4935_v41 = vpop.f32.mrb[106].mxu1  ;;  %v5008_v32 = vpop.f32.mrb[114].mxu0  ;;  %6611 = vmatprep.mubr.bf16.mxu1 %v5512_v6  ;;  %6676 = vmatprep.mubr.bf16.mxu0 %v5514_v21  ;;  %v9762_v9 = vld [vmem:[%s12502_s13 + $0x2c8] sm:$0xff]  }
0x118b   : > { %v4936_v56 = vadd.f32 %v4935_v41, %v11870_v24  ;;  %v5009_v16 = vadd.f32 %v5008_v32, %v11876_v15  ;;  %v4937_v1 = vpop.f32.mrb[107].mxu1  ;;  %v5010_v2 = vpop.f32.mrb[115].mxu0  ;;  %6612 = vmatmul.mubr.bf16.gmra.mrb[164].mxu1 %v5511_v34  ;;  %6677 = vmatmul.mubr.bf16.gmra.mrb[172].mxu0 %v5513_v38  ;;  %v5339_v59 = vmax.f32 %v4932_v42, 0.0  ;;  %v5341_v33 = vmax.f32 %v5005_v22, 0.0  ;;  %v9763_v41 = vld [vmem:[%s12502_s13 + $0x208] sm:$0xff]  }
0x118c   : > { %v4938_v3 = vadd.f32 %v4937_v1, %v11882_v18  ;;  %v5011_v30 = vadd.f32 %v5010_v2, %v11894_v29  ;;  %8473 = vmatpush3.bf16.msra.mxu1 %v9751_v0  ;;  %8513 = vmatpush3.bf16.msra.mxu0 %v9752_v45  ;;  %v5340_v50 = vmax.f32 %v4934_v10, 0.0  ;;  %v5342_v35 = vmax.f32 %v5007_v63, 0.0  ;;  %v9764_v32 = vld [vmem:[%s12502_s13 + $0x288] sm:$0xff]  }
0x118d   : > { %v5355_v60 = vmax.f32 %v4936_v56, 0.0  ;;  %v5357_v11 = vmax.f32 %v5009_v16, 0.0  ;;  %8474 = vmatprep.subr.bf16.mxu1 %v9753_v57  ;;  %8514 = vmatprep.subr.bf16.mxu0 %v9754_v36 }
0x118e   : > { %v5356_v5 = vmax.f32 %v4938_v3, 0.0  ;;  %v5358_v23 = vmax.f32 %v5011_v30, 0.0  ;;  %v9765_v3 = vld [vmem:[%s12502_s13 + $0x250] sm:$0xff]  }
0x118f   : > { %v5467_v13 = vpack.c.bf16 %v5355_v60, %v5339_v59  ;;  %v5469_v4 = vpack.c.bf16 %v5357_v11, %v5341_v33  ;;  %v9766_v30 = vld [vmem:[%s12502_s13 + $0x2d0] sm:$0xff]  }
0x1190   : > { %v5468_v52 = vpack.c.bf16 %v5356_v5, %v5340_v50  ;;  %v5470_v26 = vpack.c.bf16 %v5358_v23, %v5342_v35  ;;  %v4941_v43 = vpop.f32.mrb[108].mxu1  ;;  %v5014_v47 = vpop.f32.mrb[116].mxu0  ;;  %8475 = vmatpush3.bf16.msra.mxu1 %v9755_v7  ;;  %8515 = vmatpush3.bf16.msra.mxu0 %v9756_v61  ;;  %v9767_v5 = vld [vmem:[%s12502_s13 + $0x210] sm:$0xff]  }
0x1191   : > { %v4942_v34 = vadd.f32 %v4941_v43, %v11870_v24  ;;  %v5015_v38 = vadd.f32 %v5014_v47, %v11876_v15  ;;  %v4943_v6 = vpop.f32.mrb[109].mxu1  ;;  %v5016_v21 = vpop.f32.mrb[117].mxu0  ;;  %8540 = vmatprep.subr.bf16.mxu1 %v9757_v28  ;;  %8580 = vmatprep.subr.bf16.mxu0 %v9758_v51  ;;  %v9768_v23 = vld [vmem:[%s12502_s13 + $0x290] sm:$0xff]   ;;  %v9769_v43 = vld [vmem:[%s12502_s13 + $0x258] sm:$0xff]  }
0x1192   : > { %v4944_v0 = vadd.f32 %v4943_v6, %v11882_v18  ;;  %v5017_v45 = vadd.f32 %v5016_v21, %v11894_v29  ;;  %v4945_v42 = vpop.f32.mrb[110].mxu1  ;;  %v5018_v22 = vpop.f32.mrb[118].mxu0  ;;  %6717 = vmatprep.mubr.bf16.mxu1 %v5468_v52  ;;  %6782 = vmatprep.mubr.bf16.mxu0 %v5470_v26  ;;  %v9770_v47 = vld [vmem:[%s12502_s13 + $0x2d8] sm:$0xff]  }
0x1193   : > { %v4946_v54 = vadd.f32 %v4945_v42, %v11870_v24  ;;  %v5019_v19 = vadd.f32 %v5018_v22, %v11876_v15  ;;  %v4947_v57 = vpop.f32.mrb[111].mxu1  ;;  %v5020_v36 = vpop.f32.mrb[119].mxu0  ;;  %6718 = vmatmul.mubr.bf16.vlgmr.msra.gmra.mrb[168].mxu1 %v5467_v13  ;;  %6783 = vmatmul.mubr.bf16.vlgmr.msra.gmra.mrb[176].mxu0 %v5469_v4  ;;  %v5371_v56 = vmax.f32 %v4942_v34, 0.0  ;;  %v5373_v16 = vmax.f32 %v5015_v38, 0.0  ;;  %v9771_v42 = vld [vmem:[%s12502_s13 + $0x218] sm:$0xff]  }
0x1194   : > { %v4948_v10 = vadd.f32 %v4947_v57, %v11882_v18  ;;  %v5021_v63 = vadd.f32 %v5020_v36, %v11894_v29  ;;  %8541 = vmatpush3.bf16.msra.mxu1 %v9759_v48  ;;  %8581 = vmatpush3.bf16.msra.mxu0 %v9760_v49  ;;  %v5372_v7 = vmax.f32 %v4944_v0, 0.0  ;;  %v5374_v61 = vmax.f32 %v5017_v45, 0.0  ;;  %v9772_v22 = vld [vmem:[%s12502_s13 + $0x298] sm:$0xff]  }
0x1195   : > { %v5387_v1 = vmax.f32 %v4946_v54, 0.0  ;;  %v5389_v2 = vmax.f32 %v5019_v19, 0.0  ;;  %8542 = vmatprep.subr.bf16.mxu1 %v9761_v55  ;;  %8582 = vmatprep.subr.bf16.mxu0 %v9762_v9 }
0x1196   : > { %v5388_v59 = vmax.f32 %v4948_v10, 0.0  ;;  %v5390_v33 = vmax.f32 %v5021_v63, 0.0  ;;  %v9773_v10 = vld [vmem:[%s12502_s13 + $0x260] sm:$0xff]  }
0x1197   : > { %v5483_v60 = vpack.c.bf16 %v5387_v1, %v5371_v56  ;;  %v5485_v11 = vpack.c.bf16 %v5389_v2, %v5373_v16  ;;  %v9774_v63 = vld [vmem:[%s12502_s13 + $0x2e0] sm:$0xff]   ;;  %v12001_v1 = vld [vmem:[%s12501_s12 + $0x8] sm:$0xff] }
0x1198   : > { %v5484_v28 = vpack.c.bf16 %v5388_v59, %v5372_v7  ;;  %v5486_v51 = vpack.c.bf16 %v5390_v33, %v5374_v61  ;;  %v4951_v50 = vpop.f32.mrb[112].mxu1  ;;  %v5024_v35 = vpop.f32.mrb[120].mxu0  ;;  %8543 = vmatpush3.bf16.msra.mxu1 %v9763_v41  ;;  %8583 = vmatpush3.bf16.msra.mxu0 %v9764_v32  ;;  %v9775_v33 = vld [vmem:[%s12502_s13 + $0x220] sm:$0xff]  }
0x1199   : > { %v4952_v13 = vadd.f32 %v4951_v50, %v11870_v24  ;;  %v5025_v4 = vadd.f32 %v5024_v35, %v11876_v15  ;;  %v4953_v52 = vpop.f32.mrb[113].mxu1  ;;  %v5026_v26 = vpop.f32.mrb[121].mxu0  ;;  %8544 = vmatprep.subr.bf16.mxu1 %v9765_v3  ;;  %8584 = vmatprep.subr.bf16.mxu0 %v9766_v30  ;;  %v9777_v35 = vld [vmem:[%s12502_s13 + $0x268] sm:$0xff]  }
0x119a   : > { %v4954_v48 = vadd.f32 %v4953_v52, %v11882_v18  ;;  %v5027_v49 = vadd.f32 %v5026_v26, %v11894_v29  ;;  %v4955_v34 = vpop.f32.mrb[114].mxu1  ;;  %v5028_v38 = vpop.f32.mrb[122].mxu0  ;;  %6725 = vmatprep.mubr.bf16.mxu1 %v5484_v28  ;;  %6790 = vmatprep.mubr.bf16.mxu0 %v5486_v51 }
0x119b   : > { %v4956_v6 = vadd.f32 %v4955_v34, %v11870_v24  ;;  %v5029_v21 = vadd.f32 %v5028_v38, %v11876_v15  ;;  %v4957_v55 = vpop.f32.mrb[115].mxu1  ;;  %v5030_v9 = vpop.f32.mrb[123].mxu0  ;;  %6726 = vmatmul.mubr.bf16.gmra.mrb[172].mxu1 %v5483_v60  ;;  %6791 = vmatmul.mubr.bf16.gmra.mrb[180].mxu0 %v5485_v11  ;;  %v5403_v54 = vmax.f32 %v4952_v13, 0.0  ;;  %v5405_v19 = vmax.f32 %v5025_v4, 0.0  ;;  %v9776_v60 = vld [vmem:[%s12502_s13 + $0x2a0] sm:$0xff]  }
0x119c   : > { %v4958_v0 = vadd.f32 %v4957_v55, %v11882_v18  ;;  %v5031_v45 = vadd.f32 %v5030_v9, %v11894_v29  ;;  %8545 = vmatpush3.bf16.msra.mxu1 %v9767_v5  ;;  %8585 = vmatpush3.bf16.msra.mxu0 %v9768_v23  ;;  %v5404_v41 = vmax.f32 %v4954_v48, 0.0  ;;  %v5406_v32 = vmax.f32 %v5027_v49, 0.0  ;;  %v9778_v5 = vld [vmem:[%s12502_s13 + $0x2e8] sm:$0xff]   ;;  %v9782_v9 = vld [vmem:[%s12502_s13 + $0x2f0] sm:$0xff]  }
0x119d   : > { %v5419_v57 = vmax.f32 %v4956_v6, 0.0  ;;  %v5421_v36 = vmax.f32 %v5029_v21, 0.0  ;;  %8546 = vmatprep.subr.bf16.mxu1 %v9769_v43  ;;  %8586 = vmatprep.subr.bf16.mxu0 %v9770_v47  ;;  %v12019_v23 = vrot.slane %v12001_v1, %v10240_v25  ;;  %v12025_v43 = vrot.slane %v12001_v1, %v11402_v12  ;;  %v9779_v12 = vld [vmem:[%s12502_s13 + $0x228] sm:$0xff]  }
0x119e   : > { %v5420_v56 = vmax.f32 %v4958_v0, 0.0  ;;  %v5422_v16 = vmax.f32 %v5031_v45, 0.0  ;;  %v12031_v25 = vrot.slane %v12001_v1, %v11282_v14 }
0x119f   : > { %v5499_v2 = vpack.c.bf16 %v5419_v57, %v5403_v54  ;;  %v5501_v3 = vpack.c.bf16 %v5421_v36, %v5405_v19 }
0x11a0   : > { %v5500_v30 = vpack.c.bf16 %v5420_v56, %v5404_v41  ;;  %v5502_v7 = vpack.c.bf16 %v5422_v16, %v5406_v32  ;;  %v4961_v61 = vpop.f32.mrb[116].mxu1  ;;  %v5034_v59 = vpop.f32.mrb[124].mxu0  ;;  %8547 = vmatpush3.bf16.msra.mxu1 %v9771_v42  ;;  %8587 = vmatpush3.bf16.msra.mxu0 %v9772_v22  ;;  %v9784_v41 = vld [vmem:[%s12502_s13 + $0x2b0] sm:$0xff]  }
0x11a1   : > { %v4962_v11 = vadd.f32 %v4961_v61, %v11870_v24  ;;  %v5035_v28 = vadd.f32 %v5034_v59, %v11876_v15  ;;  %v4963_v51 = vpop.f32.mrb[117].mxu1  ;;  %v5036_v50 = vpop.f32.mrb[125].mxu0  ;;  %8548 = vmatprep.subr.bf16.mxu1 %v9773_v10  ;;  %8588 = vmatprep.subr.bf16.mxu0 %v9774_v63  ;;  %v9783_v63 = vld [vmem:[%s12502_s13 + $0x230] sm:$0xff]  }
0x11a2   : > { %v4964_v13 = vadd.f32 %v4963_v51, %v11882_v18  ;;  %v5037_v4 = vadd.f32 %v5036_v50, %v11894_v29  ;;  %v4965_v52 = vpop.f32.mrb[118].mxu1  ;;  %v5038_v26 = vpop.f32.mrb[126].mxu0  ;;  %6733 = vmatprep.mubr.bf16.mxu1 %v5500_v30  ;;  %6798 = vmatprep.mubr.bf16.mxu0 %v5502_v7  ;;  %v9786_v30 = vld [vmem:[%s12502_s13 + $0x2f8] sm:$0xff]  }
0x11a3   : > { %v4966_v47 = vadd.f32 %v4965_v52, %v11870_v24  ;;  %v5039_v48 = vadd.f32 %v5038_v26, %v11876_v15  ;;  %v4967_v49 = vpop.f32.mrb[119].mxu1  ;;  %v5040_v34 = vpop.f32.mrb[127].mxu0  ;;  %6734 = vmatmul.mubr.bf16.gmra.mrb[176].mxu1 %v5499_v2  ;;  %6799 = vmatmul.mubr.bf16.gmra.mrb[184].mxu0 %v5501_v3  ;;  %v9780_v24 = vld [vmem:[%s12502_s13 + $0x2a8] sm:$0xff]   ;;  %v12043_v15 = vrot.slane %v12001_v1, %v11405_v20  ;;  %v5435_v14 = vmax.f32 %v4962_v11, 0.0  ;;  %v9785_v3 = vld [vmem:[%s12502_s13 + $0x278] sm:$0xff]  }
0x11a4   : > { %v4968_v38 = vadd.f32 %v4967_v49, %v11882_v18  ;;  %v5041_v6 = vadd.f32 %v5040_v34, %v11894_v29  ;;  %8549 = vmatpush3.bf16.msra.mxu1 %v9775_v33  ;;  %8589 = vmatpush3.bf16.msra.mxu0 %v9776_v60  ;;  %v5437_v21 = vmax.f32 %v5035_v28, 0.0  ;;  %v9781_v29 = vld [vmem:[%s12502_s13 + $0x270] sm:$0xff]   ;;  %v5436_v0 = vmax.f32 %v4964_v13, 0.0  ;;  %v9788_v13 = vld [vmem:[%s12502_s13 + $0x2b8] sm:$0xff]   ;;  %v9790_v49 = vld [vmem:[%s12502_s13 + $0x3c0] sm:$0xff]  }
0x11a5   : > { %v5451_v55 = vmax.f32 %v4966_v47, 0.0  ;;  %v5453_v18 = vmax.f32 %v5039_v48, 0.0  ;;  %8550 = vmatprep.subr.bf16.mxu1 %v9777_v35  ;;  %8590 = vmatprep.subr.bf16.mxu0 %v9778_v5  ;;  %v5438_v45 = vmax.f32 %v5037_v4, 0.0  ;;  %v9787_v5 = vld [vmem:[%s12502_s13 + $0x238] sm:$0xff]   ;;  %v9789_v48 = vld [vmem:[%s12502_s13 + $0x340] sm:$0xff]  }
0x11a6   : > { %v5452_v42 = vmax.f32 %v4968_v38, 0.0  ;;  %v5454_v22 = vmax.f32 %v5041_v6, 0.0 }
0x11a7   : > { %v5515_v20 = vpack.c.bf16 %v5451_v55, %v5435_v14  ;;  %v5517_v54 = vpack.c.bf16 %v5453_v18, %v5437_v21 }
0x11a8   : > { %v5516_v19 = vpack.c.bf16 %v5452_v42, %v5436_v0  ;;  %v5518_v57 = vpack.c.bf16 %v5454_v22, %v5438_v45  ;;  %v5077_v36 = vpop.f32.mrb[120].mxu1  ;;  %v5150_v10 = vpop.f32.mrb[128].mxu0  ;;  %8551 = vmatpush3.bf16.msra.mxu1 %v9779_v12  ;;  %8591 = vmatpush3.bf16.msra.mxu0 %v9780_v24  ;;  %v9792_v0 = vld [vmem:[%s12502_s13 + $0x380] sm:$0xff]  }
0x11a9   : > { %v5078_v32 = vadd.f32 %v5077_v36, %v12019_v23  ;;  %v5151_v56 = vadd.f32 %v5150_v10, %v12025_v43  ;;  %v5079_v16 = vpop.f32.mrb[121].mxu1  ;;  %v5152_v2 = vpop.f32.mrb[129].mxu0  ;;  %8552 = vmatprep.subr.bf16.mxu1 %v9781_v29  ;;  %8592 = vmatprep.subr.bf16.mxu0 %v9782_v9  ;;  %v9791_v9 = vld [vmem:[%s12502_s13 + $0x300] sm:$0xff]  }
0x11aa   : > { %v5080_v7 = vadd.f32 %v5079_v16, %v12031_v25  ;;  %v5153_v61 = vadd.f32 %v5152_v2, %v12043_v15  ;;  %v5081_v59 = vpop.f32.mrb[122].mxu1  ;;  %v5154_v33 = vpop.f32.mrb[130].mxu0  ;;  %6741 = vmatprep.mubr.bf16.mxu1 %v5516_v19  ;;  %6806 = vmatprep.mubr.bf16.mxu0 %v5518_v57  ;;  %v9794_v19 = vld [vmem:[%s12502_s13 + $0x3c8] sm:$0xff]  }
0x11ab   : > { %v5082_v60 = vadd.f32 %v5081_v59, %v12019_v23  ;;  %v5155_v11 = vadd.f32 %v5154_v33, %v12025_v43  ;;  %v5083_v28 = vpop.f32.mrb[123].mxu1  ;;  %v5156_v51 = vpop.f32.mrb[131].mxu0  ;;  %6742 = vmatmul.mubr.bf16.gmra.mrb[180].mxu1 %v5515_v20  ;;  %6807 = vmatmul.mubr.bf16.gmra.mrb[188].mxu0 %v5517_v54  ;;  %v5343_v4 = vmax.f32 %v5078_v32, 0.0  ;;  %v5345_v52 = vmax.f32 %v5151_v56, 0.0  ;;  %v9793_v54 = vld [vmem:[%s12502_s13 + $0x348] sm:$0xff]  }
0x11ac   : > { %v5084_v50 = vadd.f32 %v5083_v28, %v12031_v25  ;;  %v5157_v35 = vadd.f32 %v5156_v51, %v12043_v15  ;;  %8553 = vmatpush3.bf16.msra.mxu1 %v9783_v63  ;;  %8593 = vmatpush3.bf16.msra.mxu0 %v9784_v41  ;;  %v5344_v34 = vmax.f32 %v5080_v7, 0.0  ;;  %v5346_v38 = vmax.f32 %v5153_v61, 0.0  ;;  %v9796_v7 = vld [vmem:[%s12502_s13 + $0x388] sm:$0xff]   ;;  %v9798_v28 = vld [vmem:[%s12502_s13 + $0x3d0] sm:$0xff]  }
0x11ad   : > { %v5359_v26 = vmax.f32 %v5082_v60, 0.0  ;;  %v5361_v47 = vmax.f32 %v5155_v11, 0.0  ;;  %8554 = vmatprep.subr.bf16.mxu1 %v9785_v3  ;;  %8594 = vmatprep.subr.bf16.mxu0 %v9786_v30  ;;  %v9795_v30 = vld [vmem:[%s12502_s13 + $0x308] sm:$0xff]   ;;  %v9797_v11 = vld [vmem:[%s12502_s13 + $0x350] sm:$0xff]  }
0x11ae   : > { %v5360_v6 = vmax.f32 %v5084_v50, 0.0  ;;  %v5362_v12 = vmax.f32 %v5157_v35, 0.0 }
0x11af   : > { %v5471_v24 = vpack.c.bf16 %v5359_v26, %v5343_v4  ;;  %v5473_v14 = vpack.c.bf16 %v5361_v47, %v5345_v52 }
0x11b0   : > { %v5472_v21 = vpack.c.bf16 %v5360_v6, %v5344_v34  ;;  %v5474_v55 = vpack.c.bf16 %v5362_v12, %v5346_v38  ;;  %v5087_v18 = vpop.f32.mrb[124].mxu1  ;;  %v5160_v29 = vpop.f32.mrb[132].mxu0  ;;  %8555 = vmatpush3.bf16.msra.mxu1 %v9787_v5  ;;  %8595 = vmatpush3.bf16.msra.mxu0 %v9788_v13  ;;  %v9800_v34 = vld [vmem:[%s12502_s13 + $0x390] sm:$0xff]  }
0x11b1   : > { %v5088_v45 = vadd.f32 %v5087_v18, %v12019_v23  ;;  %v5161_v42 = vadd.f32 %v5160_v29, %v12025_v43  ;;  %v5089_v22 = vpop.f32.mrb[125].mxu1  ;;  %v5162_v20 = vpop.f32.mrb[133].mxu0  ;;  %8620 = vmatprep.subr.bf16.mxu1 %v9789_v48  ;;  %8660 = vmatprep.subr.bf16.mxu0 %v9790_v49  ;;  %v9799_v49 = vld [vmem:[%s12502_s13 + $0x310] sm:$0xff]  }
0x11b2   : > { %v5090_v57 = vadd.f32 %v5089_v22, %v12031_v25  ;;  %v5163_v36 = vadd.f32 %v5162_v20, %v12043_v15  ;;  %v5091_v10 = vpop.f32.mrb[126].mxu1  ;;  %v5164_v63 = vpop.f32.mrb[134].mxu0  ;;  %6847 = vmatprep.mubr.bf16.mxu1 %v5472_v21  ;;  %6912 = vmatprep.mubr.bf16.mxu0 %v5474_v55  ;;  %v9802_v21 = vld [vmem:[%s12502_s13 + $0x3d8] sm:$0xff]  }
0x11b3   : > { %v5092_v41 = vadd.f32 %v5091_v10, %v12019_v23  ;;  %v5165_v32 = vadd.f32 %v5164_v63, %v12025_v43  ;;  %v5093_v56 = vpop.f32.mrb[127].mxu1  ;;  %v5166_v16 = vpop.f32.mrb[135].mxu0  ;;  %6848 = vmatmul.mubr.bf16.vlgmr.msra.gmra.mrb[184].mxu1 %v5471_v24  ;;  %6913 = vmatmul.mubr.bf16.vlgmr.msra.gmra.mrb[192].mxu0 %v5473_v14  ;;  %v5375_v61 = vmax.f32 %v5088_v45, 0.0  ;;  %v5377_v59 = vmax.f32 %v5161_v42, 0.0  ;;  %v9801_v14 = vld [vmem:[%s12502_s13 + $0x358] sm:$0xff]  }
0x11b4   : > { %v5094_v2 = vadd.f32 %v5093_v56, %v12031_v25  ;;  %v5167_v3 = vadd.f32 %v5166_v16, %v12043_v15  ;;  %8621 = vmatpush3.bf16.msra.mxu1 %v9791_v9  ;;  %8661 = vmatpush3.bf16.msra.mxu0 %v9792_v0  ;;  %v5376_v51 = vmax.f32 %v5090_v57, 0.0  ;;  %v5378_v50 = vmax.f32 %v5163_v36, 0.0  ;;  %v9804_v57 = vld [vmem:[%s12502_s13 + $0x398] sm:$0xff]   ;;  %v9806_v56 = vld [vmem:[%s12502_s13 + $0x3e0] sm:$0xff]  }
0x11b5   : > { %v5391_v33 = vmax.f32 %v5092_v41, 0.0  ;;  %v5393_v60 = vmax.f32 %v5165_v32, 0.0  ;;  %8622 = vmatprep.subr.bf16.mxu1 %v9793_v54  ;;  %8662 = vmatprep.subr.bf16.mxu0 %v9794_v19  ;;  %v9803_v19 = vld [vmem:[%s12502_s13 + $0x318] sm:$0xff]   ;;  %v9805_v32 = vld [vmem:[%s12502_s13 + $0x360] sm:$0xff]  }
0x11b6   : > { %v5392_v35 = vmax.f32 %v5094_v2, 0.0  ;;  %v5394_v5 = vmax.f32 %v5167_v3, 0.0 }
0x11b7   : > { %v5487_v13 = vpack.c.bf16 %v5391_v33, %v5375_v61  ;;  %v5489_v4 = vpack.c.bf16 %v5393_v60, %v5377_v59 }
0x11b8   : > { %v5488_v52 = vpack.c.bf16 %v5392_v35, %v5376_v51  ;;  %v5490_v26 = vpack.c.bf16 %v5394_v5, %v5378_v50  ;;  %v5097_v47 = vpop.f32.mrb[128].mxu1  ;;  %v5170_v48 = vpop.f32.mrb[136].mxu0  ;;  %8623 = vmatpush3.bf16.msra.mxu1 %v9795_v30  ;;  %8663 = vmatpush3.bf16.msra.mxu0 %v9796_v7  ;;  %v9808_v51 = vld [vmem:[%s12502_s13 + $0x3a0] sm:$0xff]  }
0x11b9   : > { %v5098_v38 = vadd.f32 %v5097_v47, %v12019_v23  ;;  %v5171_v6 = vadd.f32 %v5170_v48, %v12025_v43  ;;  %v5099_v12 = vpop.f32.mrb[129].mxu1  ;;  %v5172_v24 = vpop.f32.mrb[137].mxu0  ;;  %8624 = vmatprep.subr.bf16.mxu1 %v9797_v11  ;;  %8664 = vmatprep.subr.bf16.mxu0 %v9798_v28  ;;  %v9807_v28 = vld [vmem:[%s12502_s13 + $0x320] sm:$0xff]  }
0x11ba   : > { %v5100_v55 = vadd.f32 %v5099_v12, %v12031_v25  ;;  %v5173_v18 = vadd.f32 %v5172_v24, %v12043_v15  ;;  %v5101_v29 = vpop.f32.mrb[130].mxu1  ;;  %v5174_v9 = vpop.f32.mrb[138].mxu0  ;;  %6855 = vmatprep.mubr.bf16.mxu1 %v5488_v52  ;;  %6920 = vmatprep.mubr.bf16.mxu0 %v5490_v26  ;;  %v9810_v52 = vld [vmem:[%s12502_s13 + $0x3e8] sm:$0xff]   ;;  %v12163_v26 = vrot.slane %v12001_v1, %v11837_v44 }
0x11bb   : > { %v5102_v0 = vadd.f32 %v5101_v29, %v12019_v23  ;;  %v5175_v45 = vadd.f32 %v5174_v9, %v12025_v43  ;;  %v5103_v42 = vpop.f32.mrb[131].mxu1  ;;  %v5176_v22 = vpop.f32.mrb[139].mxu0  ;;  %6856 = vmatmul.mubr.bf16.gmra.mrb[188].mxu1 %v5487_v13  ;;  %6921 = vmatmul.mubr.bf16.gmra.mrb[196].mxu0 %v5489_v4  ;;  %v5407_v36 = vmax.f32 %v5098_v38, 0.0  ;;  %v5409_v10 = vmax.f32 %v5171_v6, 0.0  ;;  %v9809_v4 = vld [vmem:[%s12502_s13 + $0x368] sm:$0xff]  }
0x11bc   : > { %v5104_v20 = vadd.f32 %v5103_v42, %v12031_v25  ;;  %v5177_v54 = vadd.f32 %v5176_v22, %v12043_v15  ;;  %8625 = vmatpush3.bf16.msra.mxu1 %v9799_v49  ;;  %8665 = vmatpush3.bf16.msra.mxu0 %v9800_v34  ;;  %v5408_v16 = vmax.f32 %v5100_v55, 0.0  ;;  %v5410_v2 = vmax.f32 %v5173_v18, 0.0  ;;  %v9814_v42 = vld [vmem:[%s12502_s13 + $0x3f0] sm:$0xff]  }
0x11bd   : > { %v5423_v63 = vmax.f32 %v5102_v0, 0.0  ;;  %v5425_v41 = vmax.f32 %v5175_v45, 0.0  ;;  %8626 = vmatprep.subr.bf16.mxu1 %v9801_v14  ;;  %8666 = vmatprep.subr.bf16.mxu0 %v9802_v21  ;;  %v12169_v38 = vrot.slane %v12001_v1, %v11840_v46  ;;  %v12175_v21 = vrot.slane %v12001_v1, %v11849_v17 }
0x11be   : > { %v5424_v3 = vmax.f32 %v5104_v20, 0.0  ;;  %v5426_v30 = vmax.f32 %v5177_v54, 0.0  ;;  %v12187_v29 = vrot.slane %v12001_v1, %v11858_v40 }
0x11bf   : > { %v5503_v7 = vpack.c.bf16 %v5423_v63, %v5407_v36  ;;  %v5505_v61 = vpack.c.bf16 %v5425_v41, %v5409_v10 }
0x11c0   : > { %v5504_v59 = vpack.c.bf16 %v5424_v3, %v5408_v16  ;;  %v5506_v33 = vpack.c.bf16 %v5426_v30, %v5410_v2  ;;  %v5107_v60 = vpop.f32.mrb[132].mxu1  ;;  %v5180_v11 = vpop.f32.mrb[140].mxu0  ;;  %8627 = vmatpush3.bf16.msra.mxu1 %v9803_v19  ;;  %8667 = vmatpush3.bf16.msra.mxu0 %v9804_v57 }
0x11c1   : > { %v5108_v50 = vadd.f32 %v5107_v60, %v12019_v23  ;;  %v5181_v35 = vadd.f32 %v5180_v11, %v12025_v43  ;;  %v5109_v5 = vpop.f32.mrb[133].mxu1  ;;  %v5182_v13 = vpop.f32.mrb[141].mxu0  ;;  %8628 = vmatprep.subr.bf16.mxu1 %v9805_v32  ;;  %8668 = vmatprep.subr.bf16.mxu0 %v9806_v56  ;;  %v9815_v32 = vld [vmem:[%s12502_s13 + $0x330] sm:$0xff]  }
0x11c2   : > { %v5110_v47 = vadd.f32 %v5109_v5, %v12031_v25  ;;  %v5183_v48 = vadd.f32 %v5182_v13, %v12043_v15  ;;  %v5111_v49 = vpop.f32.mrb[134].mxu1  ;;  %v5184_v34 = vpop.f32.mrb[142].mxu0  ;;  %6863 = vmatprep.mubr.bf16.mxu1 %v5504_v59  ;;  %6928 = vmatprep.mubr.bf16.mxu0 %v5506_v33  ;;  %v9816_v56 = vld [vmem:[%s12502_s13 + $0x3b0] sm:$0xff]  }
0x11c3   : > { %v5112_v6 = vadd.f32 %v5111_v49, %v12019_v23  ;;  %v5185_v12 = vadd.f32 %v5184_v34, %v12025_v43  ;;  %v5113_v24 = vpop.f32.mrb[135].mxu1  ;;  %v5186_v14 = vpop.f32.mrb[143].mxu0  ;;  %6864 = vmatmul.mubr.bf16.gmra.mrb[192].mxu1 %v5503_v7  ;;  %6929 = vmatmul.mubr.bf16.gmra.mrb[200].mxu0 %v5505_v61  ;;  %v9811_v23 = vld [vmem:[%s12502_s13 + $0x328] sm:$0xff]   ;;  %v5439_v9 = vmax.f32 %v5108_v50, 0.0  ;;  %v5441_v0 = vmax.f32 %v5181_v35, 0.0  ;;  %v9817_v7 = vld [vmem:[%s12502_s13 + $0x378] sm:$0xff]  }
0x11c4   : > { %v5114_v55 = vadd.f32 %v5113_v24, %v12031_v25  ;;  %v5187_v18 = vadd.f32 %v5186_v14, %v12043_v15  ;;  %8629 = vmatpush3.bf16.msra.mxu1 %v9807_v28  ;;  %8669 = vmatpush3.bf16.msra.mxu0 %v9808_v51  ;;  %v9812_v43 = vld [vmem:[%s12502_s13 + $0x3a8] sm:$0xff]   ;;  %v9813_v15 = vld [vmem:[%s12502_s13 + $0x370] sm:$0xff]   ;;  %v5440_v22 = vmax.f32 %v5110_v47, 0.0  ;;  %v5442_v20 = vmax.f32 %v5183_v48, 0.0  ;;  %v9818_v61 = vld [vmem:[%s12502_s13 + $0x3f8] sm:$0xff]  }
0x11c5   : > { %v5455_v45 = vmax.f32 %v5112_v6, 0.0  ;;  %v5457_v25 = vmax.f32 %v5185_v12, 0.0  ;;  %8630 = vmatprep.subr.bf16.mxu1 %v9809_v4  ;;  %8670 = vmatprep.subr.bf16.mxu0 %v9810_v52  ;;  %v9819_v4 = vld [vmem:[%s12502_s13 + $0x338] sm:$0xff]  }
0x11c6   : > { %v5456_v54 = vmax.f32 %v5114_v55, 0.0  ;;  %v5458_v19 = vmax.f32 %v5187_v18, 0.0  ;;  %v9820_v52 = vld [vmem:[%s12502_s13 + $0x3b8] sm:$0xff]  }
0x11c7   : > { %v5519_v1 = vpack.c.bf16 %v5455_v45, %v5439_v9  ;;  %v5521_v57 = vpack.c.bf16 %v5457_v25, %v5441_v0 }
0x11c8   : > { %v5520_v36 = vpack.c.bf16 %v5456_v54, %v5440_v22  ;;  %v5522_v10 = vpack.c.bf16 %v5458_v19, %v5442_v20  ;;  %v5223_v63 = vpop.f32.mrb[136].mxu1  ;;  %v5296_v41 = vpop.f32.mrb[144].mxu0  ;;  %8631 = vmatpush3.bf16.msra.mxu1 %v9811_v23  ;;  %8671 = vmatpush3.bf16.msra.mxu0 %v9812_v43 }
0x11c9   : > { %v5224_v16 = vadd.f32 %v5223_v63, %v12163_v26  ;;  %v5297_v2 = vadd.f32 %v5296_v41, %v12169_v38  ;;  %v5225_v3 = vpop.f32.mrb[137].mxu1  ;;  %v5298_v30 = vpop.f32.mrb[145].mxu0  ;;  %8632 = vmatprep.subr.bf16.mxu1 %v9813_v15  ;;  %8672 = vmatprep.subr.bf16.mxu0 %v9814_v42 }
0x11ca   : > { %v5226_v59 = vadd.f32 %v5225_v3, %v12175_v21  ;;  %v5299_v33 = vadd.f32 %v5298_v30, %v12187_v29  ;;  %v5227_v60 = vpop.f32.mrb[138].mxu1  ;;  %v5300_v11 = vpop.f32.mrb[146].mxu0  ;;  %6871 = vmatprep.mubr.bf16.mxu1 %v5520_v36  ;;  %6936 = vmatprep.mubr.bf16.mxu0 %v5522_v10 }
0x11cb   : > { %v5228_v28 = vadd.f32 %v5227_v60, %v12163_v26  ;;  %v5301_v51 = vadd.f32 %v5300_v11, %v12169_v38  ;;  %v5229_v50 = vpop.f32.mrb[139].mxu1  ;;  %v5302_v35 = vpop.f32.mrb[147].mxu0  ;;  %6872 = vmatmul.mubr.bf16.gmra.mrb[196].mxu1 %v5519_v1  ;;  %6937 = vmatmul.mubr.bf16.gmra.mrb[204].mxu0 %v5521_v57  ;;  %v5347_v47 = vmax.f32 %v5224_v16, 0.0  ;;  %v5349_v48 = vmax.f32 %v5297_v2, 0.0 }
0x11cc   : > { %v5230_v5 = vadd.f32 %v5229_v50, %v12175_v21  ;;  %v5303_v13 = vadd.f32 %v5302_v35, %v12187_v29  ;;  %8633 = vmatpush3.bf16.msra.mxu1 %v9815_v32  ;;  %8673 = vmatpush3.bf16.msra.mxu0 %v9816_v56  ;;  %v5348_v6 = vmax.f32 %v5226_v59, 0.0  ;;  %v5350_v12 = vmax.f32 %v5299_v33, 0.0 }
0x11cd   : > { %v5363_v49 = vmax.f32 %v5228_v28, 0.0  ;;  %v5365_v34 = vmax.f32 %v5301_v51, 0.0  ;;  %8634 = vmatprep.subr.bf16.mxu1 %v9817_v7  ;;  %8674 = vmatprep.subr.bf16.mxu0 %v9818_v61 }
0x11ce   : > { %v5364_v24 = vmax.f32 %v5230_v5, 0.0  ;;  %v5366_v14 = vmax.f32 %v5303_v13, 0.0 }
0x11cf   : > { %v5475_v55 = vpack.c.bf16 %v5363_v49, %v5347_v47  ;;  %v5477_v18 = vpack.c.bf16 %v5365_v34, %v5349_v48 }
0x11d0   : > { %v5476_v23 = vpack.c.bf16 %v5364_v24, %v5348_v6  ;;  %v5478_v43 = vpack.c.bf16 %v5366_v14, %v5350_v12  ;;  %v5233_v9 = vpop.f32.mrb[140].mxu1  ;;  %v5306_v0 = vpop.f32.mrb[148].mxu0  ;;  %8635 = vmatpush3.bf16.msra.mxu1 %v9819_v4  ;;  %8675 = vmatpush3.bf16.msra.mxu0 %v9820_v52 }
0x11d1   : > { %v5234_v45 = vadd.f32 %v5233_v9, %v12163_v26  ;;  %v5307_v25 = vadd.f32 %v5306_v0, %v12169_v38  ;;  %v5235_v15 = vpop.f32.mrb[141].mxu1  ;;  %v5308_v42 = vpop.f32.mrb[149].mxu0 }
0x11d2   : > { %v5236_v22 = vadd.f32 %v5235_v15, %v12175_v21  ;;  %v5309_v20 = vadd.f32 %v5308_v42, %v12187_v29  ;;  %v5237_v54 = vpop.f32.mrb[142].mxu1  ;;  %v5310_v19 = vpop.f32.mrb[150].mxu0  ;;  %6977 = vmatprep.mubr.bf16.mxu1 %v5476_v23  ;;  %7042 = vmatprep.mubr.bf16.mxu0 %v5478_v43 }
0x11d3   : > { %v5238_v1 = vadd.f32 %v5237_v54, %v12163_v26  ;;  %v5311_v57 = vadd.f32 %v5310_v19, %v12169_v38  ;;  %v5239_v36 = vpop.f32.mrb[143].mxu1  ;;  %v5312_v10 = vpop.f32.mrb[151].mxu0  ;;  %6978 = vmatmul.mubr.bf16.vlgmr.msra.gmra.mrb[200].mxu1 %v5475_v55  ;;  %7043 = vmatmul.mubr.bf16.vlgmr.msra.gmra.mrb[208].mxu0 %v5477_v18  ;;  %v5379_v32 = vmax.f32 %v5234_v45, 0.0  ;;  %v5381_v56 = vmax.f32 %v5307_v25, 0.0 }
0x11d4   : > { %v5240_v63 = vadd.f32 %v5239_v36, %v12175_v21  ;;  %v5313_v41 = vadd.f32 %v5312_v10, %v12187_v29  ;;  %v5380_v3 = vmax.f32 %v5236_v22, 0.0  ;;  %v5382_v30 = vmax.f32 %v5309_v20, 0.0 }
0x11d5   : > { %v5395_v16 = vmax.f32 %v5238_v1, 0.0  ;;  %v5397_v2 = vmax.f32 %v5311_v57, 0.0 }
0x11d6   : > { %v5396_v7 = vmax.f32 %v5240_v63, 0.0  ;;  %v5398_v61 = vmax.f32 %v5313_v41, 0.0 }
0x11d7   : > { %v5491_v59 = vpack.c.bf16 %v5395_v16, %v5379_v32  ;;  %v5493_v33 = vpack.c.bf16 %v5397_v2, %v5381_v56 }
0x11d8   : > { %v5492_v60 = vpack.c.bf16 %v5396_v7, %v5380_v3  ;;  %v5494_v11 = vpack.c.bf16 %v5398_v61, %v5382_v30  ;;  %v5243_v28 = vpop.f32.mrb[144].mxu1  ;;  %v5316_v51 = vpop.f32.mrb[152].mxu0 }
0x11d9   : > { %v5244_v50 = vadd.f32 %v5243_v28, %v12163_v26  ;;  %v5317_v35 = vadd.f32 %v5316_v51, %v12169_v38  ;;  %v5245_v5 = vpop.f32.mrb[145].mxu1  ;;  %v5318_v13 = vpop.f32.mrb[153].mxu0 }
0x11da   : > { %v5246_v4 = vadd.f32 %v5245_v5, %v12175_v21  ;;  %v5319_v52 = vadd.f32 %v5318_v13, %v12187_v29  ;;  %v5247_v47 = vpop.f32.mrb[146].mxu1  ;;  %v5320_v48 = vpop.f32.mrb[154].mxu0  ;;  %6985 = vmatprep.mubr.bf16.mxu1 %v5492_v60  ;;  %7050 = vmatprep.mubr.bf16.mxu0 %v5494_v11 }
0x11db   : > { %v5248_v49 = vadd.f32 %v5247_v47, %v12163_v26  ;;  %v5321_v34 = vadd.f32 %v5320_v48, %v12169_v38  ;;  %v5249_v6 = vpop.f32.mrb[147].mxu1  ;;  %v5322_v12 = vpop.f32.mrb[155].mxu0  ;;  %6986 = vmatmul.mubr.bf16.gmra.mrb[204].mxu1 %v5491_v59  ;;  %7051 = vmatmul.mubr.bf16.gmra.mrb[212].mxu0 %v5493_v33  ;;  %v5411_v55 = vmax.f32 %v5244_v50, 0.0  ;;  %v5413_v18 = vmax.f32 %v5317_v35, 0.0 }
0x11dc   : > { %v5250_v24 = vadd.f32 %v5249_v6, %v12175_v21  ;;  %v5323_v14 = vadd.f32 %v5322_v12, %v12187_v29  ;;  %v5412_v9 = vmax.f32 %v5246_v4, 0.0  ;;  %v5414_v0 = vmax.f32 %v5319_v52, 0.0 }
0x11dd   : > { %v5427_v23 = vmax.f32 %v5248_v49, 0.0  ;;  %v5429_v43 = vmax.f32 %v5321_v34, 0.0 }
0x11de   : > { %v5428_v45 = vmax.f32 %v5250_v24, 0.0  ;;  %v5430_v25 = vmax.f32 %v5323_v14, 0.0 }
0x11df   : > { %v5507_v15 = vpack.c.bf16 %v5427_v23, %v5411_v55  ;;  %v5509_v42 = vpack.c.bf16 %v5429_v43, %v5413_v18 }
0x11e0   : > { %v5508_v22 = vpack.c.bf16 %v5428_v45, %v5412_v9  ;;  %v5510_v20 = vpack.c.bf16 %v5430_v25, %v5414_v0  ;;  %v5253_v54 = vpop.f32.mrb[148].mxu1  ;;  %v5326_v19 = vpop.f32.mrb[156].mxu0 }
0x11e1   : > { %v5254_v1 = vadd.f32 %v5253_v54, %v12163_v26  ;;  %v5327_v57 = vadd.f32 %v5326_v19, %v12169_v38  ;;  %v5255_v36 = vpop.f32.mrb[149].mxu1  ;;  %v5328_v10 = vpop.f32.mrb[157].mxu0 }
0x11e2   : > { %v5256_v63 = vadd.f32 %v5255_v36, %v12175_v21  ;;  %v5329_v41 = vadd.f32 %v5328_v10, %v12187_v29  ;;  %v5257_v32 = vpop.f32.mrb[150].mxu1  ;;  %v5330_v56 = vpop.f32.mrb[158].mxu0  ;;  %6993 = vmatprep.mubr.bf16.mxu1 %v5508_v22  ;;  %7058 = vmatprep.mubr.bf16.mxu0 %v5510_v20 }
0x11e3   : > { %v5258_v16 = vadd.f32 %v5257_v32, %v12163_v26  ;;  %v5331_v2 = vadd.f32 %v5330_v56, %v12169_v38  ;;  %v5259_v3 = vpop.f32.mrb[151].mxu1  ;;  %v5332_v30 = vpop.f32.mrb[159].mxu0  ;;  %6994 = vmatmul.mubr.bf16.gmra.mrb[208].mxu1 %v5507_v15  ;;  %7059 = vmatmul.mubr.bf16.gmra.mrb[216].mxu0 %v5509_v42  ;;  %v5443_v59 = vmax.f32 %v5254_v1, 0.0  ;;  %v5445_v33 = vmax.f32 %v5327_v57, 0.0 }
0x11e4   : > { %v5260_v7 = vadd.f32 %v5259_v3, %v12175_v21  ;;  %v5333_v61 = vadd.f32 %v5332_v30, %v12187_v29  ;;  %v5444_v28 = vmax.f32 %v5256_v63, 0.0  ;;  %v5446_v51 = vmax.f32 %v5329_v41, 0.0  ;;  %v12248_v29 = vld [vmem:[%s12495_s6] sm:$0xff] }
0x11e5   : > { %v5459_v60 = vmax.f32 %v5258_v16, 0.0  ;;  %v5461_v11 = vmax.f32 %v5331_v2, 0.0  ;;  %v5786_v52 = vrot.slane %v12248_v29, %v11837_v44 }
0x11e6   : > { %v5460_v50 = vmax.f32 %v5260_v7, 0.0  ;;  %v5462_v35 = vmax.f32 %v5333_v61, 0.0 }
0x11e7   : > { %v5523_v5 = vpack.c.bf16 %v5459_v60, %v5443_v59  ;;  %v5525_v26 = vpack.c.bf16 %v5461_v11, %v5445_v33 }
0x11e8   : > { %v5524_v13 = vpack.c.bf16 %v5460_v50, %v5444_v28  ;;  %v5526_v38 = vpack.c.bf16 %v5462_v35, %v5446_v51 }
0x11ea   : > { %7001 = vmatprep.mubr.bf16.mxu1 %v5524_v13  ;;  %7066 = vmatprep.mubr.bf16.mxu0 %v5526_v38 }
0x11eb   : > { %7002 = vmatmul.mubr.bf16.gmra.mrb[212].mxu1 %v5523_v5  ;;  %7067 = vmatmul.mubr.bf16.gmra.mrb[220].mxu0 %v5525_v26 }
0x1246   : > { %v8396_v4 = vpop.f32.mrb[152].mxu1  ;;  %v8436_v21 = vpop.f32.mrb[160].mxu0 }
0x1247   : > { %v8397_v47 = vpop.f32.mrb[153].mxu1  ;;  %v8437_v48 = vpop.f32.mrb[161].mxu0 }
0x1248   : > { %v8398_v49 = vadd.f32 %v8397_v47, %v8396_v4  ;;  %v8438_v34 = vadd.f32 %v8437_v48, %v8436_v21  ;;  %v8399_v6 = vpop.f32.mrb[154].mxu1  ;;  %v8439_v12 = vpop.f32.mrb[162].mxu0 }
0x1249   : > { %v8400_v24 = vpop.f32.mrb[155].mxu1  ;;  %v8440_v14 = vpop.f32.mrb[163].mxu0 }
0x124a   : > { %v6590_v55 = vadd.f32 %v8398_v49, %v5786_v52  ;;  %v8401_v18 = vadd.f32 %v8400_v24, %v8399_v6  ;;  %v8441_v23 = vadd.f32 %v8440_v14, %v8439_v12 }
0x124c   : > { %v6655_v43 = vadd.f32 %v8438_v34, %v6590_v55  ;;  %v6593_v9 = vadd.f32 %v8401_v18, %v5786_v52 }
0x124e   : > { %v12252_v0 = vadd.f32 %v8441_v23, %v6593_v9  ;;  %v8402_v45 = vpop.f32.mrb[156].mxu1  ;;  %v8442_v25 = vpop.f32.mrb[164].mxu0 }
0x124f   : > { %v8403_v15 = vpop.f32.mrb[157].mxu1  ;;  %v8443_v42 = vpop.f32.mrb[165].mxu0 }
0x1250   : > { %v8404_v44 = vadd.f32 %v8403_v15, %v8402_v45  ;;  %v8444_v22 = vadd.f32 %v8443_v42, %v8442_v25  ;;  %v8405_v20 = vpop.f32.mrb[158].mxu1  ;;  %v8445_v54 = vpop.f32.mrb[166].mxu0 }
0x1251   : > { %v8406_v19 = vpop.f32.mrb[159].mxu1  ;;  %v8446_v1 = vpop.f32.mrb[167].mxu0 }
0x1252   : > { %v6598_v57 = vadd.f32 %v8404_v44, %v5786_v52  ;;  %v8407_v36 = vadd.f32 %v8406_v19, %v8405_v20  ;;  %v8447_v10 = vadd.f32 %v8446_v1, %v8445_v54 }
0x1254   : > { %v6663_v63 = vadd.f32 %v8444_v22, %v6598_v57  ;;  %v6601_v41 = vadd.f32 %v8407_v36, %v5786_v52 }
0x1256   : > { %v12254_v32 = vadd.f32 %v8447_v10, %v6601_v41  ;;  %v8408_v56 = vpop.f32.mrb[160].mxu1  ;;  %v8448_v16 = vpop.f32.mrb[168].mxu0 }
0x1257   : > { %v8409_v2 = vpop.f32.mrb[161].mxu1  ;;  %v8449_v3 = vpop.f32.mrb[169].mxu0 }
0x1258   : > { %v8410_v30 = vadd.f32 %v8409_v2, %v8408_v56  ;;  %v8450_v7 = vadd.f32 %v8449_v3, %v8448_v16  ;;  %v8411_v61 = vpop.f32.mrb[162].mxu1  ;;  %v8451_v59 = vpop.f32.mrb[170].mxu0 }
0x1259   : > { %v8412_v33 = vpop.f32.mrb[163].mxu1  ;;  %v8452_v60 = vpop.f32.mrb[171].mxu0 }
0x125a   : > { %v6606_v11 = vadd.f32 %v8410_v30, %v5786_v52  ;;  %v8413_v28 = vadd.f32 %v8412_v33, %v8411_v61  ;;  %v8453_v51 = vadd.f32 %v8452_v60, %v8451_v59 }
0x125c   : > { %v6671_v50 = vadd.f32 %v8450_v7, %v6606_v11  ;;  %v6609_v35 = vadd.f32 %v8413_v28, %v5786_v52 }
0x125e   : > { %v12256_v5 = vadd.f32 %v8453_v51, %v6609_v35  ;;  %v8414_v26 = vpop.f32.mrb[164].mxu1  ;;  %v8454_v13 = vpop.f32.mrb[172].mxu0 }
0x125f   : > { %v8415_v38 = vpop.f32.mrb[165].mxu1  ;;  %v8455_v4 = vpop.f32.mrb[173].mxu0 }
0x1260   : > { %v8416_v21 = vadd.f32 %v8415_v38, %v8414_v26  ;;  %v8456_v47 = vadd.f32 %v8455_v4, %v8454_v13  ;;  %v8417_v48 = vpop.f32.mrb[166].mxu1  ;;  %v8457_v49 = vpop.f32.mrb[174].mxu0 }
0x1261   : > { %v8418_v34 = vpop.f32.mrb[167].mxu1  ;;  %v8458_v6 = vpop.f32.mrb[175].mxu0 }
0x1262   : > { %v6614_v12 = vadd.f32 %v8416_v21, %v5786_v52  ;;  %v8419_v24 = vadd.f32 %v8418_v34, %v8417_v48  ;;  %v8459_v14 = vadd.f32 %v8458_v6, %v8457_v49 }
0x1264   : > { %v6679_v55 = vadd.f32 %v8456_v47, %v6614_v12  ;;  %v6617_v18 = vadd.f32 %v8419_v24, %v5786_v52 }
0x1266   : > { %v12258_v23 = vadd.f32 %v8459_v14, %v6617_v18  ;;  %v8476_v9 = vpop.f32.mrb[168].mxu1  ;;  %v8516_v45 = vpop.f32.mrb[176].mxu0 }
0x1267   : > { %v8477_v25 = vpop.f32.mrb[169].mxu1  ;;  %v8517_v15 = vpop.f32.mrb[177].mxu0 }
0x1268   : > { %v8478_v42 = vadd.f32 %v8477_v25, %v8476_v9  ;;  %v8518_v44 = vadd.f32 %v8517_v15, %v8516_v45  ;;  %v8479_v22 = vpop.f32.mrb[170].mxu1  ;;  %v8519_v20 = vpop.f32.mrb[178].mxu0 }
0x1269   : > { %v8480_v54 = vpop.f32.mrb[171].mxu1  ;;  %v8520_v19 = vpop.f32.mrb[179].mxu0 }
0x126a   : > { %v6720_v1 = vadd.f32 %v8478_v42, %v6655_v43  ;;  %v8481_v57 = vadd.f32 %v8480_v54, %v8479_v22  ;;  %v8521_v36 = vadd.f32 %v8520_v19, %v8519_v20 }
0x126c   : > { %v6785_v10 = vadd.f32 %v8518_v44, %v6720_v1  ;;  %v6723_v41 = vadd.f32 %v8481_v57, %v12252_v0 }
0x126e   : > { %v12261_v56 = vadd.f32 %v8521_v36, %v6723_v41  ;;  %v8482_v52 = vpop.f32.mrb[172].mxu1  ;;  %v8522_v16 = vpop.f32.mrb[180].mxu0 }
0x126f   : > { %v8483_v2 = vpop.f32.mrb[173].mxu1  ;;  %v8523_v3 = vpop.f32.mrb[181].mxu0 }
0x1270   : > { %v8484_v30 = vadd.f32 %v8483_v2, %v8482_v52  ;;  %v8524_v7 = vadd.f32 %v8523_v3, %v8522_v16  ;;  %v8485_v61 = vpop.f32.mrb[174].mxu1  ;;  %v8525_v59 = vpop.f32.mrb[182].mxu0 }
0x1271   : > { %v8486_v33 = vpop.f32.mrb[175].mxu1  ;;  %v8526_v60 = vpop.f32.mrb[183].mxu0 }
0x1272   : > { %v6728_v11 = vadd.f32 %v8484_v30, %v6663_v63  ;;  %v8487_v28 = vadd.f32 %v8486_v33, %v8485_v61  ;;  %v8527_v43 = vadd.f32 %v8526_v60, %v8525_v59 }
0x1274   : > { %v6793_v51 = vadd.f32 %v8524_v7, %v6728_v11  ;;  %v6731_v35 = vadd.f32 %v8487_v28, %v12254_v32 }
0x1276   : > { %v12264_v26 = vadd.f32 %v8527_v43, %v6731_v35  ;;  %v8488_v0 = vpop.f32.mrb[176].mxu1  ;;  %v8528_v13 = vpop.f32.mrb[184].mxu0 }
0x1277   : > { %v8489_v38 = vpop.f32.mrb[177].mxu1  ;;  %v8529_v4 = vpop.f32.mrb[185].mxu0 }
0x1278   : > { %v8490_v21 = vadd.f32 %v8489_v38, %v8488_v0  ;;  %v8530_v47 = vadd.f32 %v8529_v4, %v8528_v13  ;;  %v8491_v48 = vpop.f32.mrb[178].mxu1  ;;  %v8531_v49 = vpop.f32.mrb[186].mxu0 }
0x1279   : > { %v8492_v34 = vpop.f32.mrb[179].mxu1  ;;  %v8532_v6 = vpop.f32.mrb[187].mxu0 }
0x127a   : > { %v6736_v12 = vadd.f32 %v8490_v21, %v6671_v50  ;;  %v8493_v24 = vadd.f32 %v8492_v34, %v8491_v48  ;;  %v8533_v63 = vadd.f32 %v8532_v6, %v8531_v49 }
0x127c   : > { %v6801_v14 = vadd.f32 %v8530_v47, %v6736_v12  ;;  %v6739_v18 = vadd.f32 %v8493_v24, %v12256_v5 }
0x127e   : > { %v12267_v9 = vadd.f32 %v8533_v63, %v6739_v18  ;;  %v8494_v32 = vpop.f32.mrb[180].mxu1  ;;  %v8534_v45 = vpop.f32.mrb[188].mxu0 }
0x127f   : > { %v8495_v25 = vpop.f32.mrb[181].mxu1  ;;  %v8535_v15 = vpop.f32.mrb[189].mxu0 }
0x1280   : > { %v8496_v42 = vadd.f32 %v8495_v25, %v8494_v32  ;;  %v8536_v44 = vadd.f32 %v8535_v15, %v8534_v45  ;;  %v8497_v22 = vpop.f32.mrb[182].mxu1  ;;  %v8537_v20 = vpop.f32.mrb[190].mxu0 }
0x1281   : > { %v8498_v54 = vpop.f32.mrb[183].mxu1  ;;  %v8538_v19 = vpop.f32.mrb[191].mxu0 }
0x1282   : > { %v6744_v1 = vadd.f32 %v8496_v42, %v6679_v55  ;;  %v8499_v57 = vadd.f32 %v8498_v54, %v8497_v22  ;;  %v8539_v50 = vadd.f32 %v8538_v19, %v8537_v20 }
0x1284   : > { %v6809_v36 = vadd.f32 %v8536_v44, %v6744_v1  ;;  %v6747_v41 = vadd.f32 %v8499_v57, %v12258_v23 }
0x1286   : > { %v12270_v52 = vadd.f32 %v8539_v50, %v6747_v41  ;;  %v8556_v5 = vpop.f32.mrb[184].mxu1  ;;  %v8596_v16 = vpop.f32.mrb[192].mxu0 }
0x1287   : > { %v8557_v2 = vpop.f32.mrb[185].mxu1  ;;  %v8597_v3 = vpop.f32.mrb[193].mxu0 }
0x1288   : > { %v8558_v30 = vadd.f32 %v8557_v2, %v8556_v5  ;;  %v8598_v7 = vadd.f32 %v8597_v3, %v8596_v16  ;;  %v8559_v61 = vpop.f32.mrb[186].mxu1  ;;  %v8599_v59 = vpop.f32.mrb[194].mxu0 }
0x1289   : > { %v8560_v33 = vpop.f32.mrb[187].mxu1  ;;  %v8600_v60 = vpop.f32.mrb[195].mxu0 }
0x128a   : > { %v6850_v11 = vadd.f32 %v8558_v30, %v6785_v10  ;;  %v8561_v28 = vadd.f32 %v8560_v33, %v8559_v61  ;;  %v8601_v55 = vadd.f32 %v8600_v60, %v8599_v59 }
0x128c   : > { %v6915_v43 = vadd.f32 %v8598_v7, %v6850_v11  ;;  %v6853_v35 = vadd.f32 %v8561_v28, %v12261_v56 }
0x128e   : > { %v12273_v0 = vadd.f32 %v8601_v55, %v6853_v35  ;;  %v8562_v23 = vpop.f32.mrb[188].mxu1  ;;  %v8602_v13 = vpop.f32.mrb[196].mxu0 }
0x128f   : > { %v8563_v38 = vpop.f32.mrb[189].mxu1  ;;  %v8603_v4 = vpop.f32.mrb[197].mxu0 }
0x1290   : > { %v8564_v21 = vadd.f32 %v8563_v38, %v8562_v23  ;;  %v8604_v47 = vadd.f32 %v8603_v4, %v8602_v13  ;;  %v8565_v48 = vpop.f32.mrb[190].mxu1  ;;  %v8605_v49 = vpop.f32.mrb[198].mxu0 }
0x1291   : > { %v8566_v34 = vpop.f32.mrb[191].mxu1  ;;  %v8606_v6 = vpop.f32.mrb[199].mxu0 }
0x1292   : > { %v6858_v12 = vadd.f32 %v8564_v21, %v6793_v51  ;;  %v8567_v24 = vadd.f32 %v8566_v34, %v8565_v48  ;;  %v8607_v10 = vadd.f32 %v8606_v6, %v8605_v49 }
0x1294   : > { %v12275_v63 = vadd.f32 %v8604_v47, %v6858_v12  ;;  %v6861_v18 = vadd.f32 %v8567_v24, %v12264_v26 }
0x1296   : > { %v12278_v56 = vadd.f32 %v8607_v10, %v6861_v18  ;;  %v8568_v32 = vpop.f32.mrb[192].mxu1  ;;  %v8608_v45 = vpop.f32.mrb[200].mxu0 }
0x1297   : > { %v8569_v25 = vpop.f32.mrb[193].mxu1  ;;  %v8609_v15 = vpop.f32.mrb[201].mxu0 }
0x1298   : > { %v8570_v42 = vadd.f32 %v8569_v25, %v8568_v32  ;;  %v8610_v44 = vadd.f32 %v8609_v15, %v8608_v45  ;;  %v8571_v22 = vpop.f32.mrb[194].mxu1  ;;  %v8611_v20 = vpop.f32.mrb[202].mxu0 }
0x1299   : > { %v8572_v54 = vpop.f32.mrb[195].mxu1  ;;  %v8612_v19 = vpop.f32.mrb[203].mxu0 }
0x129a   : > { %v6866_v1 = vadd.f32 %v8570_v42, %v6801_v14  ;;  %v8573_v51 = vadd.f32 %v8572_v54, %v8571_v22  ;;  %v8613_v57 = vadd.f32 %v8612_v19, %v8611_v20 }
0x129c   : > { %v12280_v50 = vadd.f32 %v8610_v44, %v6866_v1  ;;  %v6869_v41 = vadd.f32 %v8573_v51, %v12267_v9 }
0x129e   : > { %v12283_v26 = vadd.f32 %v8613_v57, %v6869_v41  ;;  %v8574_v5 = vpop.f32.mrb[196].mxu1  ;;  %v8614_v16 = vpop.f32.mrb[204].mxu0 }
0x129f   : > { %v8575_v2 = vpop.f32.mrb[197].mxu1  ;;  %v8615_v3 = vpop.f32.mrb[205].mxu0 }
0x12a0   : > { %v8576_v30 = vadd.f32 %v8575_v2, %v8574_v5  ;;  %v8616_v7 = vadd.f32 %v8615_v3, %v8614_v16  ;;  %v8577_v61 = vpop.f32.mrb[198].mxu1  ;;  %v8617_v59 = vpop.f32.mrb[206].mxu0 }
0x12a1   : > { %v8578_v33 = vpop.f32.mrb[199].mxu1  ;;  %v8618_v60 = vpop.f32.mrb[207].mxu0 }
0x12a2   : > { %v6874_v11 = vadd.f32 %v8576_v30, %v6809_v36  ;;  %v8579_v14 = vadd.f32 %v8578_v33, %v8577_v61  ;;  %v8619_v28 = vadd.f32 %v8618_v60, %v8617_v59 }
0x12a4   : > { %v12285_v55 = vadd.f32 %v8616_v7, %v6874_v11  ;;  %v6877_v35 = vadd.f32 %v8579_v14, %v12270_v52 }
0x12a6   : > { %v12288_v9 = vadd.f32 %v8619_v28, %v6877_v35  ;;  %v8636_v23 = vpop.f32.mrb[200].mxu1  ;;  %v8676_v13 = vpop.f32.mrb[208].mxu0 }
0x12a7   : > { %v8637_v38 = vpop.f32.mrb[201].mxu1  ;;  %v8677_v4 = vpop.f32.mrb[209].mxu0 }
0x12a8   : > { %v8638_v21 = vadd.f32 %v8637_v38, %v8636_v23  ;;  %v8678_v47 = vadd.f32 %v8677_v4, %v8676_v13  ;;  %v8639_v48 = vpop.f32.mrb[202].mxu1  ;;  %v8679_v49 = vpop.f32.mrb[210].mxu0 }
0x12a9   : > { %v8640_v34 = vpop.f32.mrb[203].mxu1  ;;  %v8680_v6 = vpop.f32.mrb[211].mxu0 }
0x12aa   : > { %v6980_v12 = vadd.f32 %v8638_v21, %v6915_v43  ;;  %v8641_v36 = vadd.f32 %v8640_v34, %v8639_v48  ;;  %v8681_v24 = vadd.f32 %v8680_v6, %v8679_v49 }
0x12ac   : > { %v7045_v10 = vadd.f32 %v8678_v47, %v6980_v12  ;;  %v6983_v18 = vadd.f32 %v8641_v36, %v12273_v0 }
0x12ae   : > { %v7048_v32 = vadd.f32 %v8681_v24, %v6983_v18  ;;  %v8642_v52 = vpop.f32.mrb[204].mxu1  ;;  %v8682_v45 = vpop.f32.mrb[212].mxu0  ;;  %v12292_v25 = vadd.f32 %v7045_v10, %v11427_v58 }
0x12af   : > { %v8643_v15 = vpop.f32.mrb[205].mxu1  ;;  %v8683_v42 = vpop.f32.mrb[213].mxu0 }
0x12b0   : > { %v8644_v44 = vadd.f32 %v8643_v15, %v8642_v52  ;;  %v8684_v22 = vadd.f32 %v8683_v42, %v8682_v45  ;;  %v8645_v20 = vpop.f32.mrb[206].mxu1  ;;  %v8685_v54 = vpop.f32.mrb[214].mxu0  ;;  %v7083_v43 = vsel %vm673_vm1, %v12292_v25, 0.0  ;;  %v12297_v19 = vadd.f32 %v7048_v32, %v11420_v37 }
0x12b1   : > { %v8646_v1 = vpop.f32.mrb[207].mxu1  ;;  %v8686_v0 = vpop.f32.mrb[215].mxu0  ;;  %7084 = vadd.xlane.f32.xlu0 %v7083_v43 }
0x12b2   : > { %v6988_v51 = vadd.f32 %v8644_v44, %v12275_v63  ;;  %v8647_v57 = vadd.f32 %v8646_v1, %v8645_v20  ;;  %v8687_v58 = vadd.f32 %v8686_v0, %v8685_v54  ;;  %v7086_v41 = vsel %vm673_vm1, %v12297_v19, 0.0 }
0x12b3   : > { %7087 = vadd.xlane.f32.xlu1 %v7086_v41 }
0x12b4   : > { %v7053_v5 = vadd.f32 %v8684_v22, %v6988_v51  ;;  %v6991_v16 = vadd.f32 %v8647_v57, %v12278_v56 }
0x12b6   : > { %v7056_v2 = vadd.f32 %v8687_v58, %v6991_v16  ;;  %v8648_v3 = vpop.f32.mrb[208].mxu1  ;;  %v8688_v30 = vpop.f32.mrb[216].mxu0  ;;  %v12304_v37 = vadd.f32 %v7053_v5, %v11479_v27 }
0x12b7   : > { %v8649_v7 = vpop.f32.mrb[209].mxu1  ;;  %v8689_v61 = vpop.f32.mrb[217].mxu0 }
0x12b8   : > { %v8650_v59 = vadd.f32 %v8649_v7, %v8648_v3  ;;  %v8690_v33 = vadd.f32 %v8689_v61, %v8688_v30  ;;  %v8651_v63 = vpop.f32.mrb[210].mxu1  ;;  %v8691_v60 = vpop.f32.mrb[218].mxu0  ;;  %v7089_v11 = vsel %vm673_vm1, %v12304_v37, 0.0  ;;  %v7078_v14 = vadd.f32 %v7056_v2, %v11470_v8 }
0x12b9   : > { %v8652_v28 = vpop.f32.mrb[211].mxu1  ;;  %v8692_v35 = vpop.f32.mrb[219].mxu0  ;;  %7090 = vadd.xlane.f32.xlu0 %v7089_v11 }
0x12ba   : > { %v6996_v56 = vadd.f32 %v8650_v59, %v12280_v50  ;;  %v8653_v23 = vadd.f32 %v8652_v28, %v8651_v63  ;;  %v8693_v13 = vadd.f32 %v8692_v35, %v8691_v60  ;;  %v7092_v27 = vsel %vm673_vm1, %v7078_v14, 0.0 }
0x12bb   : > { %7093 = vadd.xlane.f32.xlu1 %v7092_v27 }
0x12bc   : > { %v7061_v38 = vadd.f32 %v8690_v33, %v6996_v56  ;;  %v6999_v4 = vadd.f32 %v8653_v23, %v12283_v26 }
0x12be   : > { %v7064_v21 = vadd.f32 %v8693_v13, %v6999_v4  ;;  %v8654_v47 = vpop.f32.mrb[212].mxu1  ;;  %v8694_v48 = vpop.f32.mrb[220].mxu0  ;;  %v7079_v49 = vadd.f32 %v7061_v38, %v11505_v53 }
0x12bf   : > { %v8655_v34 = vpop.f32.mrb[213].mxu1  ;;  %v8695_v8 = vpop.f32.mrb[221].mxu0 }
0x12c0   : > { %v8656_v6 = vadd.f32 %v8655_v34, %v8654_v47  ;;  %v8696_v12 = vadd.f32 %v8695_v8, %v8694_v48  ;;  %v8657_v36 = vpop.f32.mrb[214].mxu1  ;;  %v8697_v24 = vpop.f32.mrb[222].mxu0  ;;  %v7095_v50 = vsel %vm673_vm1, %v7079_v49, 0.0  ;;  %v7080_v10 = vadd.f32 %v7064_v21, %v11502_v31 }
0x12c1   : > { %v8658_v18 = vpop.f32.mrb[215].mxu1  ;;  %v8698_v32 = vpop.f32.mrb[223].mxu0  ;;  %7096 = vadd.xlane.f32.xlu0 %v7095_v50  ;;  %v10058_v8 = vmov 0.0|0.0  }
0x12c2   : > { %v7004_v26 = vadd.f32 %v8656_v6, %v12285_v55  ;;  %v8659_v52 = vadd.f32 %v8658_v18, %v8657_v36  ;;  %v8699_v45 = vadd.f32 %v8698_v32, %v8697_v24  ;;  %v7098_v15 = vsel %vm673_vm1, %v7080_v10, 0.0  ;;  %9596 = vmatprep.subr.bf16.mxu1 %v10058_v8 }
0x12c3   : > { %7099 = vadd.xlane.f32.xlu1 %v7098_v15  ;;  %v10060_v6 = vmov 0.0  }
0x12c4   : > { %v7069_v53 = vadd.f32 %v8696_v12, %v7004_v26  ;;  %v7007_v42 = vadd.f32 %v8659_v52, %v12288_v9  ;;  %9295 = vmatprep.mubr.msk.f32.mxu1 %vm10059_vm5, %v10060_v6 }
0x12c6   : > { %v7072_v44 = vadd.f32 %v8699_v45, %v7007_v42  ;;  %v7081_v22 = vadd.f32 %v7069_v53, %v11525_v62  ;;  %v7190_v42 = vrot.slane %v12248_v29, %v11849_v17 }
0x12c8   : > { %v7101_v20 = vsel %vm673_vm1, %v7081_v22, 0.0  ;;  %v7082_v31 = vadd.f32 %v7072_v44, %v11522_v39 }
0x12c9   : > { %7102 = vadd.xlane.f32.xlu0 %v7101_v20 }
0x12ca   : > { %v7104_v54 = vsel %vm673_vm1, %v7082_v31, 0.0 }
0x12cb   : > { %7105 = vadd.xlane.f32.xlu1 %v7104_v54 }
0x133e   : > { %v7085_v55 = vpop.xlane.xlu0 %7084 }
0x133f   : > { %v7107_v43 = vmul.f32 0.03125, %v7085_v55 }
0x1340   : > { %v7088_v1 = vpop.xlane.xlu1 %7087 }
0x1341   : > { %v12323_v0 = vsub.f32 %v12292_v25, %v7107_v43  ;;  %v7108_v51 = vmul.f32 0.03125, %v7088_v1 }
0x1343   : > { %v12326_v9 = vsub.f32 %v12297_v19, %v7108_v51  ;;  %v7123_v62 = vmul.f32 %v12323_v0, %v12323_v0  ;;  %v7202_v51 = vrot.slane %v12248_v29, %v11840_v46 }
0x1345   : > { %v7131_v57 = vsel %vm673_vm1, %v7123_v62, 0.0  ;;  %v7124_v39 = vmul.f32 %v12326_v9, %v12326_v9 }
0x1346   : > { %v7091_v58 = vpop.xlane.xlu0 %7090  ;;  %7132 = vadd.xlane.f32.xlu0 %v7131_v57 }
0x1347   : > { %v7109_v41 = vmul.f32 0.03125, %v7091_v58  ;;  %v7134_v5 = vsel %vm673_vm1, %v7124_v39, 0.0 }
0x1348   : > { %v7094_v16 = vpop.xlane.xlu1 %7093  ;;  %7135 = vadd.xlane.f32.xlu1 %v7134_v5 }
0x1349   : > { %v12335_v25 = vsub.f32 %v12304_v37, %v7109_v41  ;;  %v7110_v19 = vmul.f32 0.03125, %v7094_v16 }
0x134b   : > { %v12337_v2 = vsub.f32 %v7078_v14, %v7110_v19  ;;  %v7125_v3 = vmul.f32 %v12335_v25, %v12335_v25 }
0x134d   : > { %v7137_v30 = vsel %vm673_vm1, %v7125_v3, 0.0  ;;  %v7126_v7 = vmul.f32 %v12337_v2, %v12337_v2 }
0x134e   : > { %v7097_v61 = vpop.xlane.xlu0 %7096  ;;  %7138 = vadd.xlane.f32.xlu0 %v7137_v30 }
0x134f   : > { %v7111_v59 = vmul.f32 0.03125, %v7097_v61  ;;  %v7140_v33 = vsel %vm673_vm1, %v7126_v7, 0.0 }
0x1350   : > { %v7100_v63 = vpop.xlane.xlu1 %7099  ;;  %7141 = vadd.xlane.f32.xlu1 %v7140_v33 }
0x1351   : > { %v12345_v37 = vsub.f32 %v7079_v49, %v7111_v59  ;;  %v7112_v60 = vmul.f32 0.03125, %v7100_v63 }
0x1353   : > { %v12347_v11 = vsub.f32 %v7080_v10, %v7112_v60  ;;  %v7127_v14 = vmul.f32 %v12345_v37, %v12345_v37 }
0x1355   : > { %v7143_v28 = vsel %vm673_vm1, %v7127_v14, 0.0  ;;  %v7128_v35 = vmul.f32 %v12347_v11, %v12347_v11 }
0x1356   : > { %7144 = vadd.xlane.f32.xlu0 %v7143_v28  ;;  %v7103_v56 = vpop.xlane.xlu0 %7102 }
0x1357   : > { %v7113_v23 = vmul.f32 0.03125, %v7103_v56  ;;  %v7146_v13 = vsel %vm673_vm1, %v7128_v35, 0.0 }
0x1358   : > { %7147 = vadd.xlane.f32.xlu1 %v7146_v13  ;;  %v7106_v27 = vpop.xlane.xlu1 %7105 }
0x1359   : > { %v12355_v38 = vsub.f32 %v7081_v22, %v7113_v23  ;;  %v7114_v4 = vmul.f32 0.03125, %v7106_v27 }
0x135b   : > { %v12357_v21 = vsub.f32 %v7082_v31, %v7114_v4  ;;  %v7129_v47 = vmul.f32 %v12355_v38, %v12355_v38 }
0x135d   : > { %v7149_v48 = vsel %vm673_vm1, %v7129_v47, 0.0  ;;  %v7130_v49 = vmul.f32 %v12357_v21, %v12357_v21 }
0x135e   : > { %7150 = vadd.xlane.f32.xlu0 %v7149_v48 }
0x135f   : > { %v7152_v34 = vsel %vm673_vm1, %v7130_v49, 0.0 }
0x1360   : > { %7153 = vadd.xlane.f32.xlu1 %v7152_v34 }
0x13d3   : > { %v7133_v12 = vpop.xlane.xlu0 %7132 }
0x13d4   : > { %v7155_v36 = vmul.f32 0.03125, %v7133_v12 }
0x13d5   : > { %v7136_v24 = vpop.xlane.xlu1 %7135 }
0x13d6   : > { %v7163_v50 = vadd.f32 1e-05, %v7155_v36  ;;  %v7156_v10 = vmul.f32 0.03125, %v7136_v24 }
0x13d8   : > { %9965 = vrsqrt.f32 %v7163_v50  ;;  %v7164_v18 = vadd.f32 1e-05, %v7156_v10  ;;  %v7285_v50 = vld [vmem:[%s12503_s14] sm:$0xff]  ;;  %v7286_v10 = vld [vmem:[%s12503_s14 + $0x8] sm:$0xff] }
0x13da   : > { %9967 = vrsqrt.f32 %v7164_v18  ;;  %v9609_v18 = vpack.c.bf16 %v7286_v10, %v7285_v50 }
0x13db   : > { %v7139_v32 = vpop.xlane.xlu0 %7138 }
0x13dc   : > { %v7157_v26 = vmul.f32 0.03125, %v7139_v32  ;;  %v7287_v32 = vld [vmem:[%s12503_s14 + $0x10] sm:$0xff] }
0x13dd   : > { %v7142_v52 = vpop.xlane.xlu1 %7141 }
0x13de   : > { %v7165_v45 = vadd.f32 1e-05, %v7157_v26  ;;  %v7158_v15 = vmul.f32 0.03125, %v7142_v52  ;;  %v7288_v26 = vld [vmem:[%s12503_s14 + $0x18] sm:$0xff] }
0x13df   : > { %v9612_v52 = vpack.c.bf16 %v7288_v26, %v7287_v32 }
0x13e0   : > { %9969 = vrsqrt.f32 %v7165_v45  ;;  %v7166_v53 = vadd.f32 1e-05, %v7158_v15  ;;  %v7367_v45 = vld [vmem:[%s12504_s15] sm:$0xff]  ;;  %v7368_v15 = vld [vmem:[%s12504_s15 + $0x8] sm:$0xff] }
0x13e2   : > { %v9966_v44 = vpop.eup %9965  ;;  %9971 = vrsqrt.f32 %v7166_v53  ;;  %v9615_v53 = vpack.c.bf16 %v7368_v15, %v7367_v45 }
0x13e3   : > { %v7179_v22 = vmul.f32 %v9966_v44, %v12323_v0  ;;  %v7145_v20 = vpop.xlane.xlu0 %7144  ;;  %v7370_v44 = vld [vmem:[%s12504_s15 + $0x18] sm:$0xff] }
0x13e4   : > { %v9968_v31 = vpop.eup %9967  ;;  %v7159_v54 = vmul.f32 0.03125, %v7145_v20 }
0x13e5   : > { %v7180_v55 = vmul.f32 %v9968_v31, %v12326_v9  ;;  %v7148_v43 = vpop.xlane.xlu1 %7147  ;;  %v7191_v1 = vmul.f32 %v7190_v42, %v7179_v22 }
0x13e6   : > { %v7167_v62 = vadd.f32 1e-05, %v7159_v54  ;;  %v7160_v57 = vmul.f32 0.03125, %v7148_v43  ;;  %v7371_v54 = vld [vmem:[%s12504_s15 + $0x20] sm:$0xff] }
0x13e7   : > { %v7192_v39 = vmul.f32 %v7190_v42, %v7180_v55  ;;  %v7203_v17 = vadd.f32 %v7202_v51, %v7191_v1  ;;  %v7372_v55 = vld [vmem:[%s12504_s15 + $0x28] sm:$0xff]  ;;  %v7374_v1 = vld [vmem:[%s12504_s15 + $0x38] sm:$0xff] }
0x13e8   : > { %9973 = vrsqrt.f32 %v7167_v62  ;;  %v7168_v58 = vadd.f32 1e-05, %v7160_v57  ;;  %v9621_v43 = vpack.c.bf16 %v7372_v55, %v7371_v54  ;;  %v7292_v62 = vrot.slane %v12248_v29, %v11858_v40 }
0x13e9   : > { %v7204_v41 = vadd.f32 %v7202_v51, %v7192_v39 }
0x13ea   : > { %v9970_v5 = vpop.eup %9969  ;;  %9975 = vrsqrt.f32 %v7168_v58 }
0x13eb   : > { %v7181_v0 = vmul.f32 %v9970_v5, %v12335_v25  ;;  %v7151_v16 = vpop.xlane.xlu0 %7150  ;;  %v9597_v19 = vpack.c.bf16 %v7204_v41, %v7203_v17 }
0x13ec   : > { %v9972_v3 = vpop.eup %9971  ;;  %v7161_v9 = vmul.f32 0.03125, %v7151_v16 }
0x13ed   : > { %v7182_v30 = vmul.f32 %v9972_v3, %v12337_v2  ;;  %v7154_v7 = vpop.xlane.xlu1 %7153  ;;  %9598 = vmatpush3.bf16.msra.mxu1 %v9597_v19  ;;  %v7193_v46 = vmul.f32 %v7190_v42, %v7181_v0 }
0x13ee   : > { %v7169_v61 = vadd.f32 1e-05, %v7161_v9  ;;  %v7162_v59 = vmul.f32 0.03125, %v7154_v7  ;;  %9599 = vmatprep.subr.bf16.mxu1 %v10058_v8 }
0x13ef   : > { %v7194_v33 = vmul.f32 %v7190_v42, %v7182_v30  ;;  %v7205_v60 = vadd.f32 %v7202_v51, %v7193_v46 }
0x13f0   : > { %9977 = vrsqrt.f32 %v7169_v61  ;;  %v7170_v63 = vadd.f32 1e-05, %v7162_v59 }
0x13f1   : > { %v7206_v14 = vadd.f32 %v7202_v51, %v7194_v33 }
0x13f2   : > { %v9974_v28 = vpop.eup %9973  ;;  %9979 = vrsqrt.f32 %v7170_v63 }
0x13f3   : > { %v7183_v25 = vmul.f32 %v9974_v28, %v12345_v37  ;;  %v9600_v35 = vpack.c.bf16 %v7206_v14, %v7205_v60 }
0x13f4   : > { %v9976_v56 = vpop.eup %9975 }
0x13f5   : > { %v7184_v2 = vmul.f32 %v9976_v56, %v12347_v11  ;;  %9601 = vmatpush3.bf16.msra.mxu1 %v9600_v35  ;;  %v7195_v23 = vmul.f32 %v7190_v42, %v7183_v25 }
0x13f6   : > { %9602 = vmatprep.subr.bf16.mxu1 %v10058_v8 }
0x13f7   : > { %v7196_v13 = vmul.f32 %v7190_v42, %v7184_v2  ;;  %v7207_v27 = vadd.f32 %v7202_v51, %v7195_v23 }
0x13f9   : > { %v7208_v4 = vadd.f32 %v7202_v51, %v7196_v13 }
0x13fa   : > { %v9978_v47 = vpop.eup %9977 }
0x13fb   : > { %v7185_v48 = vmul.f32 %v9978_v47, %v12355_v38  ;;  %v9603_v49 = vpack.c.bf16 %v7208_v4, %v7207_v27 }
0x13fc   : > { %v9980_v34 = vpop.eup %9979 }
0x13fd   : > { %v7186_v12 = vmul.f32 %v9980_v34, %v12357_v21  ;;  %9604 = vmatpush3.bf16.msra.mxu1 %v9603_v49  ;;  %v7197_v37 = vmul.f32 %v7190_v42, %v7185_v48  ;;  %v7211_v21 = vld [vmem:[%s12494_s5] sm:$0xff] }
0x13fe   : > { %9605 = vmatprep.subr.bf16.mxu1 %v10058_v8 }
0x13ff   : > { %v7198_v36 = vmul.f32 %v7190_v42, %v7186_v12  ;;  %v7209_v11 = vadd.f32 %v7202_v51, %v7197_v37  ;;  %v7369_v42 = vld [vmem:[%s12504_s15 + $0x10] sm:$0xff] }
0x1400   : > { %v9618_v31 = vpack.c.bf16 %v7370_v44, %v7369_v42 }
0x1401   : > { %v7210_v24 = vadd.f32 %v7202_v51, %v7198_v36 }
0x1403   : > { %v9606_v38 = vpack.c.bf16 %v7210_v24, %v7209_v11 }
0x1405   : > { %9607 = vmatpush3.bf16.msra.mxu1 %v9606_v38 }
0x1406   : > { %9608 = vmatprep.subr.bf16.mxu1 %v10058_v8 }
0x1408   : > { %9296 = vmatmul.mubr.msk.f32.vlgmr.msra.gmra.mrb[216].mxu1 %vm1381_vm4, %v7211_v21 }
0x1409   : > { %9610 = vmatpush3.bf16.msra.mxu1 %v9609_v18  ;;  %9306 = vmatprep.mubr.msk.f32.mxu1 %vm10059_vm5, %v10060_v6 }
0x140a   : > { %9611 = vmatprep.subr.bf16.mxu1 %v10058_v8 }
0x140d   : > { %9613 = vmatpush3.bf16.msra.mxu1 %v9612_v52 }
0x140e   : > { %9614 = vmatprep.subr.bf16.mxu1 %v10058_v8 }
0x14db   : > { %v7281_v22 = vpop.f32.mrb[216].mxu1 }
0x14dc   : > { %9307 = vmatmul.mubr.msk.f32.vlgmr.msra.gmra.mrb[218].mxu1 %vm673_vm1, %v7281_v22  ;;  %v9297_v20 = vpop.f32.mrb[217].mxu1 }
0x14dd   : > { %9616 = vmatpush3.bf16.msra.mxu1 %v9615_v53  ;;  %9325 = vmatprep.mubr.msk.f32.mxu1 %vm10059_vm5, %v10060_v6  ;;  %v7373_v6 = vld [vmem:[%s12504_s15 + $0x30] sm:$0xff] }
0x14de   : > { %9617 = vmatprep.subr.bf16.mxu1 %v10058_v8  ;;  %v9624_v51 = vpack.c.bf16 %v7374_v1, %v7373_v6 }
0x14e1   : > { %9619 = vmatpush3.bf16.msra.mxu1 %v9618_v31 }
0x14e2   : > { %9620 = vmatprep.subr.bf16.mxu1 %v10058_v8 }
0x14e5   : > { %9622 = vmatpush3.bf16.msra.mxu1 %v9621_v43 }
0x14e6   : > { %9623 = vmatprep.subr.bf16.mxu1 %v10058_v8  ;;  %v8044_v8 = vld [vmem:[%s12495_s6 + $0x8] ss:$0 sm:$0xff] }
0x14e9   : > { %9625 = vmatpush3.bf16.msra.mxu1 %v9624_v51 }
0x15af   : > { %v7362_v57 = vpop.f32.mrb[218].mxu1 }
0x15b0   : > { %v7363_v39 = vadd.f32 %v7362_v57, %v7292_v62  ;;  %v9308_v58 = vpop.f32.mrb[219].mxu1 }
0x15b2   : > { %v7366_v17 = vmax.f32 %v7363_v39, 0.0 }
0x15b4   : > { %9326 = vmatmul.mubr.msk.f32.vlgmr.msra.gmra.mrb[220].mxu1 %vm1381_vm4, %v7366_v17 }
0x1687   : > { %v7448_v41 = vpop.f32.mrb[220].mxu1 }
0x1688   : > { %v7449_v5 = vadd.f32 %v8044_v8, %v7448_v41  ;;  %v9327_v0 = vpop.f32.mrb[221].mxu1 }
0x168a   : > { %v7452_v16 = vmul.f32 %v7449_v5, %v7449_v5 }
0x168c   : > { %v7453_v19 = vsel %vm673_vm1, %v7452_v16, 0.0 }
0x168d   : > { %7454 = vadd.xlane.f32.xlu0 %v7453_v19 }
0x171a   : > { %v7455_v3 = vpop.xlane.xlu0 %7454 }
0x171b   : > { %v7456_v40 = vmax.f32 %v7455_v3, 1e-24 }
0x171d   : > { %9981 = vrsqrt.f32 %v7456_v40 }
0x1727   : > { %v9982_v29 = vpop.eup %9981 }
0x1728   : > { %v7458_v9 = vmul.f32 %v9982_v29, %v7449_v5 }
0x172a   : > { %7459 = vst.msk [vmem:[%s515_s19] sm:$0xff] %vm673_vm1, %v7458_v9 }
0x172b   : > { %10006 = shalt.err (!%p10003_p3)
}
0x172c   : > { %s10007_s29 = scalar_lea.hbm %s12446_s27, 128  ;;  %s10011_s26 = scalar_lea.hbm %s12505_s16, 256 }
0x172d   : > { %p10008_p4 = scmp.ne.s32.totalorder %s12446_s27, %s10007_s29  ;;  %p10012_p9 = scmp.lt.u32.totalorder %s12446_s27, %s12505_s16 }
0x172e   : > { %p10013_p10 = scmp.lt.u32.totalorder %s10011_s26, %s10007_s29  ;;  %p10015_p12 = scmp.lt.u32.totalorder %s10007_s29, %s12446_s27 }
0x172f   : > { %p10009_p7 = pnand %p10008_p4, %p10185_p5 }
0x1730   : > { %p10014_p11 = por %p10013_p10, %p10012_p9 }
0x1731   : > { %p10010_p8 = pneg %p10009_p7 }
0x1732   : > { %p10016_p13 = por %p10015_p12, %p10014_p11 }
0x1734   : > { %p10017_p0 = pnand %p10016_p13, %p10010_p8 }
0x1736   : > { %10020 = shalt.err (!%p10017_p0)
}
0x1737   : > { %9650 = dma.vmem_to_hbm [thread:$0]  (%p10185_p5), %s12448_s20, 128, %s12446_s27, %s7461_s30  }
0x1738 PF: > { %p9656_p1 = scmp.ge.s32.totalorder %s10055_s24, 2  ;;  %s7486_s1 = sand.u32 1, %s10043_s21  }
0x1739   : > { %s7487_s28 = scalar_lea.sflag [#allocation3], %s7486_s1 }
0x173a   : > { %p9653_p2 = pnand %p9656_p1, %p10189_p6 }
0x173c   : > { %10038 = dma.done.wait (!%p9653_p2), %s7487_s28, 128  }
0x173d   : > { %10040 = vsyncadd (!%p9653_p2), %s7487_s28, 4294967168  ;;  %s12522_s24 = sld [smem:[#allocation6_spill]]  ;;  %s12523_s18 = sld [smem:[#allocation5_spill]] }
0x173e   : > { %s12524_s23 = sld [smem:[#allocation7_spill]]  ;;  %s12525_s21 = smov %s10047_s22 }
0x1743   : > { %p26_p3 = scmp.ge.s32.totalorder %s12522_s24, 4   ;;  %s12526_s22 = smov %s12523_s18 }
0x1745   :  { %28 = sbr.rel (!%p26_p3) target bundleno = 7 (0x7), region = 144 }
0x174c   :  { %7492 = vsyncpa [#allocation3], 1 }
0x174d   :  { %7494 = vsyncpa [#allocation3 + $0x1], 1 }

</bundles_post_ra>
